<compile_context>
chip_gen: v5e
topology: v5e:2x2
jax: 0.10.0
libtpu: 0.0.40
codegen_flags: <defaults>
</compile_context>

<pallas_src>
import math

import jax
import jax.numpy as jnp
from jax.experimental import pallas as pl
from jax.experimental.pallas import tpu as pltpu

# ----------------- "config" (mirrors config.* fields of the module) -----------------
EMBED_DIM  = 32    # config.embed_dim
NUM_HEADS  = 4     # config.num_heads
HEAD_DIM   = EMBED_DIM // NUM_HEADS
MLP_DIM    = 64    # config.mlp_dim
NUM_LAYERS = 2     # config.num_layers
BATCH      = 2
SEQ_LEN    = 8
L1         = SEQ_LEN + 1   # +1 conditioner/time token
ROWS       = BATCH * L1    # batch flattened into the row (sublane) dimension


def _layer_norm(x, gamma, beta, eps=1e-5):
    mean = jnp.mean(x, axis=-1, keepdims=True)
    var = jnp.mean(jnp.square(x - mean), axis=-1, keepdims=True)
    inv = jax.lax.rsqrt(var + eps)
    return (x - mean) * inv * gamma + beta


# ------------------------------------ kernel ----------------------------------------
def transformer_encoder_kernel(
    x_ref,      # (ROWS, E)        concat([temb, x]) flattened over batch
    pe_ref,     # (ROWS, E)        positional-encoding table, tiled over batch
    bias_ref,   # (ROWS, ROWS)     0 within a batch, -1e30 across batches (block-diag attention)
    vecs_ref,   # (8, E)           rows: ln1_g, ln1_b, ln2_g, ln2_b, bq, bk, bv, bo
    wqkv_ref,   # (3, H, E, D)     per-head split Q/K/V projection weights
    wo_ref,     # (H, D, E)        per-head rows of the output projection
    w1_ref,     # (E, M)
    b1_ref,     # (1, M)
    w2_ref,     # (M, E)
    out_ref,    # (ROWS, E)
):
    R, E, H, D, M = ROWS, EMBED_DIM, NUM_HEADS, HEAD_DIM, MLP_DIM
    scale = jnp.float32(1.0 / math.sqrt(D))

    # ---- hoisted constant loads & broadcasts (once; reused across unrolled layer/head loops) ----
    vecs = vecs_ref[...]
    ln1_g = jnp.broadcast_to(vecs[0:1, :], (R, E))
    ln1_b = jnp.broadcast_to(vecs[1:2, :], (R, E))
    ln2_g = jnp.broadcast_to(vecs[2:3, :], (R, E))
    ln2_b = jnp.broadcast_to(vecs[3:4, :], (R, E))
    bo    = jnp.broadcast_to(vecs[7:8, :], (R, E))
    bq_h = [jnp.broadcast_to(vecs[4:5, h * D:(h + 1) * D], (R, D)) for h in range(H)]
    bk_h = [jnp.broadcast_to(vecs[5:6, h * D:(h + 1) * D], (R, D)) for h in range(H)]
    bv_h = [jnp.broadcast_to(vecs[6:7, h * D:(h + 1) * D], (R, D)) for h in range(H)]
    b1 = jnp.broadcast_to(b1_ref[...], (R, M))
    w1 = w1_ref[...]
    w2 = w2_ref[...]
    attn_bias = bias_ref[...]

    # Positional encoding (dropout = identity at eval).
    xb = x_ref[...] + pe_ref[...]                                  # (R, E)

    for _ in range(NUM_LAYERS):   # SAME TransformerBlock weights applied num_layers times
        # ---------------- SelfAttentionBlock (prenorm), attn_mask=None ----------------
        xn = _layer_norm(xb, ln1_g, ln1_b)
        attn = bo                                                   # fold out_proj bias into the accumulator
        for h in range(H):
            # Per-head projections with pre-split weight slabs (no activation lane slices).
            q = jnp.dot(xn, wqkv_ref[0, h], preferred_element_type=jnp.float32) + bq_h[h]
            k = jnp.dot(xn, wqkv_ref[1, h], preferred_element_type=jnp.float32) + bk_h[h]
            v = jnp.dot(xn, wqkv_ref[2, h], preferred_element_type=jnp.float32) + bv_h[h]
            # q @ k^T without materialising a transpose (contract the feature dim of both).
            s = jax.lax.dot_general(q, k, (((1,), (1,)), ((), ())),
                                    preferred_element_type=jnp.float32)     # (R, R)
            s = s * scale + attn_bias                                        # block-diagonal over batches
            s = s - jnp.max(s, axis=-1, keepdims=True)
            p = jnp.exp(s)
            inv = pl.reciprocal(jnp.sum(p, axis=-1, keepdims=True), approx=True)   # EUP, not VALU divide
            o = jnp.dot(p, v, preferred_element_type=jnp.float32) * inv             # scale the small (R,D) result
            # concat(heads) @ Wo  ==  sum_h head_h @ Wo[h*D:(h+1)*D, :]
            attn = attn + jnp.dot(o, wo_ref[h], preferred_element_type=jnp.float32)
        xb = xb + attn

        # ---------------- FeedForwardBlock (prenorm) ----------------
        zn = _layer_norm(xb, ln2_g, ln2_b)
        hmid = jnp.maximum(jnp.dot(zn, w1, preferred_element_type=jnp.float32) + b1, 0.0)
        xb = xb + jnp.dot(hmid, w2, preferred_element_type=jnp.float32)      # fc2 has no bias

    # Full aligned store; conditioner-token drop (unaligned row offset) happens in the wrapper.
    out_ref[...] = xb


# ------------------------------------ wrapper ---------------------------------------
def transformer_encoder(x, temb, packed):
    """x: (B, L, E) f32, temb: (B, E) f32 -> (B, L, E) f32."""
    Bsz, Lsz, E = x.shape
    # conditioner = temb.unsqueeze(1); x = cat([conditioner, x], dim=1)  (layout plumbing)
    xcat = jnp.concatenate([temb[:, None, :], x], axis=1)          # (B, L+1, E)
    x_flat = xcat.reshape(Bsz * (Lsz + 1), E)

    vmem = pl.BlockSpec(memory_space=pltpu.MemorySpace.VMEM)
    fn = pl.pallas_call(
        transformer_encoder_kernel,
        out_shape=jax.ShapeDtypeStruct((Bsz * (Lsz + 1), E), jnp.float32),
        in_specs=[vmem] * 9,
        out_specs=vmem,
    )
    out_flat = fn(
        x_flat, packed["pe_flat"], packed["attn_bias"], packed["vecs"],
        packed["wqkv_heads"], packed["wo_heads"],
        packed["w1"], packed["b1"], packed["w2"],
    )
    out = out_flat.reshape(Bsz, Lsz + 1, E)
    return out[:, 1:]                                              # drop the conditioner/time token


# ----------------------------- reference (plain JAX) --------------------------------
def transformer_encoder_ref(x, temb, p):
    B_, L_, E_ = x.shape
    xc = jnp.concatenate([temb[:, None, :], x], axis=1) + p["pe"][None, :, :]
    for _ in range(NUM_LAYERS):
        xn = _layer_norm(xc, p["ln1_g"], p["ln1_b"])
        q = xn @ p["wq"] + p["bq"]
        k = xn @ p["wk"] + p["bk"]
        v = xn @ p["wv"] + p["bv"]
        qh = q.reshape(B_, L_ + 1, NUM_HEADS, HEAD_DIM)
        kh = k.reshape(B_, L_ + 1, NUM_HEADS, HEAD_DIM)
        vh = v.reshape(B_, L_ + 1, NUM_HEADS, HEAD_DIM)
        s = jnp.einsum("bqhd,bkhd->bhqk", qh, kh) / math.sqrt(HEAD_DIM)
        pattn = jax.nn.softmax(s, axis=-1)
        o = jnp.einsum("bhqk,bkhd->bqhd", pattn, vh).reshape(B_, L_ + 1, E_)
        xc = xc + (o @ p["wo"] + p["bo"])
        zn = _layer_norm(xc, p["ln2_g"], p["ln2_b"])
        xc = xc + jax.nn.relu(zn @ p["w1"] + p["b1"]) @ p["w2"]
    return xc[:, 1:, :]


# ----------------------------------- params ----------------------------------------
def make_positional_encoding(max_len, d_model):
    position = jnp.arange(max_len, dtype=jnp.float32)[:, None]
    div_term = jnp.exp(jnp.arange(0, d_model, 2, dtype=jnp.float32) * (-math.log(10000.0) / d_model))
    pe = jnp.zeros((max_len, d_model), jnp.float32)
    pe = pe.at[:, 0::2].set(jnp.sin(position * div_term))
    pe = pe.at[:, 1::2].set(jnp.cos(position * div_term))
    return pe


def _init_linear(key, fan_in, fan_out, bias=True):
    k1, k2 = jax.random.split(key)
    bound = 1.0 / math.sqrt(fan_in)
    w = jax.random.uniform(k1, (fan_in, fan_out), jnp.float32, -bound, bound)
    if bias:
        b = jax.random.uniform(k2, (1, fan_out), jnp.float32, -bound, bound)
        return w, b
    return w, None


def make_params(key):
    E, M = EMBED_DIM, MLP_DIM
    ks = jax.random.split(key, 6)
    p = {}
    p["pe"] = make_positional_encoding(L1, E)
    p["ln1_g"] = jnp.ones((1, E), jnp.float32)
    p["ln1_b"] = jnp.zeros((1, E), jnp.float32)
    p["wq"], p["bq"] = _init_linear(ks[0], E, E)
    p["wk"], p["bk"] = _init_linear(ks[1], E, E)
    p["wv"], p["bv"] = _init_linear(ks[2], E, E)
    p["wo"], p["bo"] = _init_linear(ks[3], E, E)
    p["ln2_g"] = jnp.ones((1, E), jnp.float32)
    p["ln2_b"] = jnp.zeros((1, E), jnp.float32)
    p["w1"], p["b1"] = _init_linear(ks[4], E, M)
    p["w2"], _ = _init_linear(ks[5], M, E, bias=False)
    return p


def pack_params(p):
    """One-time constant repacking into the kernel's operand layout."""
    E, H, D = EMBED_DIM, NUM_HEADS, HEAD_DIM

    def split_head_cols(w):        # (E, E) -> (H, E, D): head h = w[:, h*D:(h+1)*D]
        return jnp.transpose(w.reshape(E, H, D), (1, 0, 2))

    packed = {}
    packed["pe_flat"] = jnp.tile(p["pe"], (BATCH, 1))                                  # (ROWS, E)
    bid = jnp.repeat(jnp.arange(BATCH, dtype=jnp.int32), L1)
    packed["attn_bias"] = jnp.where(bid[:, None] == bid[None, :], 0.0, -1e30).astype(jnp.float32)
    packed["vecs"] = jnp.concatenate(
        [p["ln1_g"], p["ln1_b"], p["ln2_g"], p["ln2_b"],
         p["bq"], p["bk"], p["bv"], p["bo"]], axis=0)                                  # (8, E)
    packed["wqkv_heads"] = jnp.stack(
        [split_head_cols(p["wq"]), split_head_cols(p["wk"]), split_head_cols(p["wv"])], axis=0)  # (3,H,E,D)
    packed["wo_heads"] = p["wo"].reshape(H, D, E)                                      # (H, D, E)
    packed["w1"] = p["w1"]
    packed["b1"] = p["b1"]
    packed["w2"] = p["w2"]
    return packed


if __name__ == "__main__":
    key = jax.random.PRNGKey(0)
    kx, kt, kp = jax.random.split(key, 3)

    x = jax.random.normal(kx, (BATCH, SEQ_LEN, EMBED_DIM), jnp.float32)
    temb = jax.random.normal(kt, (BATCH, EMBED_DIM), jnp.float32)
    params = make_params(kp)
    packed = pack_params(params)

    out = transformer_encoder(x, temb, packed)
    out = jax.block_until_ready(out)

    ref = transformer_encoder_ref(x, temb, params)
    assert out.shape == (BATCH, SEQ_LEN, EMBED_DIM), out.shape
    assert jnp.allclose(out, ref, atol=2e-3, rtol=2e-3), float(jnp.max(jnp.abs(out - ref)))

    print("KERNEL_OK")
</pallas_src>

<mosaic_0001>
module attributes {stable_mosaic.version = 11 : i64} {
  func.func @transformer_encoder_kernel(%arg0: memref<18x32xf32, #tpu.memory_space<vmem>>, %arg1: memref<18x32xf32, #tpu.memory_space<vmem>>, %arg2: memref<18x18xf32, #tpu.memory_space<vmem>>, %arg3: memref<8x32xf32, #tpu.memory_space<vmem>>, %arg4: memref<3x4x32x8xf32, #tpu.memory_space<vmem>>, %arg5: memref<4x8x32xf32, #tpu.memory_space<vmem>>, %arg6: memref<32x64xf32, #tpu.memory_space<vmem>>, %arg7: memref<1x64xf32, #tpu.memory_space<vmem>>, %arg8: memref<64x32xf32, #tpu.memory_space<vmem>>, %arg9: memref<18x32xf32, #tpu.memory_space<vmem>>) attributes {dimension_semantics = [], scalar_prefetch = 0 : i64, scratch_operands = 0 : i64, tpu.core_type = #tpu.core_type<tc>} {
    %c0 = arith.constant 0 : index
    %c0_0 = arith.constant 0 : index
    %0 = vector.load %arg3[%c0, %c0_0] : memref<8x32xf32, #tpu.memory_space<vmem>>, vector<8x32xf32>
    %1 = vector.extract_strided_slice %0 {offsets = [0, 0], sizes = [1, 32], strides = [1, 1]} : vector<8x32xf32> to vector<1x32xf32>
    %2 = vector.shape_cast %1 : vector<1x32xf32> to vector<1x32xf32>
    %3 = vector.broadcast %2 : vector<1x32xf32> to vector<18x32xf32>
    %4 = vector.extract_strided_slice %0 {offsets = [1, 0], sizes = [1, 32], strides = [1, 1]} : vector<8x32xf32> to vector<1x32xf32>
    %5 = vector.shape_cast %4 : vector<1x32xf32> to vector<1x32xf32>
    %6 = vector.broadcast %5 : vector<1x32xf32> to vector<18x32xf32>
    %7 = vector.extract_strided_slice %0 {offsets = [2, 0], sizes = [1, 32], strides = [1, 1]} : vector<8x32xf32> to vector<1x32xf32>
    %8 = vector.shape_cast %7 : vector<1x32xf32> to vector<1x32xf32>
    %9 = vector.broadcast %8 : vector<1x32xf32> to vector<18x32xf32>
    %10 = vector.extract_strided_slice %0 {offsets = [3, 0], sizes = [1, 32], strides = [1, 1]} : vector<8x32xf32> to vector<1x32xf32>
    %11 = vector.shape_cast %10 : vector<1x32xf32> to vector<1x32xf32>
    %12 = vector.broadcast %11 : vector<1x32xf32> to vector<18x32xf32>
    %13 = vector.extract_strided_slice %0 {offsets = [7, 0], sizes = [1, 32], strides = [1, 1]} : vector<8x32xf32> to vector<1x32xf32>
    %14 = vector.shape_cast %13 : vector<1x32xf32> to vector<1x32xf32>
    %15 = vector.broadcast %14 : vector<1x32xf32> to vector<18x32xf32>
    %16 = vector.extract_strided_slice %0 {offsets = [4, 0], sizes = [1, 8], strides = [1, 1]} : vector<8x32xf32> to vector<1x8xf32>
    %17 = vector.shape_cast %16 : vector<1x8xf32> to vector<1x8xf32>
    %18 = vector.broadcast %17 : vector<1x8xf32> to vector<18x8xf32>
    %19 = vector.extract_strided_slice %0 {offsets = [4, 8], sizes = [1, 8], strides = [1, 1]} : vector<8x32xf32> to vector<1x8xf32>
    %20 = vector.shape_cast %19 : vector<1x8xf32> to vector<1x8xf32>
    %21 = vector.broadcast %20 : vector<1x8xf32> to vector<18x8xf32>
    %22 = vector.extract_strided_slice %0 {offsets = [4, 16], sizes = [1, 8], strides = [1, 1]} : vector<8x32xf32> to vector<1x8xf32>
    %23 = vector.shape_cast %22 : vector<1x8xf32> to vector<1x8xf32>
    %24 = vector.broadcast %23 : vector<1x8xf32> to vector<18x8xf32>
    %25 = vector.extract_strided_slice %0 {offsets = [4, 24], sizes = [1, 8], strides = [1, 1]} : vector<8x32xf32> to vector<1x8xf32>
    %26 = vector.shape_cast %25 : vector<1x8xf32> to vector<1x8xf32>
    %27 = vector.broadcast %26 : vector<1x8xf32> to vector<18x8xf32>
    %28 = vector.extract_strided_slice %0 {offsets = [5, 0], sizes = [1, 8], strides = [1, 1]} : vector<8x32xf32> to vector<1x8xf32>
    %29 = vector.shape_cast %28 : vector<1x8xf32> to vector<1x8xf32>
    %30 = vector.broadcast %29 : vector<1x8xf32> to vector<18x8xf32>
    %31 = vector.extract_strided_slice %0 {offsets = [5, 8], sizes = [1, 8], strides = [1, 1]} : vector<8x32xf32> to vector<1x8xf32>
    %32 = vector.shape_cast %31 : vector<1x8xf32> to vector<1x8xf32>
    %33 = vector.broadcast %32 : vector<1x8xf32> to vector<18x8xf32>
    %34 = vector.extract_strided_slice %0 {offsets = [5, 16], sizes = [1, 8], strides = [1, 1]} : vector<8x32xf32> to vector<1x8xf32>
    %35 = vector.shape_cast %34 : vector<1x8xf32> to vector<1x8xf32>
    %36 = vector.broadcast %35 : vector<1x8xf32> to vector<18x8xf32>
    %37 = vector.extract_strided_slice %0 {offsets = [5, 24], sizes = [1, 8], strides = [1, 1]} : vector<8x32xf32> to vector<1x8xf32>
    %38 = vector.shape_cast %37 : vector<1x8xf32> to vector<1x8xf32>
    %39 = vector.broadcast %38 : vector<1x8xf32> to vector<18x8xf32>
    %40 = vector.extract_strided_slice %0 {offsets = [6, 0], sizes = [1, 8], strides = [1, 1]} : vector<8x32xf32> to vector<1x8xf32>
    %41 = vector.shape_cast %40 : vector<1x8xf32> to vector<1x8xf32>
    %42 = vector.broadcast %41 : vector<1x8xf32> to vector<18x8xf32>
    %43 = vector.extract_strided_slice %0 {offsets = [6, 8], sizes = [1, 8], strides = [1, 1]} : vector<8x32xf32> to vector<1x8xf32>
    %44 = vector.shape_cast %43 : vector<1x8xf32> to vector<1x8xf32>
    %45 = vector.broadcast %44 : vector<1x8xf32> to vector<18x8xf32>
    %46 = vector.extract_strided_slice %0 {offsets = [6, 16], sizes = [1, 8], strides = [1, 1]} : vector<8x32xf32> to vector<1x8xf32>
    %47 = vector.shape_cast %46 : vector<1x8xf32> to vector<1x8xf32>
    %48 = vector.broadcast %47 : vector<1x8xf32> to vector<18x8xf32>
    %49 = vector.extract_strided_slice %0 {offsets = [6, 24], sizes = [1, 8], strides = [1, 1]} : vector<8x32xf32> to vector<1x8xf32>
    %50 = vector.shape_cast %49 : vector<1x8xf32> to vector<1x8xf32>
    %51 = vector.broadcast %50 : vector<1x8xf32> to vector<18x8xf32>
    %c0_1 = arith.constant 0 : index
    %c0_2 = arith.constant 0 : index
    %52 = vector.load %arg7[%c0_1, %c0_2] : memref<1x64xf32, #tpu.memory_space<vmem>>, vector<1x64xf32>
    %53 = vector.shape_cast %52 : vector<1x64xf32> to vector<1x64xf32>
    %54 = vector.broadcast %53 : vector<1x64xf32> to vector<18x64xf32>
    %c0_3 = arith.constant 0 : index
    %c0_4 = arith.constant 0 : index
    %55 = vector.load %arg6[%c0_3, %c0_4] : memref<32x64xf32, #tpu.memory_space<vmem>>, vector<32x64xf32>
    %c0_5 = arith.constant 0 : index
    %c0_6 = arith.constant 0 : index
    %56 = vector.load %arg8[%c0_5, %c0_6] : memref<64x32xf32, #tpu.memory_space<vmem>>, vector<64x32xf32>
    %c0_7 = arith.constant 0 : index
    %c0_8 = arith.constant 0 : index
    %57 = vector.load %arg2[%c0_7, %c0_8] : memref<18x18xf32, #tpu.memory_space<vmem>>, vector<18x18xf32>
    %c0_9 = arith.constant 0 : index
    %c0_10 = arith.constant 0 : index
    %58 = vector.load %arg0[%c0_9, %c0_10] : memref<18x32xf32, #tpu.memory_space<vmem>>, vector<18x32xf32>
    %c0_11 = arith.constant 0 : index
    %c0_12 = arith.constant 0 : index
    %59 = vector.load %arg1[%c0_11, %c0_12] : memref<18x32xf32, #tpu.memory_space<vmem>>, vector<18x32xf32>
    %60 = arith.addf %58, %59 : vector<18x32xf32>
    %cst = arith.constant dense<0.000000e+00> : vector<18xf32>
    %61 = vector.multi_reduction <add>, %60, %cst [1] : vector<18x32xf32> to vector<18xf32>
    %62 = vector.shape_cast %61 : vector<18xf32> to vector<18x1xf32>
    %cst_13 = arith.constant 3.200000e+01 : f32
    %63 = vector.broadcast %cst_13 : f32 to vector<18x1xf32>
    %64 = arith.divf %62, %63 : vector<18x1xf32>
    %65 = vector.broadcast %64 : vector<18x1xf32> to vector<18x32xf32>
    %66 = arith.subf %60, %65 : vector<18x32xf32>
    %67 = arith.mulf %66, %66 : vector<18x32xf32>
    %cst_14 = arith.constant dense<0.000000e+00> : vector<18xf32>
    %68 = vector.multi_reduction <add>, %67, %cst_14 [1] : vector<18x32xf32> to vector<18xf32>
    %69 = vector.shape_cast %68 : vector<18xf32> to vector<18x1xf32>
    %cst_15 = arith.constant 3.200000e+01 : f32
    %70 = vector.broadcast %cst_15 : f32 to vector<18x1xf32>
    %71 = arith.divf %69, %70 : vector<18x1xf32>
    %cst_16 = arith.constant 9.99999974E-6 : f32
    %72 = vector.broadcast %cst_16 : f32 to vector<18x1xf32>
    %73 = arith.addf %71, %72 : vector<18x1xf32>
    %74 = math.rsqrt %73 : vector<18x1xf32>
    %75 = vector.broadcast %64 : vector<18x1xf32> to vector<18x32xf32>
    %76 = arith.subf %60, %75 : vector<18x32xf32>
    %77 = vector.broadcast %74 : vector<18x1xf32> to vector<18x32xf32>
    %78 = arith.mulf %76, %77 : vector<18x32xf32>
    %79 = arith.mulf %78, %3 : vector<18x32xf32>
    %80 = arith.addf %79, %6 : vector<18x32xf32>
    %c0_17 = arith.constant 0 : index
    %c0_18 = arith.constant 0 : index
    %c0_19 = arith.constant 0 : index
    %c0_20 = arith.constant 0 : index
    %81 = vector.load %arg4[%c0_17, %c0_18, %c0_19, %c0_20] : memref<3x4x32x8xf32, #tpu.memory_space<vmem>>, vector<1x1x32x8xf32>
    %82 = vector.shape_cast %81 : vector<1x1x32x8xf32> to vector<32x8xf32>
    %cst_21 = arith.constant dense<0.000000e+00> : vector<18x8xf32>
    %83 = tpu.matmul %80, %82, %cst_21 {dimension_numbers = #tpu.dot_dimension_numbers<[1], [0], [0], [1], [0, 0, 1, 1], [], []>} : vector<18x32xf32>, vector<32x8xf32>, vector<18x8xf32> -> vector<18x8xf32>
    %84 = arith.addf %83, %18 : vector<18x8xf32>
    %c1 = arith.constant 1 : index
    %c0_22 = arith.constant 0 : index
    %c0_23 = arith.constant 0 : index
    %c0_24 = arith.constant 0 : index
    %85 = vector.load %arg4[%c1, %c0_22, %c0_23, %c0_24] : memref<3x4x32x8xf32, #tpu.memory_space<vmem>>, vector<1x1x32x8xf32>
    %86 = vector.shape_cast %85 : vector<1x1x32x8xf32> to vector<32x8xf32>
    %cst_25 = arith.constant dense<0.000000e+00> : vector<18x8xf32>
    %87 = tpu.matmul %80, %86, %cst_25 {dimension_numbers = #tpu.dot_dimension_numbers<[1], [0], [0], [1], [0, 0, 1, 1], [], []>} : vector<18x32xf32>, vector<32x8xf32>, vector<18x8xf32> -> vector<18x8xf32>
    %88 = arith.addf %87, %30 : vector<18x8xf32>
    %c2 = arith.constant 2 : index
    %c0_26 = arith.constant 0 : index
    %c0_27 = arith.constant 0 : index
    %c0_28 = arith.constant 0 : index
    %89 = vector.load %arg4[%c2, %c0_26, %c0_27, %c0_28] : memref<3x4x32x8xf32, #tpu.memory_space<vmem>>, vector<1x1x32x8xf32>
    %90 = vector.shape_cast %89 : vector<1x1x32x8xf32> to vector<32x8xf32>
    %cst_29 = arith.constant dense<0.000000e+00> : vector<18x8xf32>
    %91 = tpu.matmul %80, %90, %cst_29 {dimension_numbers = #tpu.dot_dimension_numbers<[1], [0], [0], [1], [0, 0, 1, 1], [], []>} : vector<18x32xf32>, vector<32x8xf32>, vector<18x8xf32> -> vector<18x8xf32>
    %92 = arith.addf %91, %42 : vector<18x8xf32>
    %cst_30 = arith.constant dense<0.000000e+00> : vector<18x18xf32>
    %93 = tpu.matmul %84, %88, %cst_30 {dimension_numbers = #tpu.dot_dimension_numbers<[1], [1], [0], [0], [0, 0, 1, 0], [], []>} : vector<18x8xf32>, vector<18x8xf32>, vector<18x18xf32> -> vector<18x18xf32>
    %cst_31 = arith.constant 0.353553385 : f32
    %94 = vector.broadcast %cst_31 : f32 to vector<18x18xf32>
    %95 = arith.mulf %93, %94 : vector<18x18xf32>
    %96 = arith.addf %95, %57 : vector<18x18xf32>
    %cst_32 = arith.constant dense<0xFF800000> : vector<18xf32>
    %97 = vector.multi_reduction <maximumf>, %96, %cst_32 [1] : vector<18x18xf32> to vector<18xf32>
    %98 = vector.shape_cast %97 : vector<18xf32> to vector<18x1xf32>
    %99 = vector.broadcast %98 : vector<18x1xf32> to vector<18x18xf32>
    %100 = arith.subf %96, %99 : vector<18x18xf32>
    %101 = math.exp %100 : vector<18x18xf32>
    %cst_33 = arith.constant dense<0.000000e+00> : vector<18xf32>
    %102 = vector.multi_reduction <add>, %101, %cst_33 [1] : vector<18x18xf32> to vector<18xf32>
    %103 = vector.shape_cast %102 : vector<18xf32> to vector<18x1xf32>
    %104 = tpu.reciprocal %103 {approx = true} : vector<18x1xf32> -> vector<18x1xf32>
    %cst_34 = arith.constant dense<0.000000e+00> : vector<18x8xf32>
    %105 = tpu.matmul %101, %92, %cst_34 {dimension_numbers = #tpu.dot_dimension_numbers<[1], [0], [0], [1], [0, 0, 1, 1], [], []>} : vector<18x18xf32>, vector<18x8xf32>, vector<18x8xf32> -> vector<18x8xf32>
    %106 = vector.broadcast %104 : vector<18x1xf32> to vector<18x8xf32>
    %107 = arith.mulf %105, %106 : vector<18x8xf32>
    %c0_35 = arith.constant 0 : index
    %c0_36 = arith.constant 0 : index
    %c0_37 = arith.constant 0 : index
    %108 = vector.load %arg5[%c0_35, %c0_36, %c0_37] : memref<4x8x32xf32, #tpu.memory_space<vmem>>, vector<1x8x32xf32>
    %109 = vector.shape_cast %108 : vector<1x8x32xf32> to vector<8x32xf32>
    %cst_38 = arith.constant dense<0.000000e+00> : vector<18x32xf32>
    %110 = tpu.matmul %107, %109, %cst_38 {dimension_numbers = #tpu.dot_dimension_numbers<[1], [0], [0], [1], [0, 0, 1, 1], [], []>} : vector<18x8xf32>, vector<8x32xf32>, vector<18x32xf32> -> vector<18x32xf32>
    %111 = arith.addf %15, %110 : vector<18x32xf32>
    %c0_39 = arith.constant 0 : index
    %c1_40 = arith.constant 1 : index
    %c0_41 = arith.constant 0 : index
    %c0_42 = arith.constant 0 : index
    %112 = vector.load %arg4[%c0_39, %c1_40, %c0_41, %c0_42] : memref<3x4x32x8xf32, #tpu.memory_space<vmem>>, vector<1x1x32x8xf32>
    %113 = vector.shape_cast %112 : vector<1x1x32x8xf32> to vector<32x8xf32>
    %cst_43 = arith.constant dense<0.000000e+00> : vector<18x8xf32>
    %114 = tpu.matmul %80, %113, %cst_43 {dimension_numbers = #tpu.dot_dimension_numbers<[1], [0], [0], [1], [0, 0, 1, 1], [], []>} : vector<18x32xf32>, vector<32x8xf32>, vector<18x8xf32> -> vector<18x8xf32>
    %115 = arith.addf %114, %21 : vector<18x8xf32>
    %c1_44 = arith.constant 1 : index
    %c1_45 = arith.constant 1 : index
    %c0_46 = arith.constant 0 : index
    %c0_47 = arith.constant 0 : index
    %116 = vector.load %arg4[%c1_44, %c1_45, %c0_46, %c0_47] : memref<3x4x32x8xf32, #tpu.memory_space<vmem>>, vector<1x1x32x8xf32>
    %117 = vector.shape_cast %116 : vector<1x1x32x8xf32> to vector<32x8xf32>
    %cst_48 = arith.constant dense<0.000000e+00> : vector<18x8xf32>
    %118 = tpu.matmul %80, %117, %cst_48 {dimension_numbers = #tpu.dot_dimension_numbers<[1], [0], [0], [1], [0, 0, 1, 1], [], []>} : vector<18x32xf32>, vector<32x8xf32>, vector<18x8xf32> -> vector<18x8xf32>
    %119 = arith.addf %118, %33 : vector<18x8xf32>
    %c2_49 = arith.constant 2 : index
    %c1_50 = arith.constant 1 : index
    %c0_51 = arith.constant 0 : index
    %c0_52 = arith.constant 0 : index
    %120 = vector.load %arg4[%c2_49, %c1_50, %c0_51, %c0_52] : memref<3x4x32x8xf32, #tpu.memory_space<vmem>>, vector<1x1x32x8xf32>
    %121 = vector.shape_cast %120 : vector<1x1x32x8xf32> to vector<32x8xf32>
    %cst_53 = arith.constant dense<0.000000e+00> : vector<18x8xf32>
    %122 = tpu.matmul %80, %121, %cst_53 {dimension_numbers = #tpu.dot_dimension_numbers<[1], [0], [0], [1], [0, 0, 1, 1], [], []>} : vector<18x32xf32>, vector<32x8xf32>, vector<18x8xf32> -> vector<18x8xf32>
    %123 = arith.addf %122, %45 : vector<18x8xf32>
    %cst_54 = arith.constant dense<0.000000e+00> : vector<18x18xf32>
    %124 = tpu.matmul %115, %119, %cst_54 {dimension_numbers = #tpu.dot_dimension_numbers<[1], [1], [0], [0], [0, 0, 1, 0], [], []>} : vector<18x8xf32>, vector<18x8xf32>, vector<18x18xf32> -> vector<18x18xf32>
    %cst_55 = arith.constant 0.353553385 : f32
    %125 = vector.broadcast %cst_55 : f32 to vector<18x18xf32>
    %126 = arith.mulf %124, %125 : vector<18x18xf32>
    %127 = arith.addf %126, %57 : vector<18x18xf32>
    %cst_56 = arith.constant dense<0xFF800000> : vector<18xf32>
    %128 = vector.multi_reduction <maximumf>, %127, %cst_56 [1] : vector<18x18xf32> to vector<18xf32>
    %129 = vector.shape_cast %128 : vector<18xf32> to vector<18x1xf32>
    %130 = vector.broadcast %129 : vector<18x1xf32> to vector<18x18xf32>
    %131 = arith.subf %127, %130 : vector<18x18xf32>
    %132 = math.exp %131 : vector<18x18xf32>
    %cst_57 = arith.constant dense<0.000000e+00> : vector<18xf32>
    %133 = vector.multi_reduction <add>, %132, %cst_57 [1] : vector<18x18xf32> to vector<18xf32>
    %134 = vector.shape_cast %133 : vector<18xf32> to vector<18x1xf32>
    %135 = tpu.reciprocal %134 {approx = true} : vector<18x1xf32> -> vector<18x1xf32>
    %cst_58 = arith.constant dense<0.000000e+00> : vector<18x8xf32>
    %136 = tpu.matmul %132, %123, %cst_58 {dimension_numbers = #tpu.dot_dimension_numbers<[1], [0], [0], [1], [0, 0, 1, 1], [], []>} : vector<18x18xf32>, vector<18x8xf32>, vector<18x8xf32> -> vector<18x8xf32>
    %137 = vector.broadcast %135 : vector<18x1xf32> to vector<18x8xf32>
    %138 = arith.mulf %136, %137 : vector<18x8xf32>
    %c1_59 = arith.constant 1 : index
    %c0_60 = arith.constant 0 : index
    %c0_61 = arith.constant 0 : index
    %139 = vector.load %arg5[%c1_59, %c0_60, %c0_61] : memref<4x8x32xf32, #tpu.memory_space<vmem>>, vector<1x8x32xf32>
    %140 = vector.shape_cast %139 : vector<1x8x32xf32> to vector<8x32xf32>
    %cst_62 = arith.constant dense<0.000000e+00> : vector<18x32xf32>
    %141 = tpu.matmul %138, %140, %cst_62 {dimension_numbers = #tpu.dot_dimension_numbers<[1], [0], [0], [1], [0, 0, 1, 1], [], []>} : vector<18x8xf32>, vector<8x32xf32>, vector<18x32xf32> -> vector<18x32xf32>
    %142 = arith.addf %111, %141 : vector<18x32xf32>
    %c0_63 = arith.constant 0 : index
    %c2_64 = arith.constant 2 : index
    %c0_65 = arith.constant 0 : index
    %c0_66 = arith.constant 0 : index
    %143 = vector.load %arg4[%c0_63, %c2_64, %c0_65, %c0_66] : memref<3x4x32x8xf32, #tpu.memory_space<vmem>>, vector<1x1x32x8xf32>
    %144 = vector.shape_cast %143 : vector<1x1x32x8xf32> to vector<32x8xf32>
    %cst_67 = arith.constant dense<0.000000e+00> : vector<18x8xf32>
    %145 = tpu.matmul %80, %144, %cst_67 {dimension_numbers = #tpu.dot_dimension_numbers<[1], [0], [0], [1], [0, 0, 1, 1], [], []>} : vector<18x32xf32>, vector<32x8xf32>, vector<18x8xf32> -> vector<18x8xf32>
    %146 = arith.addf %145, %24 : vector<18x8xf32>
    %c1_68 = arith.constant 1 : index
    %c2_69 = arith.constant 2 : index
    %c0_70 = arith.constant 0 : index
    %c0_71 = arith.constant 0 : index
    %147 = vector.load %arg4[%c1_68, %c2_69, %c0_70, %c0_71] : memref<3x4x32x8xf32, #tpu.memory_space<vmem>>, vector<1x1x32x8xf32>
    %148 = vector.shape_cast %147 : vector<1x1x32x8xf32> to vector<32x8xf32>
    %cst_72 = arith.constant dense<0.000000e+00> : vector<18x8xf32>
    %149 = tpu.matmul %80, %148, %cst_72 {dimension_numbers = #tpu.dot_dimension_numbers<[1], [0], [0], [1], [0, 0, 1, 1], [], []>} : vector<18x32xf32>, vector<32x8xf32>, vector<18x8xf32> -> vector<18x8xf32>
    %150 = arith.addf %149, %36 : vector<18x8xf32>
    %c2_73 = arith.constant 2 : index
    %c2_74 = arith.constant 2 : index
    %c0_75 = arith.constant 0 : index
    %c0_76 = arith.constant 0 : index
    %151 = vector.load %arg4[%c2_73, %c2_74, %c0_75, %c0_76] : memref<3x4x32x8xf32, #tpu.memory_space<vmem>>, vector<1x1x32x8xf32>
    %152 = vector.shape_cast %151 : vector<1x1x32x8xf32> to vector<32x8xf32>
    %cst_77 = arith.constant dense<0.000000e+00> : vector<18x8xf32>
    %153 = tpu.matmul %80, %152, %cst_77 {dimension_numbers = #tpu.dot_dimension_numbers<[1], [0], [0], [1], [0, 0, 1, 1], [], []>} : vector<18x32xf32>, vector<32x8xf32>, vector<18x8xf32> -> vector<18x8xf32>
    %154 = arith.addf %153, %48 : vector<18x8xf32>
    %cst_78 = arith.constant dense<0.000000e+00> : vector<18x18xf32>
    %155 = tpu.matmul %146, %150, %cst_78 {dimension_numbers = #tpu.dot_dimension_numbers<[1], [1], [0], [0], [0, 0, 1, 0], [], []>} : vector<18x8xf32>, vector<18x8xf32>, vector<18x18xf32> -> vector<18x18xf32>
    %cst_79 = arith.constant 0.353553385 : f32
    %156 = vector.broadcast %cst_79 : f32 to vector<18x18xf32>
    %157 = arith.mulf %155, %156 : vector<18x18xf32>
    %158 = arith.addf %157, %57 : vector<18x18xf32>
    %cst_80 = arith.constant dense<0xFF800000> : vector<18xf32>
    %159 = vector.multi_reduction <maximumf>, %158, %cst_80 [1] : vector<18x18xf32> to vector<18xf32>
    %160 = vector.shape_cast %159 : vector<18xf32> to vector<18x1xf32>
    %161 = vector.broadcast %160 : vector<18x1xf32> to vector<18x18xf32>
    %162 = arith.subf %158, %161 : vector<18x18xf32>
    %163 = math.exp %162 : vector<18x18xf32>
    %cst_81 = arith.constant dense<0.000000e+00> : vector<18xf32>
    %164 = vector.multi_reduction <add>, %163, %cst_81 [1] : vector<18x18xf32> to vector<18xf32>
    %165 = vector.shape_cast %164 : vector<18xf32> to vector<18x1xf32>
    %166 = tpu.reciprocal %165 {approx = true} : vector<18x1xf32> -> vector<18x1xf32>
    %cst_82 = arith.constant dense<0.000000e+00> : vector<18x8xf32>
    %167 = tpu.matmul %163, %154, %cst_82 {dimension_numbers = #tpu.dot_dimension_numbers<[1], [0], [0], [1], [0, 0, 1, 1], [], []>} : vector<18x18xf32>, vector<18x8xf32>, vector<18x8xf32> -> vector<18x8xf32>
    %168 = vector.broadcast %166 : vector<18x1xf32> to vector<18x8xf32>
    %169 = arith.mulf %167, %168 : vector<18x8xf32>
    %c2_83 = arith.constant 2 : index
    %c0_84 = arith.constant 0 : index
    %c0_85 = arith.constant 0 : index
    %170 = vector.load %arg5[%c2_83, %c0_84, %c0_85] : memref<4x8x32xf32, #tpu.memory_space<vmem>>, vector<1x8x32xf32>
    %171 = vector.shape_cast %170 : vector<1x8x32xf32> to vector<8x32xf32>
    %cst_86 = arith.constant dense<0.000000e+00> : vector<18x32xf32>
    %172 = tpu.matmul %169, %171, %cst_86 {dimension_numbers = #tpu.dot_dimension_numbers<[1], [0], [0], [1], [0, 0, 1, 1], [], []>} : vector<18x8xf32>, vector<8x32xf32>, vector<18x32xf32> -> vector<18x32xf32>
    %173 = arith.addf %142, %172 : vector<18x32xf32>
    %c0_87 = arith.constant 0 : index
    %c3 = arith.constant 3 : index
    %c0_88 = arith.constant 0 : index
    %c0_89 = arith.constant 0 : index
    %174 = vector.load %arg4[%c0_87, %c3, %c0_88, %c0_89] : memref<3x4x32x8xf32, #tpu.memory_space<vmem>>, vector<1x1x32x8xf32>
    %175 = vector.shape_cast %174 : vector<1x1x32x8xf32> to vector<32x8xf32>
    %cst_90 = arith.constant dense<0.000000e+00> : vector<18x8xf32>
    %176 = tpu.matmul %80, %175, %cst_90 {dimension_numbers = #tpu.dot_dimension_numbers<[1], [0], [0], [1], [0, 0, 1, 1], [], []>} : vector<18x32xf32>, vector<32x8xf32>, vector<18x8xf32> -> vector<18x8xf32>
    %177 = arith.addf %176, %27 : vector<18x8xf32>
    %c1_91 = arith.constant 1 : index
    %c3_92 = arith.constant 3 : index
    %c0_93 = arith.constant 0 : index
    %c0_94 = arith.constant 0 : index
    %178 = vector.load %arg4[%c1_91, %c3_92, %c0_93, %c0_94] : memref<3x4x32x8xf32, #tpu.memory_space<vmem>>, vector<1x1x32x8xf32>
    %179 = vector.shape_cast %178 : vector<1x1x32x8xf32> to vector<32x8xf32>
    %cst_95 = arith.constant dense<0.000000e+00> : vector<18x8xf32>
    %180 = tpu.matmul %80, %179, %cst_95 {dimension_numbers = #tpu.dot_dimension_numbers<[1], [0], [0], [1], [0, 0, 1, 1], [], []>} : vector<18x32xf32>, vector<32x8xf32>, vector<18x8xf32> -> vector<18x8xf32>
    %181 = arith.addf %180, %39 : vector<18x8xf32>
    %c2_96 = arith.constant 2 : index
    %c3_97 = arith.constant 3 : index
    %c0_98 = arith.constant 0 : index
    %c0_99 = arith.constant 0 : index
    %182 = vector.load %arg4[%c2_96, %c3_97, %c0_98, %c0_99] : memref<3x4x32x8xf32, #tpu.memory_space<vmem>>, vector<1x1x32x8xf32>
    %183 = vector.shape_cast %182 : vector<1x1x32x8xf32> to vector<32x8xf32>
    %cst_100 = arith.constant dense<0.000000e+00> : vector<18x8xf32>
    %184 = tpu.matmul %80, %183, %cst_100 {dimension_numbers = #tpu.dot_dimension_numbers<[1], [0], [0], [1], [0, 0, 1, 1], [], []>} : vector<18x32xf32>, vector<32x8xf32>, vector<18x8xf32> -> vector<18x8xf32>
    %185 = arith.addf %184, %51 : vector<18x8xf32>
    %cst_101 = arith.constant dense<0.000000e+00> : vector<18x18xf32>
    %186 = tpu.matmul %177, %181, %cst_101 {dimension_numbers = #tpu.dot_dimension_numbers<[1], [1], [0], [0], [0, 0, 1, 0], [], []>} : vector<18x8xf32>, vector<18x8xf32>, vector<18x18xf32> -> vector<18x18xf32>
    %cst_102 = arith.constant 0.353553385 : f32
    %187 = vector.broadcast %cst_102 : f32 to vector<18x18xf32>
    %188 = arith.mulf %186, %187 : vector<18x18xf32>
    %189 = arith.addf %188, %57 : vector<18x18xf32>
    %cst_103 = arith.constant dense<0xFF800000> : vector<18xf32>
    %190 = vector.multi_reduction <maximumf>, %189, %cst_103 [1] : vector<18x18xf32> to vector<18xf32>
    %191 = vector.shape_cast %190 : vector<18xf32> to vector<18x1xf32>
    %192 = vector.broadcast %191 : vector<18x1xf32> to vector<18x18xf32>
    %193 = arith.subf %189, %192 : vector<18x18xf32>
    %194 = math.exp %193 : vector<18x18xf32>
    %cst_104 = arith.constant dense<0.000000e+00> : vector<18xf32>
    %195 = vector.multi_reduction <add>, %194, %cst_104 [1] : vector<18x18xf32> to vector<18xf32>
    %196 = vector.shape_cast %195 : vector<18xf32> to vector<18x1xf32>
    %197 = tpu.reciprocal %196 {approx = true} : vector<18x1xf32> -> vector<18x1xf32>
    %cst_105 = arith.constant dense<0.000000e+00> : vector<18x8xf32>
    %198 = tpu.matmul %194, %185, %cst_105 {dimension_numbers = #tpu.dot_dimension_numbers<[1], [0], [0], [1], [0, 0, 1, 1], [], []>} : vector<18x18xf32>, vector<18x8xf32>, vector<18x8xf32> -> vector<18x8xf32>
    %199 = vector.broadcast %197 : vector<18x1xf32> to vector<18x8xf32>
    %200 = arith.mulf %198, %199 : vector<18x8xf32>
    %c3_106 = arith.constant 3 : index
    %c0_107 = arith.constant 0 : index
    %c0_108 = arith.constant 0 : index
    %201 = vector.load %arg5[%c3_106, %c0_107, %c0_108] : memref<4x8x32xf32, #tpu.memory_space<vmem>>, vector<1x8x32xf32>
    %202 = vector.shape_cast %201 : vector<1x8x32xf32> to vector<8x32xf32>
    %cst_109 = arith.constant dense<0.000000e+00> : vector<18x32xf32>
    %203 = tpu.matmul %200, %202, %cst_109 {dimension_numbers = #tpu.dot_dimension_numbers<[1], [0], [0], [1], [0, 0, 1, 1], [], []>} : vector<18x8xf32>, vector<8x32xf32>, vector<18x32xf32> -> vector<18x32xf32>
    %204 = arith.addf %173, %203 : vector<18x32xf32>
    %205 = arith.addf %60, %204 : vector<18x32xf32>
    %cst_110 = arith.constant dense<0.000000e+00> : vector<18xf32>
    %206 = vector.multi_reduction <add>, %205, %cst_110 [1] : vector<18x32xf32> to vector<18xf32>
    %207 = vector.shape_cast %206 : vector<18xf32> to vector<18x1xf32>
    %cst_111 = arith.constant 3.200000e+01 : f32
    %208 = vector.broadcast %cst_111 : f32 to vector<18x1xf32>
    %209 = arith.divf %207, %208 : vector<18x1xf32>
    %210 = vector.broadcast %209 : vector<18x1xf32> to vector<18x32xf32>
    %211 = arith.subf %205, %210 : vector<18x32xf32>
    %212 = arith.mulf %211, %211 : vector<18x32xf32>
    %cst_112 = arith.constant dense<0.000000e+00> : vector<18xf32>
    %213 = vector.multi_reduction <add>, %212, %cst_112 [1] : vector<18x32xf32> to vector<18xf32>
    %214 = vector.shape_cast %213 : vector<18xf32> to vector<18x1xf32>
    %cst_113 = arith.constant 3.200000e+01 : f32
    %215 = vector.broadcast %cst_113 : f32 to vector<18x1xf32>
    %216 = arith.divf %214, %215 : vector<18x1xf32>
    %cst_114 = arith.constant 9.99999974E-6 : f32
    %217 = vector.broadcast %cst_114 : f32 to vector<18x1xf32>
    %218 = arith.addf %216, %217 : vector<18x1xf32>
    %219 = math.rsqrt %218 : vector<18x1xf32>
    %220 = vector.broadcast %209 : vector<18x1xf32> to vector<18x32xf32>
    %221 = arith.subf %205, %220 : vector<18x32xf32>
    %222 = vector.broadcast %219 : vector<18x1xf32> to vector<18x32xf32>
    %223 = arith.mulf %221, %222 : vector<18x32xf32>
    %224 = arith.mulf %223, %9 : vector<18x32xf32>
    %225 = arith.addf %224, %12 : vector<18x32xf32>
    %cst_115 = arith.constant dense<0.000000e+00> : vector<18x64xf32>
    %226 = tpu.matmul %225, %55, %cst_115 {dimension_numbers = #tpu.dot_dimension_numbers<[1], [0], [0], [1], [0, 0, 1, 1], [], []>} : vector<18x32xf32>, vector<32x64xf32>, vector<18x64xf32> -> vector<18x64xf32>
    %227 = arith.addf %226, %54 : vector<18x64xf32>
    %cst_116 = arith.constant 0.000000e+00 : f32
    %228 = vector.broadcast %cst_116 : f32 to vector<18x64xf32>
    %229 = arith.maximumf %227, %228 : vector<18x64xf32>
    %cst_117 = arith.constant dense<0.000000e+00> : vector<18x32xf32>
    %230 = tpu.matmul %229, %56, %cst_117 {dimension_numbers = #tpu.dot_dimension_numbers<[1], [0], [0], [1], [0, 0, 1, 1], [], []>} : vector<18x64xf32>, vector<64x32xf32>, vector<18x32xf32> -> vector<18x32xf32>
    %231 = arith.addf %205, %230 : vector<18x32xf32>
    %cst_118 = arith.constant dense<0.000000e+00> : vector<18xf32>
    %232 = vector.multi_reduction <add>, %231, %cst_118 [1] : vector<18x32xf32> to vector<18xf32>
    %233 = vector.shape_cast %232 : vector<18xf32> to vector<18x1xf32>
    %cst_119 = arith.constant 3.200000e+01 : f32
    %234 = vector.broadcast %cst_119 : f32 to vector<18x1xf32>
    %235 = arith.divf %233, %234 : vector<18x1xf32>
    %236 = vector.broadcast %235 : vector<18x1xf32> to vector<18x32xf32>
    %237 = arith.subf %231, %236 : vector<18x32xf32>
    %238 = arith.mulf %237, %237 : vector<18x32xf32>
    %cst_120 = arith.constant dense<0.000000e+00> : vector<18xf32>
    %239 = vector.multi_reduction <add>, %238, %cst_120 [1] : vector<18x32xf32> to vector<18xf32>
    %240 = vector.shape_cast %239 : vector<18xf32> to vector<18x1xf32>
    %cst_121 = arith.constant 3.200000e+01 : f32
    %241 = vector.broadcast %cst_121 : f32 to vector<18x1xf32>
    %242 = arith.divf %240, %241 : vector<18x1xf32>
    %cst_122 = arith.constant 9.99999974E-6 : f32
    %243 = vector.broadcast %cst_122 : f32 to vector<18x1xf32>
    %244 = arith.addf %242, %243 : vector<18x1xf32>
    %245 = math.rsqrt %244 : vector<18x1xf32>
    %246 = vector.broadcast %235 : vector<18x1xf32> to vector<18x32xf32>
    %247 = arith.subf %231, %246 : vector<18x32xf32>
    %248 = vector.broadcast %245 : vector<18x1xf32> to vector<18x32xf32>
    %249 = arith.mulf %247, %248 : vector<18x32xf32>
    %250 = arith.mulf %249, %3 : vector<18x32xf32>
    %251 = arith.addf %250, %6 : vector<18x32xf32>
    %c0_123 = arith.constant 0 : index
    %c0_124 = arith.constant 0 : index
    %c0_125 = arith.constant 0 : index
    %c0_126 = arith.constant 0 : index
    %252 = vector.load %arg4[%c0_123, %c0_124, %c0_125, %c0_126] : memref<3x4x32x8xf32, #tpu.memory_space<vmem>>, vector<1x1x32x8xf32>
    %253 = vector.shape_cast %252 : vector<1x1x32x8xf32> to vector<32x8xf32>
    %cst_127 = arith.constant dense<0.000000e+00> : vector<18x8xf32>
    %254 = tpu.matmul %251, %253, %cst_127 {dimension_numbers = #tpu.dot_dimension_numbers<[1], [0], [0], [1], [0, 0, 1, 1], [], []>} : vector<18x32xf32>, vector<32x8xf32>, vector<18x8xf32> -> vector<18x8xf32>
    %255 = arith.addf %254, %18 : vector<18x8xf32>
    %c1_128 = arith.constant 1 : index
    %c0_129 = arith.constant 0 : index
    %c0_130 = arith.constant 0 : index
    %c0_131 = arith.constant 0 : index
    %256 = vector.load %arg4[%c1_128, %c0_129, %c0_130, %c0_131] : memref<3x4x32x8xf32, #tpu.memory_space<vmem>>, vector<1x1x32x8xf32>
    %257 = vector.shape_cast %256 : vector<1x1x32x8xf32> to vector<32x8xf32>
    %cst_132 = arith.constant dense<0.000000e+00> : vector<18x8xf32>
    %258 = tpu.matmul %251, %257, %cst_132 {dimension_numbers = #tpu.dot_dimension_numbers<[1], [0], [0], [1], [0, 0, 1, 1], [], []>} : vector<18x32xf32>, vector<32x8xf32>, vector<18x8xf32> -> vector<18x8xf32>
    %259 = arith.addf %258, %30 : vector<18x8xf32>
    %c2_133 = arith.constant 2 : index
    %c0_134 = arith.constant 0 : index
    %c0_135 = arith.constant 0 : index
    %c0_136 = arith.constant 0 : index
    %260 = vector.load %arg4[%c2_133, %c0_134, %c0_135, %c0_136] : memref<3x4x32x8xf32, #tpu.memory_space<vmem>>, vector<1x1x32x8xf32>
    %261 = vector.shape_cast %260 : vector<1x1x32x8xf32> to vector<32x8xf32>
    %cst_137 = arith.constant dense<0.000000e+00> : vector<18x8xf32>
    %262 = tpu.matmul %251, %261, %cst_137 {dimension_numbers = #tpu.dot_dimension_numbers<[1], [0], [0], [1], [0, 0, 1, 1], [], []>} : vector<18x32xf32>, vector<32x8xf32>, vector<18x8xf32> -> vector<18x8xf32>
    %263 = arith.addf %262, %42 : vector<18x8xf32>
    %cst_138 = arith.constant dense<0.000000e+00> : vector<18x18xf32>
    %264 = tpu.matmul %255, %259, %cst_138 {dimension_numbers = #tpu.dot_dimension_numbers<[1], [1], [0], [0], [0, 0, 1, 0], [], []>} : vector<18x8xf32>, vector<18x8xf32>, vector<18x18xf32> -> vector<18x18xf32>
    %cst_139 = arith.constant 0.353553385 : f32
    %265 = vector.broadcast %cst_139 : f32 to vector<18x18xf32>
    %266 = arith.mulf %264, %265 : vector<18x18xf32>
    %267 = arith.addf %266, %57 : vector<18x18xf32>
    %cst_140 = arith.constant dense<0xFF800000> : vector<18xf32>
    %268 = vector.multi_reduction <maximumf>, %267, %cst_140 [1] : vector<18x18xf32> to vector<18xf32>
    %269 = vector.shape_cast %268 : vector<18xf32> to vector<18x1xf32>
    %270 = vector.broadcast %269 : vector<18x1xf32> to vector<18x18xf32>
    %271 = arith.subf %267, %270 : vector<18x18xf32>
    %272 = math.exp %271 : vector<18x18xf32>
    %cst_141 = arith.constant dense<0.000000e+00> : vector<18xf32>
    %273 = vector.multi_reduction <add>, %272, %cst_141 [1] : vector<18x18xf32> to vector<18xf32>
    %274 = vector.shape_cast %273 : vector<18xf32> to vector<18x1xf32>
    %275 = tpu.reciprocal %274 {approx = true} : vector<18x1xf32> -> vector<18x1xf32>
    %cst_142 = arith.constant dense<0.000000e+00> : vector<18x8xf32>
    %276 = tpu.matmul %272, %263, %cst_142 {dimension_numbers = #tpu.dot_dimension_numbers<[1], [0], [0], [1], [0, 0, 1, 1], [], []>} : vector<18x18xf32>, vector<18x8xf32>, vector<18x8xf32> -> vector<18x8xf32>
    %277 = vector.broadcast %275 : vector<18x1xf32> to vector<18x8xf32>
    %278 = arith.mulf %276, %277 : vector<18x8xf32>
    %c0_143 = arith.constant 0 : index
    %c0_144 = arith.constant 0 : index
    %c0_145 = arith.constant 0 : index
    %279 = vector.load %arg5[%c0_143, %c0_144, %c0_145] : memref<4x8x32xf32, #tpu.memory_space<vmem>>, vector<1x8x32xf32>
    %280 = vector.shape_cast %279 : vector<1x8x32xf32> to vector<8x32xf32>
    %cst_146 = arith.constant dense<0.000000e+00> : vector<18x32xf32>
    %281 = tpu.matmul %278, %280, %cst_146 {dimension_numbers = #tpu.dot_dimension_numbers<[1], [0], [0], [1], [0, 0, 1, 1], [], []>} : vector<18x8xf32>, vector<8x32xf32>, vector<18x32xf32> -> vector<18x32xf32>
    %282 = arith.addf %15, %281 : vector<18x32xf32>
    %c0_147 = arith.constant 0 : index
    %c1_148 = arith.constant 1 : index
    %c0_149 = arith.constant 0 : index
    %c0_150 = arith.constant 0 : index
    %283 = vector.load %arg4[%c0_147, %c1_148, %c0_149, %c0_150] : memref<3x4x32x8xf32, #tpu.memory_space<vmem>>, vector<1x1x32x8xf32>
    %284 = vector.shape_cast %283 : vector<1x1x32x8xf32> to vector<32x8xf32>
    %cst_151 = arith.constant dense<0.000000e+00> : vector<18x8xf32>
    %285 = tpu.matmul %251, %284, %cst_151 {dimension_numbers = #tpu.dot_dimension_numbers<[1], [0], [0], [1], [0, 0, 1, 1], [], []>} : vector<18x32xf32>, vector<32x8xf32>, vector<18x8xf32> -> vector<18x8xf32>
    %286 = arith.addf %285, %21 : vector<18x8xf32>
    %c1_152 = arith.constant 1 : index
    %c1_153 = arith.constant 1 : index
    %c0_154 = arith.constant 0 : index
    %c0_155 = arith.constant 0 : index
    %287 = vector.load %arg4[%c1_152, %c1_153, %c0_154, %c0_155] : memref<3x4x32x8xf32, #tpu.memory_space<vmem>>, vector<1x1x32x8xf32>
    %288 = vector.shape_cast %287 : vector<1x1x32x8xf32> to vector<32x8xf32>
    %cst_156 = arith.constant dense<0.000000e+00> : vector<18x8xf32>
    %289 = tpu.matmul %251, %288, %cst_156 {dimension_numbers = #tpu.dot_dimension_numbers<[1], [0], [0], [1], [0, 0, 1, 1], [], []>} : vector<18x32xf32>, vector<32x8xf32>, vector<18x8xf32> -> vector<18x8xf32>
    %290 = arith.addf %289, %33 : vector<18x8xf32>
    %c2_157 = arith.constant 2 : index
    %c1_158 = arith.constant 1 : index
    %c0_159 = arith.constant 0 : index
    %c0_160 = arith.constant 0 : index
    %291 = vector.load %arg4[%c2_157, %c1_158, %c0_159, %c0_160] : memref<3x4x32x8xf32, #tpu.memory_space<vmem>>, vector<1x1x32x8xf32>
    %292 = vector.shape_cast %291 : vector<1x1x32x8xf32> to vector<32x8xf32>
    %cst_161 = arith.constant dense<0.000000e+00> : vector<18x8xf32>
    %293 = tpu.matmul %251, %292, %cst_161 {dimension_numbers = #tpu.dot_dimension_numbers<[1], [0], [0], [1], [0, 0, 1, 1], [], []>} : vector<18x32xf32>, vector<32x8xf32>, vector<18x8xf32> -> vector<18x8xf32>
    %294 = arith.addf %293, %45 : vector<18x8xf32>
    %cst_162 = arith.constant dense<0.000000e+00> : vector<18x18xf32>
    %295 = tpu.matmul %286, %290, %cst_162 {dimension_numbers = #tpu.dot_dimension_numbers<[1], [1], [0], [0], [0, 0, 1, 0], [], []>} : vector<18x8xf32>, vector<18x8xf32>, vector<18x18xf32> -> vector<18x18xf32>
    %cst_163 = arith.constant 0.353553385 : f32
    %296 = vector.broadcast %cst_163 : f32 to vector<18x18xf32>
    %297 = arith.mulf %295, %296 : vector<18x18xf32>
    %298 = arith.addf %297, %57 : vector<18x18xf32>
    %cst_164 = arith.constant dense<0xFF800000> : vector<18xf32>
    %299 = vector.multi_reduction <maximumf>, %298, %cst_164 [1] : vector<18x18xf32> to vector<18xf32>
    %300 = vector.shape_cast %299 : vector<18xf32> to vector<18x1xf32>
    %301 = vector.broadcast %300 : vector<18x1xf32> to vector<18x18xf32>
    %302 = arith.subf %298, %301 : vector<18x18xf32>
    %303 = math.exp %302 : vector<18x18xf32>
    %cst_165 = arith.constant dense<0.000000e+00> : vector<18xf32>
    %304 = vector.multi_reduction <add>, %303, %cst_165 [1] : vector<18x18xf32> to vector<18xf32>
    %305 = vector.shape_cast %304 : vector<18xf32> to vector<18x1xf32>
    %306 = tpu.reciprocal %305 {approx = true} : vector<18x1xf32> -> vector<18x1xf32>
    %cst_166 = arith.constant dense<0.000000e+00> : vector<18x8xf32>
    %307 = tpu.matmul %303, %294, %cst_166 {dimension_numbers = #tpu.dot_dimension_numbers<[1], [0], [0], [1], [0, 0, 1, 1], [], []>} : vector<18x18xf32>, vector<18x8xf32>, vector<18x8xf32> -> vector<18x8xf32>
    %308 = vector.broadcast %306 : vector<18x1xf32> to vector<18x8xf32>
    %309 = arith.mulf %307, %308 : vector<18x8xf32>
    %c1_167 = arith.constant 1 : index
    %c0_168 = arith.constant 0 : index
    %c0_169 = arith.constant 0 : index
    %310 = vector.load %arg5[%c1_167, %c0_168, %c0_169] : memref<4x8x32xf32, #tpu.memory_space<vmem>>, vector<1x8x32xf32>
    %311 = vector.shape_cast %310 : vector<1x8x32xf32> to vector<8x32xf32>
    %cst_170 = arith.constant dense<0.000000e+00> : vector<18x32xf32>
    %312 = tpu.matmul %309, %311, %cst_170 {dimension_numbers = #tpu.dot_dimension_numbers<[1], [0], [0], [1], [0, 0, 1, 1], [], []>} : vector<18x8xf32>, vector<8x32xf32>, vector<18x32xf32> -> vector<18x32xf32>
    %313 = arith.addf %282, %312 : vector<18x32xf32>
    %c0_171 = arith.constant 0 : index
    %c2_172 = arith.constant 2 : index
    %c0_173 = arith.constant 0 : index
    %c0_174 = arith.constant 0 : index
    %314 = vector.load %arg4[%c0_171, %c2_172, %c0_173, %c0_174] : memref<3x4x32x8xf32, #tpu.memory_space<vmem>>, vector<1x1x32x8xf32>
    %315 = vector.shape_cast %314 : vector<1x1x32x8xf32> to vector<32x8xf32>
    %cst_175 = arith.constant dense<0.000000e+00> : vector<18x8xf32>
    %316 = tpu.matmul %251, %315, %cst_175 {dimension_numbers = #tpu.dot_dimension_numbers<[1], [0], [0], [1], [0, 0, 1, 1], [], []>} : vector<18x32xf32>, vector<32x8xf32>, vector<18x8xf32> -> vector<18x8xf32>
    %317 = arith.addf %316, %24 : vector<18x8xf32>
    %c1_176 = arith.constant 1 : index
    %c2_177 = arith.constant 2 : index
    %c0_178 = arith.constant 0 : index
    %c0_179 = arith.constant 0 : index
    %318 = vector.load %arg4[%c1_176, %c2_177, %c0_178, %c0_179] : memref<3x4x32x8xf32, #tpu.memory_space<vmem>>, vector<1x1x32x8xf32>
    %319 = vector.shape_cast %318 : vector<1x1x32x8xf32> to vector<32x8xf32>
    %cst_180 = arith.constant dense<0.000000e+00> : vector<18x8xf32>
    %320 = tpu.matmul %251, %319, %cst_180 {dimension_numbers = #tpu.dot_dimension_numbers<[1], [0], [0], [1], [0, 0, 1, 1], [], []>} : vector<18x32xf32>, vector<32x8xf32>, vector<18x8xf32> -> vector<18x8xf32>
    %321 = arith.addf %320, %36 : vector<18x8xf32>
    %c2_181 = arith.constant 2 : index
    %c2_182 = arith.constant 2 : index
    %c0_183 = arith.constant 0 : index
    %c0_184 = arith.constant 0 : index
    %322 = vector.load %arg4[%c2_181, %c2_182, %c0_183, %c0_184] : memref<3x4x32x8xf32, #tpu.memory_space<vmem>>, vector<1x1x32x8xf32>
    %323 = vector.shape_cast %322 : vector<1x1x32x8xf32> to vector<32x8xf32>
    %cst_185 = arith.constant dense<0.000000e+00> : vector<18x8xf32>
    %324 = tpu.matmul %251, %323, %cst_185 {dimension_numbers = #tpu.dot_dimension_numbers<[1], [0], [0], [1], [0, 0, 1, 1], [], []>} : vector<18x32xf32>, vector<32x8xf32>, vector<18x8xf32> -> vector<18x8xf32>
    %325 = arith.addf %324, %48 : vector<18x8xf32>
    %cst_186 = arith.constant dense<0.000000e+00> : vector<18x18xf32>
    %326 = tpu.matmul %317, %321, %cst_186 {dimension_numbers = #tpu.dot_dimension_numbers<[1], [1], [0], [0], [0, 0, 1, 0], [], []>} : vector<18x8xf32>, vector<18x8xf32>, vector<18x18xf32> -> vector<18x18xf32>
    %cst_187 = arith.constant 0.353553385 : f32
    %327 = vector.broadcast %cst_187 : f32 to vector<18x18xf32>
    %328 = arith.mulf %326, %327 : vector<18x18xf32>
    %329 = arith.addf %328, %57 : vector<18x18xf32>
    %cst_188 = arith.constant dense<0xFF800000> : vector<18xf32>
    %330 = vector.multi_reduction <maximumf>, %329, %cst_188 [1] : vector<18x18xf32> to vector<18xf32>
    %331 = vector.shape_cast %330 : vector<18xf32> to vector<18x1xf32>
    %332 = vector.broadcast %331 : vector<18x1xf32> to vector<18x18xf32>
    %333 = arith.subf %329, %332 : vector<18x18xf32>
    %334 = math.exp %333 : vector<18x18xf32>
    %cst_189 = arith.constant dense<0.000000e+00> : vector<18xf32>
    %335 = vector.multi_reduction <add>, %334, %cst_189 [1] : vector<18x18xf32> to vector<18xf32>
    %336 = vector.shape_cast %335 : vector<18xf32> to vector<18x1xf32>
    %337 = tpu.reciprocal %336 {approx = true} : vector<18x1xf32> -> vector<18x1xf32>
    %cst_190 = arith.constant dense<0.000000e+00> : vector<18x8xf32>
    %338 = tpu.matmul %334, %325, %cst_190 {dimension_numbers = #tpu.dot_dimension_numbers<[1], [0], [0], [1], [0, 0, 1, 1], [], []>} : vector<18x18xf32>, vector<18x8xf32>, vector<18x8xf32> -> vector<18x8xf32>
    %339 = vector.broadcast %337 : vector<18x1xf32> to vector<18x8xf32>
    %340 = arith.mulf %338, %339 : vector<18x8xf32>
    %c2_191 = arith.constant 2 : index
    %c0_192 = arith.constant 0 : index
    %c0_193 = arith.constant 0 : index
    %341 = vector.load %arg5[%c2_191, %c0_192, %c0_193] : memref<4x8x32xf32, #tpu.memory_space<vmem>>, vector<1x8x32xf32>
    %342 = vector.shape_cast %341 : vector<1x8x32xf32> to vector<8x32xf32>
    %cst_194 = arith.constant dense<0.000000e+00> : vector<18x32xf32>
    %343 = tpu.matmul %340, %342, %cst_194 {dimension_numbers = #tpu.dot_dimension_numbers<[1], [0], [0], [1], [0, 0, 1, 1], [], []>} : vector<18x8xf32>, vector<8x32xf32>, vector<18x32xf32> -> vector<18x32xf32>
    %344 = arith.addf %313, %343 : vector<18x32xf32>
    %c0_195 = arith.constant 0 : index
    %c3_196 = arith.constant 3 : index
    %c0_197 = arith.constant 0 : index
    %c0_198 = arith.constant 0 : index
    %345 = vector.load %arg4[%c0_195, %c3_196, %c0_197, %c0_198] : memref<3x4x32x8xf32, #tpu.memory_space<vmem>>, vector<1x1x32x8xf32>
    %346 = vector.shape_cast %345 : vector<1x1x32x8xf32> to vector<32x8xf32>
    %cst_199 = arith.constant dense<0.000000e+00> : vector<18x8xf32>
    %347 = tpu.matmul %251, %346, %cst_199 {dimension_numbers = #tpu.dot_dimension_numbers<[1], [0], [0], [1], [0, 0, 1, 1], [], []>} : vector<18x32xf32>, vector<32x8xf32>, vector<18x8xf32> -> vector<18x8xf32>
    %348 = arith.addf %347, %27 : vector<18x8xf32>
    %c1_200 = arith.constant 1 : index
    %c3_201 = arith.constant 3 : index
    %c0_202 = arith.constant 0 : index
    %c0_203 = arith.constant 0 : index
    %349 = vector.load %arg4[%c1_200, %c3_201, %c0_202, %c0_203] : memref<3x4x32x8xf32, #tpu.memory_space<vmem>>, vector<1x1x32x8xf32>
    %350 = vector.shape_cast %349 : vector<1x1x32x8xf32> to vector<32x8xf32>
    %cst_204 = arith.constant dense<0.000000e+00> : vector<18x8xf32>
    %351 = tpu.matmul %251, %350, %cst_204 {dimension_numbers = #tpu.dot_dimension_numbers<[1], [0], [0], [1], [0, 0, 1, 1], [], []>} : vector<18x32xf32>, vector<32x8xf32>, vector<18x8xf32> -> vector<18x8xf32>
    %352 = arith.addf %351, %39 : vector<18x8xf32>
    %c2_205 = arith.constant 2 : index
    %c3_206 = arith.constant 3 : index
    %c0_207 = arith.constant 0 : index
    %c0_208 = arith.constant 0 : index
    %353 = vector.load %arg4[%c2_205, %c3_206, %c0_207, %c0_208] : memref<3x4x32x8xf32, #tpu.memory_space<vmem>>, vector<1x1x32x8xf32>
    %354 = vector.shape_cast %353 : vector<1x1x32x8xf32> to vector<32x8xf32>
    %cst_209 = arith.constant dense<0.000000e+00> : vector<18x8xf32>
    %355 = tpu.matmul %251, %354, %cst_209 {dimension_numbers = #tpu.dot_dimension_numbers<[1], [0], [0], [1], [0, 0, 1, 1], [], []>} : vector<18x32xf32>, vector<32x8xf32>, vector<18x8xf32> -> vector<18x8xf32>
    %356 = arith.addf %355, %51 : vector<18x8xf32>
    %cst_210 = arith.constant dense<0.000000e+00> : vector<18x18xf32>
    %357 = tpu.matmul %348, %352, %cst_210 {dimension_numbers = #tpu.dot_dimension_numbers<[1], [1], [0], [0], [0, 0, 1, 0], [], []>} : vector<18x8xf32>, vector<18x8xf32>, vector<18x18xf32> -> vector<18x18xf32>
    %cst_211 = arith.constant 0.353553385 : f32
    %358 = vector.broadcast %cst_211 : f32 to vector<18x18xf32>
    %359 = arith.mulf %357, %358 : vector<18x18xf32>
    %360 = arith.addf %359, %57 : vector<18x18xf32>
    %cst_212 = arith.constant dense<0xFF800000> : vector<18xf32>
    %361 = vector.multi_reduction <maximumf>, %360, %cst_212 [1] : vector<18x18xf32> to vector<18xf32>
    %362 = vector.shape_cast %361 : vector<18xf32> to vector<18x1xf32>
    %363 = vector.broadcast %362 : vector<18x1xf32> to vector<18x18xf32>
    %364 = arith.subf %360, %363 : vector<18x18xf32>
    %365 = math.exp %364 : vector<18x18xf32>
    %cst_213 = arith.constant dense<0.000000e+00> : vector<18xf32>
    %366 = vector.multi_reduction <add>, %365, %cst_213 [1] : vector<18x18xf32> to vector<18xf32>
    %367 = vector.shape_cast %366 : vector<18xf32> to vector<18x1xf32>
    %368 = tpu.reciprocal %367 {approx = true} : vector<18x1xf32> -> vector<18x1xf32>
    %cst_214 = arith.constant dense<0.000000e+00> : vector<18x8xf32>
    %369 = tpu.matmul %365, %356, %cst_214 {dimension_numbers = #tpu.dot_dimension_numbers<[1], [0], [0], [1], [0, 0, 1, 1], [], []>} : vector<18x18xf32>, vector<18x8xf32>, vector<18x8xf32> -> vector<18x8xf32>
    %370 = vector.broadcast %368 : vector<18x1xf32> to vector<18x8xf32>
    %371 = arith.mulf %369, %370 : vector<18x8xf32>
    %c3_215 = arith.constant 3 : index
    %c0_216 = arith.constant 0 : index
    %c0_217 = arith.constant 0 : index
    %372 = vector.load %arg5[%c3_215, %c0_216, %c0_217] : memref<4x8x32xf32, #tpu.memory_space<vmem>>, vector<1x8x32xf32>
    %373 = vector.shape_cast %372 : vector<1x8x32xf32> to vector<8x32xf32>
    %cst_218 = arith.constant dense<0.000000e+00> : vector<18x32xf32>
    %374 = tpu.matmul %371, %373, %cst_218 {dimension_numbers = #tpu.dot_dimension_numbers<[1], [0], [0], [1], [0, 0, 1, 1], [], []>} : vector<18x8xf32>, vector<8x32xf32>, vector<18x32xf32> -> vector<18x32xf32>
    %375 = arith.addf %344, %374 : vector<18x32xf32>
    %376 = arith.addf %231, %375 : vector<18x32xf32>
    %cst_219 = arith.constant dense<0.000000e+00> : vector<18xf32>
    %377 = vector.multi_reduction <add>, %376, %cst_219 [1] : vector<18x32xf32> to vector<18xf32>
    %378 = vector.shape_cast %377 : vector<18xf32> to vector<18x1xf32>
    %cst_220 = arith.constant 3.200000e+01 : f32
    %379 = vector.broadcast %cst_220 : f32 to vector<18x1xf32>
    %380 = arith.divf %378, %379 : vector<18x1xf32>
    %381 = vector.broadcast %380 : vector<18x1xf32> to vector<18x32xf32>
    %382 = arith.subf %376, %381 : vector<18x32xf32>
    %383 = arith.mulf %382, %382 : vector<18x32xf32>
    %cst_221 = arith.constant dense<0.000000e+00> : vector<18xf32>
    %384 = vector.multi_reduction <add>, %383, %cst_221 [1] : vector<18x32xf32> to vector<18xf32>
    %385 = vector.shape_cast %384 : vector<18xf32> to vector<18x1xf32>
    %cst_222 = arith.constant 3.200000e+01 : f32
    %386 = vector.broadcast %cst_222 : f32 to vector<18x1xf32>
    %387 = arith.divf %385, %386 : vector<18x1xf32>
    %cst_223 = arith.constant 9.99999974E-6 : f32
    %388 = vector.broadcast %cst_223 : f32 to vector<18x1xf32>
    %389 = arith.addf %387, %388 : vector<18x1xf32>
    %390 = math.rsqrt %389 : vector<18x1xf32>
    %391 = vector.broadcast %380 : vector<18x1xf32> to vector<18x32xf32>
    %392 = arith.subf %376, %391 : vector<18x32xf32>
    %393 = vector.broadcast %390 : vector<18x1xf32> to vector<18x32xf32>
    %394 = arith.mulf %392, %393 : vector<18x32xf32>
    %395 = arith.mulf %394, %9 : vector<18x32xf32>
    %396 = arith.addf %395, %12 : vector<18x32xf32>
    %cst_224 = arith.constant dense<0.000000e+00> : vector<18x64xf32>
    %397 = tpu.matmul %396, %55, %cst_224 {dimension_numbers = #tpu.dot_dimension_numbers<[1], [0], [0], [1], [0, 0, 1, 1], [], []>} : vector<18x32xf32>, vector<32x64xf32>, vector<18x64xf32> -> vector<18x64xf32>
    %398 = arith.addf %397, %54 : vector<18x64xf32>
    %cst_225 = arith.constant 0.000000e+00 : f32
    %399 = vector.broadcast %cst_225 : f32 to vector<18x64xf32>
    %400 = arith.maximumf %398, %399 : vector<18x64xf32>
    %cst_226 = arith.constant dense<0.000000e+00> : vector<18x32xf32>
    %401 = tpu.matmul %400, %56, %cst_226 {dimension_numbers = #tpu.dot_dimension_numbers<[1], [0], [0], [1], [0, 0, 1, 1], [], []>} : vector<18x64xf32>, vector<64x32xf32>, vector<18x32xf32> -> vector<18x32xf32>
    %402 = arith.addf %376, %401 : vector<18x32xf32>
    %c0_227 = arith.constant 0 : index
    %c0_228 = arith.constant 0 : index
    %403 = vector.load %arg9[%c0_227, %c0_228] : memref<18x32xf32, #tpu.memory_space<vmem>>, vector<18x32xf32>
    tpu.vector_store %arg9[%c0_227, %c0_228], %402 {strides = array<i32>} : memref<18x32xf32, #tpu.memory_space<vmem>>, vector<18x32xf32>,
    return
  }
}

</mosaic_0001>

<bundles_post_ra>
// kernel: tpu_custom_call.1
= control target key start
LH: loop header
LB: loop body
LE: loop exit
PB: predicated region body
PF: predicated region fallthrough
CT: control target
= control target key end

     0   :  { %vm70_vm0 = vcmask 261120   ;;  %vm77_vm1 = vcmask 254976   ;;  %s4232_s0 = inlined_call_operand.vmem [shape: f32[18,32], index: 0, kind: input, shape index: {}]   ;;  %s4233_s1 = inlined_call_operand.vmem [shape: f32[18,32], index: 1, kind: input, shape index: {}]   ;;  %s4234_s2 = inlined_call_operand.vmem [shape: f32[18,18], index: 2, kind: input, shape index: {}]   ;;  %s4235_s3 = inlined_call_operand.vmem [shape: f32[8,32], index: 3, kind: input, shape index: {}]   ;;  %s4236_s4 = inlined_call_operand.vmem [shape: f32[3,4,32,8], index: 4, kind: input, shape index: {}]   ;;  %s4237_s5 = inlined_call_operand.vmem [shape: f32[4,8,32], index: 5, kind: input, shape index: {}]   ;;  %s4238_s6 = inlined_call_operand.vmem [shape: f32[32,64], index: 6, kind: input, shape index: {}]   ;;  %s4239_s7 = inlined_call_operand.vmem [shape: f32[1,64], index: 7, kind: input, shape index: {}]   ;;  %s4240_s8 = inlined_call_operand.vmem [shape: f32[64,32], index: 8, kind: input, shape index: {}]   ;;  %s4241_s9 = inlined_call_operand.hbm [shape: f32[18,32], index: 9, kind: output, shape index: {}]  }
   0x1   :  { %v61_v0 = vld [vmem:[%s4232_s0] sm:$0xff]  ;;  %v62_v3 = vld [vmem:[%s4232_s0 + $0x8] sm:$0xff]  ;;  %v63_v4 = vld [vmem:[%s4232_s0 + $0x10] sm:$0x3] }
   0x2   :  { %v64_v1 = vld [vmem:[%s4233_s1] sm:$0xff]  ;;  %v66_v5 = vld [vmem:[%s4233_s1 + $0x10] sm:$0x3]  ;;  %v65_v6 = vld [vmem:[%s4233_s1 + $0x8] sm:$0xff] }
   0x3   :  { %v3068_v2 = vadd.f32 %v64_v1, %v61_v0  ;;  %v3082_v7 = vadd.f32 %v66_v5, %v63_v4 }
   0x4   :  { %14 = vsyncpa [#allocation3], 0  ;;  %v3088_v10 = vadd.f32 %v65_v6, %v62_v3  ;;  %v3005_v12 = vmov 32.0   ;;  %v154_v34 = vld [vmem:[%s4236_s4 + $0x18] sm:$0xff]  ;;  %v153_v37 = vld [vmem:[%s4236_s4 + $0x10] sm:$0xff]  ;;  %vm252_vm12 = vcmask 64512  }
   0x5   :  { %v71_v8 = vsel %vm70_vm0, %v3068_v2, 0.0  ;;  %v78_v9 = vsel %vm77_vm1, %v3082_v7, 0.0  ;;  %2804 = vrcp.f32 %v3005_v12  ;;  %v2567_v35 = vld [vmem:[%s4236_s4 + $0x98] sm:$0xff]  ;;  %176 = vmatpush.msra.mxu0 %v154_v34  ;;  %v2566_v38 = vld [vmem:[%s4236_s4 + $0x90] sm:$0xff]  ;;  %v152_v40 = vld [vmem:[%s4236_s4 + $0x8] sm:$0xff]  ;;  %vm344_vm13 = vcmask 1041408  }
   0x6   :  { %72 = vadd.xlane.f32.xlu0 %v71_v8  ;;  %79 = vadd.xlane.f32.xlu1 %v78_v9  ;;  %v74_v11 = vsel %vm70_vm0, %v3088_v10, 0.0  ;;  %v2574_v36 = vld [vmem:[%s4236_s4 + $0x118] sm:$0xff]  ;;  %v2573_v39 = vld [vmem:[%s4236_s4 + $0x110] sm:$0xff]  ;;  %v2565_v41 = vld [vmem:[%s4236_s4 + $0x88] sm:$0xff]  ;;  %vm303_vm14 = vcmask 146432   ;;  %vm310_vm15 = vcmask 140288  }
   0x7   :  { %207 = vmatpush.msra.mxu1 %v2567_v35  ;;  %238 = vmatpush.msra.mxu2 %v2574_v36  ;;  %v2572_v42 = vld [vmem:[%s4236_s4 + $0x108] sm:$0xff]  ;;  %v151_v43 = vld [vmem:[%s4236_s4] sm:$0xff]  ;;  %v2594_v55 = vld [vmem:[%s4236_s4 + $0x38] sm:$0xff]  ;;  %s3006_s16 = smov 120   ;;  %s3007_s20 = smov 112  }
   0x8   :  { %177 = vmatpush.msra.mxu0 %v153_v37  ;;  %v2564_v44 = vld [vmem:[%s4236_s4 + $0x80] sm:$0xff]  ;;  %v2593_v56 = vld [vmem:[%s4236_s4 + $0x30] sm:$0xff]  ;;  %v2592_v59 = vld [vmem:[%s4236_s4 + $0x28] sm:$0xff]  ;;  %s2549_s0 = sshll.u32 %s4241_s9, 4  ;;  %s3010_s1 = smov 128   ;;  %s2550_s0 = int_to_ptr.hbm [resolvable:$true] %s2549_s0 }
   0x9   :  { %208 = vmatpush.msra.mxu1 %v2566_v38  ;;  %239 = vmatpush.msra.mxu2 %v2573_v39  ;;  %v2571_v45 = vld [vmem:[%s4236_s4 + $0x100] sm:$0xff]  ;;  %s3011_s21 = smov 8  }
   0xa   :  { %178 = vmatpush.msra.mxu0 %v152_v40  ;;  %v3166_v61 = vld [vmem:[%s4235_s3] sm:$0xff] }
   0xb   :  { %v2805_v13 = vpop.eup %2804  ;;  %209 = vmatpush.msra.mxu1 %v2565_v41  ;;  %240 = vmatpush.msra.mxu2 %v2572_v42  ;;  %v2591_v63 = vld [vmem:[%s4236_s4 + $0x20] sm:$0xff]  ;;  %v3172_v5 = vperm.slane %v3166_v61, 0  ;;  %v3175_v9 = vperm.slane %v3166_v61, 1  ;;  %v3217_v35 = vperm.slane %v3166_v61, 5  ;;  %v3223_v41 = vperm.slane %v3166_v61, 6 }
   0xc   :  { %v82_v14 = vmul.f32 32.0, %v2805_v13  ;;  %vm86_vm2 = vweird.f32 %v2805_v13  ;;  %179 = vmatpush.msra.mxu0 %v151_v43  ;;  %v3227_v43 = vperm.slane %v3166_v61, 4 }
   0xd   :  { %210 = vmatpush.msra.mxu1 %v2564_v44  ;;  %241 = vmatpush.msra.mxu2 %v2571_v45 }
   0xe   :  { %75 = vadd.xlane.f32.xlu0 %v74_v11  ;;  %v83_v15 = vsub.f32 1.0, %v82_v14 }
   0xf   :  { %437 = vmatpush.msrb.mxu2 %v2594_v55 }
  0x10   :  { %v84_v16 = vmul.f32 %v2805_v13, %v83_v15 }
  0x11   :  { %438 = vmatpush.msrb.mxu2 %v2593_v56 }
  0x12   :  { %v85_v17 = vadd.f32 %v2805_v13, %v84_v16 }
  0x13   :  { %439 = vmatpush.msrb.mxu2 %v2592_v59 }
  0x14   :  { %v3092_v18 = vsel %vm86_vm2, %v2805_v13, %v85_v17 }
  0x15   :  { %440 = vmatpush.msrb.mxu2 %v2591_v63  ;;  %v3269_v63 = vld [vmem:[%s4234_s2 + $0x8] sm:$0xff] }
  0x79   :  { %v73_v19 = vpop.xlane.xlu0 %72  ;;  %v80_v23 = vpop.xlane.xlu1 %79 }
  0x7a   :  { %v88_v20 = vmul.f32 %v3092_v18, %v73_v19  ;;  %v90_v27 = vmul.f32 %v3092_v18, %v80_v23 }
  0x7c   :  { %v3096_v21 = vsub.f32 %v3068_v2, %v88_v20  ;;  %v3107_v29 = vsub.f32 %v3082_v7, %v90_v27 }
  0x7e   :  { %v94_v22 = vmul.f32 %v3096_v21, %v3096_v21  ;;  %v96_v32 = vmul.f32 %v3107_v29, %v3107_v29 }
  0x80   :  { %v97_v24 = vsel %vm70_vm0, %v94_v22, 0.0  ;;  %v103_v33 = vsel %vm77_vm1, %v96_v32, 0.0 }
  0x81   :  { %98 = vadd.xlane.f32.xlu1 %v97_v24  ;;  %v76_v25 = vpop.xlane.xlu0 %75 }
  0x82   :  { %v89_v26 = vmul.f32 %v3092_v18, %v76_v25 }
  0x84   :  { %v3104_v28 = vsub.f32 %v3088_v10, %v89_v26 }
  0x86   :  { %v95_v30 = vmul.f32 %v3104_v28, %v3104_v28 }
  0x88   :  { %v100_v31 = vsel %vm70_vm0, %v95_v30, 0.0 }
  0x89   :  { %101 = vadd.xlane.f32.xlu2 %v100_v31 }
  0x91   :  { %104 = vadd.xlane.f32.xlu2 %v103_v33 }
  0xf4   :  { %v99_v46 = vpop.xlane.xlu1 %98 }
  0xf5   :  { %v106_v47 = vmul.f32 %v99_v46, %v3092_v18  ;;  %v2601_v46 = vld [vmem:[%s4236_s4 + $0xb8] sm:$0xff] }
  0xf7   :  { %v109_v48 = vadd.f32 1e-05, %v106_v47 }
  0xf9   :  { %2806 = vrsqrt.f32 %v109_v48  ;;  %vm118_vm4 = vweird.f32 %v109_v48 }
  0xfc   :  { %v102_v49 = vpop.xlane.xlu2 %101 }
  0xfd   :  { %v107_v50 = vmul.f32 %v102_v49, %v3092_v18 }
  0xff   :  { %v2807_v51 = vpop.eup %2806  ;;  %v110_v52 = vadd.f32 1e-05, %v107_v50  ;;  %v2600_v50 = vld [vmem:[%s4236_s4 + $0xb0] sm:$0xff] }
 0x100   :  { %v113_v53 = vmul.f32 %v2807_v51, %v109_v48  ;;  %vm119_vm3 = vweird.f32 %v2807_v51 }
 0x101   :  { %2808 = vrsqrt.f32 %v110_v52  ;;  %vm120_vm5 = vmor %vm118_vm4, %vm119_vm3  ;;  %vm128_vm7 = vweird.f32 %v110_v52 }
 0x102   :  { %v114_v54 = vmul.f32 %v2807_v51, %v113_v53  ;;  %v2598_v53 = vld [vmem:[%s4236_s4 + $0xa0] sm:$0xff] }
 0x104   :  { %v115_v57 = vmul.f32 0.5, %v114_v54  ;;  %v105_v58 = vpop.xlane.xlu2 %104 }
 0x105   :  { %v108_v60 = vmul.f32 %v105_v58, %v3092_v18  ;;  %v3262_v58 = vld [vmem:[%s4234_s2] sm:$0xff] }
 0x106   :  { %v116_v62 = vsub.f32 1.5, %v115_v57 }
 0x107   :  { %v2809_v0 = vpop.eup %2808  ;;  %v111_v1 = vadd.f32 1e-05, %v108_v60 }
 0x108   :  { %v117_v3 = vmul.f32 %v2807_v51, %v116_v62  ;;  %v123_v4 = vmul.f32 %v2809_v0, %v110_v52  ;;  %vm129_vm6 = vweird.f32 %v2809_v0 }
 0x109   :  { %2810 = vrsqrt.f32 %v111_v1  ;;  %vm130_vm8 = vmor %vm128_vm7, %vm129_vm6  ;;  %vm138_vm10 = vweird.f32 %v111_v1 }
 0x10a   :  { %v121_v6 = vsel %vm120_vm5, %v2807_v51, %v117_v3  ;;  %v124_v8 = vmul.f32 %v2809_v0, %v123_v4  ;;  %v2599_v51 = vld [vmem:[%s4236_s4 + $0xa8] sm:$0xff] }
 0x10b   :  { %v142_v11 = vmul.f32 %v121_v6, %v3096_v21  ;;  %v3276_v6 = vld [vmem:[%s4234_s2 + $0x10] sm:$0x3] }
 0x10c   :  { %v125_v12 = vmul.f32 0.5, %v124_v8 }
 0x10d   :  { %v145_v13 = vmul.f32 %v142_v11, %v3172_v5 }
 0x10e   :  { %v126_v14 = vsub.f32 1.5, %v125_v12 }
 0x10f   :  { %v2811_v15 = vpop.eup %2810  ;;  %v3180_v16 = vadd.f32 %v145_v13, %v3175_v9  ;;  %v2608_v13 = vld [vmem:[%s4236_s4 + $0x138] sm:$0xff] }
 0x110   :  { %v127_v17 = vmul.f32 %v2809_v0, %v126_v14  ;;  %v133_v19 = vmul.f32 %v2811_v15, %v111_v1  ;;  %vm139_vm9 = vweird.f32 %v2811_v15  ;;  %v2607_v14 = vld [vmem:[%s4236_s4 + $0x130] sm:$0xff] }
 0x111   :  { %2561 = vmatmul.msk.f32.vlgmr.msra.gmra.mxu0 %vm70_vm0, %v3180_v16  ;;  %2568 = vmatmul.msk.f32.vlgmr.msra.gmra.mxu1 %vm70_vm0, %v3180_v16  ;;  %vm140_vm11 = vmor %vm138_vm10, %vm139_vm9 }
 0x112   :  { %v131_v20 = vsel %vm130_vm8, %v2809_v0, %v127_v17  ;;  %v134_v21 = vmul.f32 %v2811_v15, %v133_v19  ;;  %2575 = vmatmul.msk.f32.vlgmr.msra.gmra.mxu2 %vm70_vm0, %v3180_v16 }
 0x113   :  { %v143_v22 = vmul.f32 %v131_v20, %v3104_v28  ;;  %v2605_v20 = vld [vmem:[%s4236_s4 + $0x120] sm:$0xff] }
 0x114   :  { %v135_v23 = vmul.f32 0.5, %v134_v21 }
 0x115   :  { %v146_v24 = vmul.f32 %v143_v22, %v3172_v5 }
 0x116   :  { %v136_v25 = vsub.f32 1.5, %v135_v23 }
 0x117   :  { %v3191_v26 = vadd.f32 %v146_v24, %v3175_v9 }
 0x118   :  { %v137_v27 = vmul.f32 %v2811_v15, %v136_v25 }
 0x119   :  { %2562 = vmatmul.msk.f32.gmra.mxu0 %vm70_vm0, %v3191_v26  ;;  %2569 = vmatmul.msk.f32.gmra.mxu1 %vm70_vm0, %v3191_v26 }
 0x11a   :  { %v141_v30 = vsel %vm140_vm11, %v2811_v15, %v137_v27  ;;  %2576 = vmatmul.msk.f32.gmra.mxu2 %vm70_vm0, %v3191_v26  ;;  %v2606_v15 = vld [vmem:[%s4236_s4 + $0x128] sm:$0xff]  ;;  %vm1321_vm11 = vcmask 523264  }
 0x11b   :  { %v144_v28 = vmul.f32 %v141_v30, %v3107_v29 }
 0x11d   :  { %v147_v31 = vmul.f32 %v144_v28, %v3172_v5 }
 0x11f   :  { %v3202_v32 = vadd.f32 %v147_v31, %v3175_v9 }
 0x121   :  { %2563 = vmatmul.msk.f32.gmra.mxu0 %vm70_vm0, %v3202_v32  ;;  %2570 = vmatmul.msk.f32.gmra.mxu1 %vm70_vm0, %v3202_v32 }
 0x122   :  { %2577 = vmatmul.msk.f32.gmra.mxu2 %vm70_vm0, %v3202_v32 }
 0x12a   :  { %2595 = vmatmul.msk.f32.vlgmr.msrb.gmra.mxu2 %vm70_vm0, %v3180_v16 }
 0x132   :  { %2596 = vmatmul.msk.f32.gmra.mxu2 %vm70_vm0, %v3191_v26 }
 0x13a   :  { %2597 = vmatmul.msk.f32.gmra.mxu2 %vm70_vm0, %v3202_v32 }
 0x18e   :  { %v212_v29 = vpop.f32.mrf.mxu1  ;;  %v181_v39 = vpop.f32.mrf.mxu0 }
 0x18f   :  { %v213_v45 = vadd.f32 %v212_v29, %v3217_v35  ;;  %v182_v48 = vadd.f32 %v181_v39, %v3227_v43 }
 0x195   :  { %v243_v33 = vpop.f32.mrf.mxu2 }
 0x196   :  { %v215_v34 = vpop.f32.mrf.mxu1  ;;  %v244_v49 = vadd.f32 %v243_v33, %v3223_v41  ;;  %v184_v52 = vpop.f32.mrf.mxu0 }
 0x197   :  { %v216_v40 = vadd.f32 %v215_v34, %v3217_v35  ;;  %v185_v54 = vadd.f32 %v184_v52, %v3227_v43  ;;  %v2629_v34 = vld [vmem:[%s4236_s4 + $0x58] sm:$0xff] }
 0x19d   :  { %v246_v36 = vpop.f32.mrf.mxu2 }
 0x19e   :  { %v218_v37 = vpop.f32.mrf.mxu1  ;;  %v247_v47 = vadd.f32 %v246_v36, %v3223_v41  ;;  %v187_v55 = vpop.f32.mrf.mxu0  ;;  %v2628_v36 = vld [vmem:[%s4236_s4 + $0x50] sm:$0xff] }
 0x19f   :  { %v219_v38 = vadd.f32 %v218_v37, %v3217_v35  ;;  %v188_v56 = vadd.f32 %v187_v55, %v3227_v43  ;;  %v2627_v37 = vld [vmem:[%s4236_s4 + $0x48] sm:$0xff] }
 0x1a1   :  { %2578 = vmatpush.xpose.msk.msra.mxu3 %vm252_vm12, %v219_v38  ;;  %v2626_v38 = vld [vmem:[%s4236_s4 + $0x40] sm:$0xff] }
 0x1a5   :  { %v249_v42 = vpop.f32.mrf.mxu2  ;;  %2579 = vmatpush.xpose.msk.msra.mxu3 %vm252_vm12, %v216_v40 }
 0x1a6   :  { %v250_v44 = vadd.f32 %v249_v42, %v3223_v41  ;;  %v3329_v42 = vld [vmem:[%s4237_s5] sm:$0xff] }
 0x1a7   :  { %402 = vmatpush.msrb.mxu1 %v3329_v42 }
 0x1a8   :  { %2584 = vmatpush.msk.msrb.mxu0 %vm344_vm13, %v250_v44 }
 0x1a9   :  { %2580 = vmatpush.xpose.msk.msra.mxu3 %vm252_vm12, %v213_v45 }
 0x1aa   :  { %362 = vmatpush.msrb.mxu0 %v247_v47 }
 0x1ac   :  { %363 = vmatpush.msrb.mxu0 %v244_v49  ;;  %2581 = vmatmul.msk.f32.vlgmr.msra.gmra.mxu3 %vm252_vm12, %v182_v48 }
 0x1ad   :  { %472 = vmatpush.msrb.mxu3 %v2601_v46 }
 0x1ae   :  { %507 = vmatpush.msra.mxu0 %v2608_v13  ;;  %v2633_v13 = vld [vmem:[%s4236_s4 + $0xc0] sm:$0xff] }
 0x1af   :  { %473 = vmatpush.msrb.mxu3 %v2600_v50 }
 0x1b0   :  { %508 = vmatpush.msra.mxu0 %v2607_v14 }
 0x1b1   :  { %474 = vmatpush.msrb.mxu3 %v2599_v51 }
 0x1b2   :  { %509 = vmatpush.msra.mxu0 %v2606_v15 }
 0x1b3   :  { %475 = vmatpush.msrb.mxu3 %v2598_v53 }
 0x1b4   :  { %2582 = vmatmul.msk.f32.gmra.mxu3 %vm252_vm12, %v185_v54  ;;  %510 = vmatpush.msra.mxu0 %v2605_v20 }
 0x1bc   :  { %2583 = vmatmul.msk.f32.gmra.mxu3 %vm252_vm12, %v188_v56 }
 0x1c4   :  { %2602 = vmatmul.msk.f32.vlgmr.msrb.gmra.mxu3 %vm70_vm0, %v3180_v16 }
 0x1cc   :  { %2603 = vmatmul.msk.f32.gmra.mxu3 %vm70_vm0, %v3191_v26 }
 0x1d4   :  { %2604 = vmatmul.msk.f32.gmra.mxu3 %vm70_vm0, %v3202_v32 }
 0x22f   :  { %v288_v57 = vpop.f32.mrf.mxu3 }
 0x230   :  { %v297_v59 = vmul.f32 0.35355338, %v288_v57 }
 0x232   :  { %v300_v60 = vadd.f32 %v297_v59, %v3262_v58 }
 0x234   :  { %v304_v61 = vsel %vm303_vm14, %v300_v60, -inf }
 0x235   :  { %305 = vmax.xlane.f32.xlu0 %v304_v61 }
 0x237   :  { %v291_v62 = vpop.f32.mrf.mxu3 }
 0x238   :  { %v298_v0 = vmul.f32 0.35355338, %v291_v62 }
 0x23a   :  { %v301_v1 = vadd.f32 %v298_v0, %v3269_v63 }
 0x23c   :  { %v307_v3 = vsel %vm303_vm14, %v301_v1, -inf }
 0x23d   :  { %308 = vmax.xlane.f32.xlu1 %v307_v3  ;;  %v442_v3 = vpop.f32.mrf.mxu2 }
 0x23f   :  { %v294_v4 = vpop.f32.mrf.mxu3 }
 0x240   :  { %v299_v8 = vmul.f32 0.35355338, %v294_v4  ;;  %v2635_v4 = vld [vmem:[%s4236_s4 + $0xd0] sm:$0xff] }
 0x242   :  { %v302_v11 = vadd.f32 %v299_v8, %v3276_v6 }
 0x244   :  { %v311_v12 = vsel %vm310_vm15, %v302_v11, -inf }
 0x245   :  { %312 = vmax.xlane.f32.xlu2 %v311_v12  ;;  %v445_v14 = vpop.f32.mrf.mxu2 }
 0x247   :  { %v477_v44 = vpop.f32.mrf.mxu3 }
 0x24f   :  { %v480_v48 = vpop.f32.mrf.mxu3 }
 0x257   :  { %v483_v55 = vpop.f32.mrf.mxu3 }
 0x2a8   :  { %v306_v17 = vpop.xlane.xlu0 %305 }
 0x2a9   :  { %v314_v19 = vsub.f32 %v300_v60, %v306_v17  ;;  %v448_v17 = vpop.f32.mrf.mxu2 }
 0x2ab   :  { %v317_v21 = vmul.f32 1.442695, %v314_v19 }
 0x2ad   :  { %2812 = vpow2.f32 %v317_v21 }
 0x2b0   :  { %v309_v22 = vpop.xlane.xlu1 %308 }
 0x2b1   :  { %v315_v23 = vsub.f32 %v301_v1, %v309_v22  ;;  %v2636_v1 = vld [vmem:[%s4236_s4 + $0xd8] sm:$0xff] }
 0x2b3   :  { %v2813_v24 = vpop.eup %2812  ;;  %v319_v25 = vmul.f32 1.442695, %v315_v23 }
 0x2b4   :  { %2585 = vmatmul.msk.f32.vlgmr.msrb.gmra.mxu0 %vm303_vm14, %v2813_v24  ;;  %v323_v27 = vsel %vm303_vm14, %v2813_v24, 0.0 }
 0x2b5   :  { %2814 = vpow2.f32 %v319_v25  ;;  %324 = vadd.xlane.f32.xlu0 %v323_v27  ;;  %702 = vmatpush.msrb.mxu0 %v2629_v34 }
 0x2b7   :  { %703 = vmatpush.msrb.mxu0 %v2628_v36 }
 0x2b8   :  { %v313_v30 = vpop.xlane.xlu2 %312 }
 0x2b9   :  { %v316_v28 = vsub.f32 %v302_v11, %v313_v30  ;;  %704 = vmatpush.msrb.mxu0 %v2627_v37  ;;  %v2634_v11 = vld [vmem:[%s4236_s4 + $0xc8] sm:$0xff] }
 0x2bb   :  { %v2815_v31 = vpop.eup %2814  ;;  %v321_v29 = vmul.f32 1.442695, %v316_v28  ;;  %705 = vmatpush.msrb.mxu0 %v2626_v38 }
 0x2bc   :  { %2586 = vmatmul.msk.f32.gmra.mxu0 %vm303_vm14, %v2815_v31  ;;  %v326_v33 = vsel %vm303_vm14, %v2815_v31, 0.0 }
 0x2bd   :  { %2816 = vpow2.f32 %v321_v29  ;;  %327 = vadd.xlane.f32.xlu1 %v326_v33 }
 0x2c3   :  { %v2817_v39 = vpop.eup %2816 }
 0x2c4   :  { %2587 = vmatmul.msk.f32.gmra.mxu0 %vm303_vm14, %v2817_v39  ;;  %v329_v40 = vsel %vm310_vm15, %v2817_v39, 0.0 }
 0x2c5   :  { %330 = vadd.xlane.f32.xlu2 %v329_v40 }
 0x2c9   :  { %457 = vrot.lane.b32.xlu0 %v3217_v35, %s3006_s16 }
 0x2cc   :  { %2609 = vmatmul.msk.f32.vlgmr.msra.gmra.mxu0 %vm70_vm0, %v3180_v16 }
 0x2d4   :  { %2610 = vmatmul.msk.f32.gmra.mxu0 %vm70_vm0, %v3191_v26 }
 0x2d6   :  { %422 = vrot.lane.b32.xlu1 %v3227_v43, %s3006_s16 }
 0x2dc   :  { %2611 = vmatmul.msk.f32.gmra.mxu0 %vm70_vm0, %v3202_v32 }
 0x2e4   :  { %2630 = vmatmul.msk.f32.vlgmr.msrb.gmra.mxu0 %vm70_vm0, %v3180_v16 }
 0x2ec   :  { %2631 = vmatmul.msk.f32.gmra.mxu0 %vm70_vm0, %v3191_v26 }
 0x2f4   :  { %2632 = vmatmul.msk.f32.gmra.mxu0 %vm70_vm0, %v3202_v32 }
 0x328   :  { %v325_v45 = vpop.xlane.xlu0 %324 }
 0x329   :  { %2818 = vrcp.f32 %v325_v45 }
 0x32f   :  { %v2819_v47 = vpop.eup %2818 }
 0x330   :  { %v328_v46 = vpop.xlane.xlu1 %327 }
 0x331   :  { %v365_v49 = vpop.f32.mrf.mxu0  ;;  %2820 = vrcp.f32 %v328_v46 }
 0x332   :  { %v374_v50 = vmul.f32 %v2819_v47, %v365_v49 }
 0x334   :  { %2588 = vmatmul.msk.f32.vlgmr.msrb.gmra.mxu1 %vm252_vm12, %v374_v50 }
 0x337   :  { %v2821_v52 = vpop.eup %2820 }
 0x338   :  { %v331_v51 = vpop.xlane.xlu2 %330 }
 0x339   :  { %v368_v53 = vpop.f32.mrf.mxu0  ;;  %2822 = vrcp.f32 %v331_v51 }
 0x33a   :  { %v375_v54 = vmul.f32 %v2821_v52, %v368_v53 }
 0x33b   :  { %v3333_v56 = vpop.permute.xlu0 %457 }
 0x33c   :  { %v484_v57 = vadd.f32 %v483_v55, %v3333_v56  ;;  %2589 = vmatmul.msk.f32.gmra.mxu1 %vm252_vm12, %v375_v54  ;;  %v481_v59 = vadd.f32 %v480_v48, %v3333_v56  ;;  %v478_v0 = vadd.f32 %v477_v44, %v3333_v56 }
 0x33e   :  { %2612 = vmatpush.xpose.msk.msra.mxu1 %vm252_vm12, %v484_v57  ;;  %v2643_v57 = vld [vmem:[%s4236_s4 + $0x158] sm:$0xff] }
 0x33f   :  { %v2823_v60 = vpop.eup %2822 }
 0x341   :  { %v371_v61 = vpop.f32.mrf.mxu0 }
 0x342   :  { %v376_v62 = vmul.f32 %v2823_v60, %v371_v61  ;;  %2613 = vmatpush.xpose.msk.msra.mxu1 %vm252_vm12, %v481_v59  ;;  %v2642_v60 = vld [vmem:[%s4236_s4 + $0x150] sm:$0xff] }
 0x344   :  { %2590 = vmatmul.msk.f32.gmra.mxu1 %vm252_vm12, %v376_v62  ;;  %v2641_v62 = vld [vmem:[%s4236_s4 + $0x148] sm:$0xff] }
 0x346   :  { %2614 = vmatpush.xpose.msk.msra.mxu1 %vm252_vm12, %v478_v0 }
 0x348   :  { %v3349_v8 = vpop.permute.xlu1 %422 }
 0x349   :  { %v443_v12 = vadd.f32 %v442_v3, %v3349_v8  ;;  %v446_v15 = vadd.f32 %v445_v14, %v3349_v8  ;;  %v449_v19 = vadd.f32 %v448_v17, %v3349_v8  ;;  %v512_v38 = vpop.f32.mrf.mxu0  ;;  %v2661_v17 = vld [vmem:[%s4236_s4 + $0x60] sm:$0xff] }
 0x34a   :  { %736 = vmatpush.msrb.mxu1 %v2636_v1 }
 0x34c   :  { %737 = vmatpush.msrb.mxu1 %v2635_v4  ;;  %v2640_v4 = vld [vmem:[%s4236_s4 + $0x140] sm:$0xff] }
 0x34d   :  { %2615 = vmatmul.msk.f32.vlgmr.msra.gmra.mxu1 %vm252_vm12, %v443_v12  ;;  %v2663_v12 = vld [vmem:[%s4236_s4 + $0x70] sm:$0xff] }
 0x34e   :  { %738 = vmatpush.msrb.mxu1 %v2634_v11  ;;  %v2664_v11 = vld [vmem:[%s4236_s4 + $0x78] sm:$0xff] }
 0x350   :  { %739 = vmatpush.msrb.mxu1 %v2633_v13  ;;  %v2662_v13 = vld [vmem:[%s4236_s4 + $0x68] sm:$0xff] }
 0x351   :  { %v515_v39 = vpop.f32.mrf.mxu0 }
 0x355   :  { %2616 = vmatmul.msk.f32.gmra.mxu1 %vm252_vm12, %v446_v15 }
 0x359   :  { %v518_v46 = vpop.f32.mrf.mxu0 }
 0x35d   :  { %2617 = vmatmul.msk.f32.gmra.mxu1 %vm252_vm12, %v449_v19  ;;  %v3438_v19 = vld [vmem:[%s4237_s5 + $0x8] sm:$0xff] }
 0x35e   :  { %668 = vmatpush.msra.mxu3 %v3438_v19 }
 0x365   :  { %2637 = vmatmul.msk.f32.vlgmr.msrb.gmra.mxu1 %vm70_vm0, %v3180_v16 }
 0x36d   :  { %2638 = vmatmul.msk.f32.gmra.mxu1 %vm70_vm0, %v3191_v26 }
 0x375   :  { %2639 = vmatmul.msk.f32.gmra.mxu1 %vm70_vm0, %v3202_v32 }
 0x3b1   :  { %v3369_v20 = vpop.f32.mrf.mxu1 }
 0x3b9   :  { %v3371_v21 = vpop.f32.mrf.mxu1 }
 0x3c1   :  { %v3373_v22 = vpop.f32.mrf.mxu1 }
 0x3ca   :  { %v556_v23 = vpop.f32.mrf.mxu1 }
 0x3cb   :  { %v565_v24 = vmul.f32 0.35355338, %v556_v23 }
 0x3cd   :  { %v568_v25 = vadd.f32 %v565_v24, %v3262_v58 }
 0x3cf   :  { %v571_v27 = vsel %vm303_vm14, %v568_v25, -inf }
 0x3d0   :  { %572 = vmax.xlane.f32.xlu2 %v571_v27 }
 0x3d2   :  { %v559_v30 = vpop.f32.mrf.mxu1 }
 0x3d3   :  { %v566_v28 = vmul.f32 0.35355338, %v559_v30 }
 0x3d5   :  { %v569_v31 = vadd.f32 %v566_v28, %v3269_v63 }
 0x3d7   :  { %v574_v29 = vsel %vm303_vm14, %v569_v31, -inf }
 0x3d8   :  { %575 = vmax.xlane.f32.xlu0 %v574_v29 }
 0x3da   :  { %v562_v33 = vpop.f32.mrf.mxu1 }
 0x3db   :  { %v567_v34 = vmul.f32 0.35355338, %v562_v33 }
 0x3dd   :  { %v570_v36 = vadd.f32 %v567_v34, %v3276_v6 }
 0x3df   :  { %v577_v37 = vsel %vm310_vm15, %v570_v36, -inf }
 0x3e0   :  { %578 = vmax.xlane.f32.xlu1 %v577_v37 }
 0x3e2   :  { %v741_v23 = vpop.f32.mrf.mxu1 }
 0x3e8   :  { %492 = vrot.lane.b32.xlu2 %v3223_v41, %s3006_s16  ;;  %s3008_s16 = smov 104  }
 0x443   :  { %v573_v40 = vpop.xlane.xlu2 %572 }
 0x444   :  { %v580_v44 = vsub.f32 %v568_v25, %v573_v40  ;;  %v744_v25 = vpop.f32.mrf.mxu1 }
 0x446   :  { %v583_v45 = vmul.f32 1.442695, %v580_v44 }
 0x448   :  { %2824 = vpow2.f32 %v583_v45 }
 0x44b   :  { %v3383_v47 = vpop.permute.xlu2 %492  ;;  %v576_v48 = vpop.xlane.xlu0 %575 }
 0x44c   :  { %v519_v49 = vadd.f32 %v518_v46, %v3383_v47  ;;  %v581_v50 = vsub.f32 %v569_v31, %v576_v48  ;;  %v516_v53 = vadd.f32 %v515_v39, %v3383_v47  ;;  %v513_v55 = vadd.f32 %v512_v38, %v3383_v47  ;;  %v747_v29 = vpop.f32.mrf.mxu1 }
 0x44e   :  { %v2825_v51 = vpop.eup %2824  ;;  %v585_v52 = vmul.f32 1.442695, %v581_v50  ;;  %2618 = vmatpush.msk.msra.mxu2 %vm344_vm13, %v519_v49  ;;  %v2671_v49 = vld [vmem:[%s4236_s4 + $0xf8] sm:$0xff]  ;;  %v707_v50 = vpop.f32.mrf.mxu0 }
 0x44f   :  { %v589_v54 = vsel %vm303_vm14, %v2825_v51, 0.0 }
 0x450   :  { %2826 = vpow2.f32 %v585_v52  ;;  %590 = vadd.xlane.f32.xlu2 %v589_v54  ;;  %627 = vmatpush.msra.mxu2 %v516_v53  ;;  %v2669_v53 = vld [vmem:[%s4236_s4 + $0xe8] sm:$0xff] }
 0x452   :  { %628 = vmatpush.msra.mxu2 %v513_v55  ;;  %v2668_v55 = vld [vmem:[%s4236_s4 + $0xe0] sm:$0xff] }
 0x453   :  { %2619 = vmatmul.msk.f32.vlgmr.msra.gmra.mxu2 %vm303_vm14, %v2825_v51  ;;  %v579_v59 = vpop.xlane.xlu1 %578  ;;  %v2670_v51 = vld [vmem:[%s4236_s4 + $0xf0] sm:$0xff] }
 0x454   :  { %v582_v61 = vsub.f32 %v570_v36, %v579_v59  ;;  %770 = vmatpush.msrb.mxu2 %v2643_v57 }
 0x456   :  { %v2827_v0 = vpop.eup %2826  ;;  %v587_v1 = vmul.f32 1.442695, %v582_v61  ;;  %771 = vmatpush.msrb.mxu2 %v2642_v60  ;;  %v710_v57 = vpop.f32.mrf.mxu0 }
 0x457   :  { %v592_v3 = vsel %vm303_vm14, %v2827_v0, 0.0 }
 0x458   :  { %2828 = vpow2.f32 %v587_v1  ;;  %593 = vadd.xlane.f32.xlu0 %v592_v3  ;;  %772 = vmatpush.msrb.mxu2 %v2641_v62 }
 0x45a   :  { %773 = vmatpush.msrb.mxu2 %v2640_v4 }
 0x45b   :  { %2620 = vmatmul.msk.f32.gmra.mxu2 %vm303_vm14, %v2827_v0 }
 0x45c   :  { %965 = vmatpush.msra.mxu2 %v2664_v11 }
 0x45e   :  { %v2829_v14 = vpop.eup %2828  ;;  %966 = vmatpush.msra.mxu2 %v2663_v12  ;;  %v713_v60 = vpop.f32.mrf.mxu0 }
 0x45f   :  { %v595_v15 = vsel %vm310_vm15, %v2829_v14, 0.0 }
 0x460   :  { %596 = vadd.xlane.f32.xlu1 %v595_v15  ;;  %967 = vmatpush.msra.mxu2 %v2662_v13 }
 0x462   :  { %968 = vmatpush.msra.mxu2 %v2661_v17 }
 0x463   :  { %2621 = vmatmul.msk.f32.gmra.mxu2 %vm303_vm14, %v2829_v14 }
 0x468   :  { %687 = vrot.lane.b32.xlu2 %v3227_v43, %s3007_s20 }
 0x46b   :  { %2644 = vmatmul.msk.f32.vlgmr.msrb.gmra.mxu2 %vm70_vm0, %v3180_v16 }
 0x46c   :  { %721 = vrot.lane.b32.xlu0 %v3217_v35, %s3007_s20 }
 0x473   :  { %2645 = vmatmul.msk.f32.gmra.mxu2 %vm70_vm0, %v3191_v26 }
 0x47b   :  { %2646 = vmatmul.msk.f32.gmra.mxu2 %vm70_vm0, %v3202_v32 }
 0x483   :  { %2665 = vmatmul.msk.f32.vlgmr.msra.gmra.mxu2 %vm70_vm0, %v3180_v16 }
 0x48b   :  { %2666 = vmatmul.msk.f32.gmra.mxu2 %vm70_vm0, %v3191_v26 }
 0x493   :  { %2667 = vmatmul.msk.f32.gmra.mxu2 %vm70_vm0, %v3202_v32 }
 0x4c3   :  { %v591_v24 = vpop.xlane.xlu2 %590 }
 0x4c4   :  { %2830 = vrcp.f32 %v591_v24 }
 0x4ca   :  { %v2831_v30 = vpop.eup %2830 }
 0x4cb   :  { %v594_v27 = vpop.xlane.xlu0 %593  ;;  %v3458_v52 = vpop.permute.xlu2 %687 }
 0x4cc   :  { %2832 = vrcp.f32 %v594_v27  ;;  %v708_v54 = vadd.f32 %v707_v50, %v3458_v52  ;;  %v711_v59 = vadd.f32 %v710_v57, %v3458_v52  ;;  %v714_v61 = vadd.f32 %v713_v60, %v3458_v52  ;;  %v2678_v60 = vld [vmem:[%s4236_s4 + $0x178] sm:$0xff] }
 0x4d2   :  { %v2833_v34 = vpop.eup %2832 }
 0x4d3   :  { %v597_v33 = vpop.xlane.xlu1 %596 }
 0x4d4   :  { %2834 = vrcp.f32 %v597_v33 }
 0x4d6   :  { %v630_v28 = vpop.f32.mrf.mxu2 }
 0x4d7   :  { %v639_v31 = vmul.f32 %v2831_v30, %v630_v28 }
 0x4d9   :  { %2623 = vmatmul.msk.f32.vlgmr.msra.gmra.mxu3 %vm252_vm12, %v639_v31 }
 0x4da   :  { %v2835_v44 = vpop.eup %2834 }
 0x4de   :  { %v633_v36 = vpop.f32.mrf.mxu2  ;;  %v3442_v37 = vpop.permute.xlu0 %721 }
 0x4df   :  { %v640_v38 = vmul.f32 %v2833_v34, %v633_v36  ;;  %v748_v39 = vadd.f32 %v747_v29, %v3442_v37  ;;  %v745_v40 = vadd.f32 %v744_v25, %v3442_v37  ;;  %v742_v48 = vadd.f32 %v741_v23, %v3442_v37 }
 0x4e1   :  { %2624 = vmatmul.msk.f32.gmra.mxu3 %vm252_vm12, %v640_v38 }
 0x4e2   :  { %2647 = vmatpush.xpose.msk.msrb.mxu3 %vm252_vm12, %v748_v39 }
 0x4e6   :  { %2648 = vmatpush.xpose.msk.msrb.mxu3 %vm252_vm12, %v745_v40  ;;  %v636_v45 = vpop.f32.mrf.mxu2 }
 0x4e7   :  { %v641_v46 = vmul.f32 %v2835_v44, %v636_v45 }
 0x4e9   :  { %2625 = vmatmul.msk.f32.gmra.mxu3 %vm252_vm12, %v641_v46 }
 0x4ea   :  { %2649 = vmatpush.xpose.msk.msrb.mxu3 %vm252_vm12, %v742_v48 }
 0x4ee   :  { %999 = vmatpush.msra.mxu3 %v2671_v49  ;;  %v775_v29 = vpop.f32.mrf.mxu2 }
 0x4f0   :  { %1000 = vmatpush.msra.mxu3 %v2670_v51 }
 0x4f1   :  { %2650 = vmatmul.msk.f32.vlgmr.msrb.gmra.mxu3 %vm252_vm12, %v708_v54 }
 0x4f2   :  { %1001 = vmatpush.msra.mxu3 %v2669_v53 }
 0x4f4   :  { %1002 = vmatpush.msra.mxu3 %v2668_v55 }
 0x4f6   :  { %v778_v40 = vpop.f32.mrf.mxu2 }
 0x4f9   :  { %2651 = vmatmul.msk.f32.gmra.mxu3 %vm252_vm12, %v711_v59 }
 0x4fe   :  { %v781_v50 = vpop.f32.mrf.mxu2 }
 0x501   :  { %2652 = vmatmul.msk.f32.gmra.mxu3 %vm252_vm12, %v714_v61  ;;  %v2677_v61 = vld [vmem:[%s4236_s4 + $0x170] sm:$0xff] }
 0x509   :  { %2672 = vmatmul.msk.f32.vlgmr.msra.gmra.mxu3 %vm70_vm0, %v3180_v16 }
 0x511   :  { %2673 = vmatmul.msk.f32.gmra.mxu3 %vm70_vm0, %v3191_v26 }
 0x519   :  { %2674 = vmatmul.msk.f32.gmra.mxu3 %vm70_vm0, %v3202_v32 }
 0x55c   :  { %v3478_v62 = vpop.f32.mrf.mxu3 }
 0x564   :  { %v3480_v0 = vpop.f32.mrf.mxu3 }
 0x56c   :  { %v3482_v1 = vpop.f32.mrf.mxu3 }
 0x574   :  { %v819_v3 = vpop.f32.mrf.mxu3 }
 0x575   :  { %v828_v4 = vmul.f32 0.35355338, %v819_v3  ;;  %v2676_v3 = vld [vmem:[%s4236_s4 + $0x168] sm:$0xff] }
 0x577   :  { %v831_v11 = vadd.f32 %v828_v4, %v3262_v58  ;;  %v2675_v4 = vld [vmem:[%s4236_s4 + $0x160] sm:$0xff] }
 0x579   :  { %v834_v12 = vsel %vm303_vm14, %v831_v11, -inf }
 0x57a   :  { %835 = vmax.xlane.f32.xlu1 %v834_v12 }
 0x57c   :  { %v822_v13 = vpop.f32.mrf.mxu3 }
 0x57d   :  { %v829_v14 = vmul.f32 0.35355338, %v822_v13 }
 0x57f   :  { %v832_v15 = vadd.f32 %v829_v14, %v3269_v63 }
 0x581   :  { %v837_v17 = vsel %vm303_vm14, %v832_v15, -inf }
 0x582   :  { %838 = vmax.xlane.f32.xlu0 %v837_v17 }
 0x584   :  { %v825_v23 = vpop.f32.mrf.mxu3 }
 0x585   :  { %v830_v24 = vmul.f32 0.35355338, %v825_v23 }
 0x587   :  { %v833_v25 = vadd.f32 %v830_v24, %v3276_v6 }
 0x589   :  { %v840_v27 = vsel %vm310_vm15, %v833_v25, -inf }
 0x58a   :  { %841 = vmax.xlane.f32.xlu2 %v840_v27 }
 0x58c   :  { %v1004_v12 = vpop.f32.mrf.mxu3 }
 0x593   :  { %755 = vrot.lane.b32.xlu1 %v3223_v41, %s3007_s20 }
 0x594   :  { %v1007_v13 = vpop.f32.mrf.mxu3 }
 0x59c   :  { %v1010_v17 = vpop.f32.mrf.mxu3 }
 0x5ed   :  { %v836_v30 = vpop.xlane.xlu1 %835 }
 0x5ee   :  { %v843_v28 = vsub.f32 %v831_v11, %v836_v30  ;;  %v3529_v11 = vld [vmem:[%s4237_s5 + $0x10] sm:$0xff] }
 0x5ef   :  { %931 = vmatpush.msra.mxu1 %v3529_v11 }
 0x5f0   :  { %v846_v31 = vmul.f32 1.442695, %v843_v28 }
 0x5f2   :  { %2836 = vpow2.f32 %v846_v31 }
 0x5f5   :  { %v839_v33 = vpop.xlane.xlu0 %838 }
 0x5f6   :  { %v844_v34 = vsub.f32 %v832_v15, %v839_v33 }
 0x5f8   :  { %v2837_v36 = vpop.eup %2836  ;;  %v848_v38 = vmul.f32 1.442695, %v844_v34 }
 0x5f9   :  { %v852_v39 = vsel %vm303_vm14, %v2837_v36, 0.0 }
 0x5fa   :  { %2838 = vpow2.f32 %v848_v38  ;;  %853 = vadd.xlane.f32.xlu1 %v852_v39  ;;  %v970_v38 = vpop.f32.mrf.mxu2 }
 0x5fd   :  { %v842_v44 = vpop.xlane.xlu2 %841 }
 0x5fe   :  { %v845_v45 = vsub.f32 %v833_v25, %v842_v44 }
 0x600   :  { %v2839_v46 = vpop.eup %2838  ;;  %v850_v48 = vmul.f32 1.442695, %v845_v45 }
 0x601   :  { %v855_v49 = vsel %vm303_vm14, %v2839_v46, 0.0 }
 0x602   :  { %2840 = vpow2.f32 %v850_v48  ;;  %856 = vadd.xlane.f32.xlu0 %v855_v49  ;;  %v973_v44 = vpop.f32.mrf.mxu2 }
 0x605   :  { %v3494_v51 = vpop.permute.xlu1 %755 }
 0x606   :  { %v782_v53 = vadd.f32 %v781_v50, %v3494_v51  ;;  %v779_v55 = vadd.f32 %v778_v40, %v3494_v51  ;;  %v776_v59 = vadd.f32 %v775_v29, %v3494_v51 }
 0x608   :  { %v2841_v54 = vpop.eup %2840  ;;  %2653 = vmatpush.msk.msra.mxu0 %vm344_vm13, %v782_v53 }
 0x609   :  { %v858_v57 = vsel %vm310_vm15, %v2841_v54, 0.0 }
 0x60a   :  { %890 = vmatpush.msra.mxu0 %v779_v55  ;;  %859 = vadd.xlane.f32.xlu2 %v858_v57 }
 0x60c   :  { %891 = vmatpush.msra.mxu0 %v776_v59 }
 0x60d   :  { %2654 = vmatmul.msk.f32.vlgmr.msra.gmra.mxu0 %vm303_vm14, %v2837_v36 }
 0x60e   :  { %1033 = vmatpush.msrb.mxu0 %v2678_v60 }
 0x610   :  { %1034 = vmatpush.msrb.mxu0 %v2677_v61 }
 0x612   :  { %1035 = vmatpush.msrb.mxu0 %v2676_v3 }
 0x614   :  { %1036 = vmatpush.msrb.mxu0 %v2675_v4 }
 0x615   :  { %2655 = vmatmul.msk.f32.gmra.mxu0 %vm303_vm14, %v2839_v46  ;;  %v976_v46 = vpop.f32.mrf.mxu2 }
 0x616   :  { %984 = vrot.lane.b32.xlu0 %v3217_v35, %s3008_s16 }
 0x61d   :  { %2656 = vmatmul.msk.f32.gmra.mxu0 %vm303_vm14, %v2841_v54 }
 0x622   :  { %950 = vrot.lane.b32.xlu2 %v3227_v43, %s3008_s16 }
 0x625   :  { %2679 = vmatmul.msk.f32.vlgmr.msrb.gmra.mxu0 %vm70_vm0, %v3180_v16 }
 0x62d   :  { %2680 = vmatmul.msk.f32.gmra.mxu0 %vm70_vm0, %v3191_v26 }
 0x635   :  { %2681 = vmatmul.msk.f32.gmra.mxu0 %vm70_vm0, %v3202_v32 }
 0x66d   :  { %v854_v15 = vpop.xlane.xlu1 %853 }
 0x66e   :  { %2842 = vrcp.f32 %v854_v15 }
 0x674   :  { %v2843_v23 = vpop.eup %2842 }
 0x675   :  { %v857_v14 = vpop.xlane.xlu0 %856 }
 0x676   :  { %2844 = vrcp.f32 %v857_v14 }
 0x67c   :  { %v2845_v28 = vpop.eup %2844 }
 0x67d   :  { %v860_v27 = vpop.xlane.xlu2 %859 }
 0x67e   :  { %2846 = vrcp.f32 %v860_v27 }
 0x684   :  { %v2847_v33 = vpop.eup %2846 }
 0x685   :  { %v3543_v39 = vpop.permute.xlu2 %950 }
 0x686   :  { %v971_v40 = vadd.f32 %v970_v38, %v3543_v39  ;;  %v974_v45 = vadd.f32 %v973_v44, %v3543_v39  ;;  %v977_v48 = vadd.f32 %v976_v46, %v3543_v39 }
 0x688   :  { %v3532_v16 = vpop.permute.xlu0 %984 }
 0x689   :  { %v1011_v26 = vadd.f32 %v1010_v17, %v3532_v16  ;;  %v1008_v25 = vadd.f32 %v1007_v13, %v3532_v16  ;;  %v1005_v30 = vadd.f32 %v1004_v12, %v3532_v16 }
 0x68a   :  { %v893_v24 = vpop.f32.mrf.mxu0 }
 0x68b   :  { %v902_v32 = vmul.f32 %v2843_v23, %v893_v24  ;;  %2682 = vmatpush.xpose.msk.msrb.mxu1 %vm252_vm12, %v1011_v26 }
 0x68d   :  { %2658 = vmatmul.msk.f32.vlgmr.msra.gmra.mxu1 %vm252_vm12, %v902_v32 }
 0x68f   :  { %2683 = vmatpush.xpose.msk.msrb.mxu1 %vm252_vm12, %v1008_v25 }
 0x692   :  { %v896_v31 = vpop.f32.mrf.mxu0 }
 0x693   :  { %v903_v29 = vmul.f32 %v2845_v28, %v896_v31  ;;  %2684 = vmatpush.xpose.msk.msrb.mxu1 %vm252_vm12, %v1005_v30 }
 0x695   :  { %2659 = vmatmul.msk.f32.gmra.mxu1 %vm252_vm12, %v903_v29 }
 0x69a   :  { %v899_v34 = vpop.f32.mrf.mxu0 }
 0x69b   :  { %v904_v36 = vmul.f32 %v2847_v33, %v899_v34 }
 0x69d   :  { %2660 = vmatmul.msk.f32.gmra.mxu1 %vm252_vm12, %v904_v36 }
 0x6a2   :  { %v1038_v23 = vpop.f32.mrf.mxu0 }
 0x6a5   :  { %2685 = vmatmul.msk.f32.vlgmr.msrb.gmra.mxu1 %vm252_vm12, %v971_v40 }
 0x6ad   :  { %2686 = vmatmul.msk.f32.gmra.mxu1 %vm252_vm12, %v974_v45 }
 0x6b5   :  { %2687 = vmatmul.msk.f32.gmra.mxu1 %vm252_vm12, %v977_v48  ;;  %v2926_v48 = vld [vmem:[%s4236_s4 + $0x18] sm:$0xff] }
 0x70a   :  { %v3551_v49 = vpop.f32.mrf.mxu1 }
 0x712   :  { %v3553_v50 = vpop.f32.mrf.mxu1 }
 0x71a   :  { %v3555_v53 = vpop.f32.mrf.mxu1 }
 0x722   :  { %v1082_v54 = vpop.f32.mrf.mxu1 }
 0x723   :  { %v1091_v55 = vmul.f32 0.35355338, %v1082_v54  ;;  %v2927_v54 = vld [vmem:[%s4236_s4 + $0x10] sm:$0xff] }
 0x725   :  { %v1094_v57 = vadd.f32 %v1091_v55, %v3262_v58  ;;  %v2928_v55 = vld [vmem:[%s4236_s4 + $0x8] sm:$0xff] }
 0x727   :  { %v1097_v59 = vsel %vm303_vm14, %v1094_v57, -inf }
 0x728   :  { %1098 = vmax.xlane.f32.xlu1 %v1097_v59  ;;  %v3592_v59 = vld [vmem:[%s4237_s5 + $0x18] sm:$0xff] }
 0x729   :  { %1194 = vmatpush.msrb.mxu3 %v3592_v59 }
 0x72a   :  { %v1085_v60 = vpop.f32.mrf.mxu1 }
 0x72b   :  { %v1092_v61 = vmul.f32 0.35355338, %v1085_v60  ;;  %v2930_v60 = vld [vmem:[%s4236_s4 + $0x98] sm:$0xff] }
 0x72c   :  { %1479 = vmatpush.msra.mxu3 %v2930_v60 }
 0x72d   :  { %v1095_v3 = vadd.f32 %v1092_v61, %v3269_v63  ;;  %v2931_v61 = vld [vmem:[%s4236_s4 + $0x90] sm:$0xff] }
 0x72e   :  { %1480 = vmatpush.msra.mxu3 %v2931_v61 }
 0x72f   :  { %v1100_v4 = vsel %vm303_vm14, %v1095_v3, -inf }
 0x730   :  { %1101 = vmax.xlane.f32.xlu0 %v1100_v4  ;;  %v2933_v4 = vld [vmem:[%s4236_s4 + $0x80] sm:$0xff] }
 0x732   :  { %v1088_v12 = vpop.f32.mrf.mxu1 }
 0x733   :  { %v1093_v13 = vmul.f32 0.35355338, %v1088_v12 }
 0x735   :  { %v1096_v14 = vadd.f32 %v1093_v13, %v3276_v6  ;;  %v1041_v6 = vpop.f32.mrf.mxu0 }
 0x737   :  { %v1103_v15 = vsel %vm310_vm15, %v1096_v14, -inf }
 0x738   :  { %1104 = vmax.xlane.f32.xlu2 %v1103_v15 }
 0x73d   :  { %v1044_v34 = vpop.f32.mrf.mxu0 }
 0x741   :  { %1018 = vrot.lane.b32.xlu1 %v3223_v41, %s3008_s16 }
 0x79b   :  { %v1099_v58 = vpop.xlane.xlu1 %1098 }
 0x79c   :  { %v1106_v17 = vsub.f32 %v1094_v57, %v1099_v58  ;;  %v2929_v57 = vld [vmem:[%s4236_s4] sm:$0xff] }
 0x79e   :  { %v1109_v26 = vmul.f32 1.442695, %v1106_v17 }
 0x7a0   :  { %2848 = vpow2.f32 %v1109_v26 }
 0x7a3   :  { %v1102_v24 = vpop.xlane.xlu0 %1101 }
 0x7a4   :  { %v1107_v63 = vsub.f32 %v1095_v3, %v1102_v24  ;;  %v2932_v3 = vld [vmem:[%s4236_s4 + $0x88] sm:$0xff] }
 0x7a5   :  { %1481 = vmatpush.msra.mxu3 %v2932_v3 }
 0x7a6   :  { %v2849_v32 = vpop.eup %2848  ;;  %v1111_v25 = vmul.f32 1.442695, %v1107_v63 }
 0x7a7   :  { %v1115_v27 = vsel %vm303_vm14, %v2849_v32, 0.0  ;;  %1482 = vmatpush.msra.mxu3 %v2933_v4 }
 0x7a8   :  { %2850 = vpow2.f32 %v1111_v25  ;;  %1116 = vadd.xlane.f32.xlu1 %v1115_v27  ;;  %v3614_v27 = vld [vmem:[%s4235_s3] sm:$0xff] }
 0x7ab   :  { %v1105_v30 = vpop.xlane.xlu2 %1104 }
 0x7ac   :  { %v1108_v28 = vsub.f32 %v1096_v14, %v1105_v30 }
 0x7ae   :  { %v2851_v31 = vpop.eup %2850  ;;  %v1113_v29 = vmul.f32 1.442695, %v1108_v28 }
 0x7af   :  { %v1118_v33 = vsel %vm303_vm14, %v2851_v31, 0.0 }
 0x7b0   :  { %2852 = vpow2.f32 %v1113_v29  ;;  %1119 = vadd.xlane.f32.xlu0 %v1118_v33 }
 0x7b3   :  { %v3567_v36 = vpop.permute.xlu1 %1018 }
 0x7b4   :  { %v1045_v38 = vadd.f32 %v1044_v34, %v3567_v36  ;;  %v1042_v44 = vadd.f32 %v1041_v6, %v3567_v36  ;;  %v1039_v46 = vadd.f32 %v1038_v23, %v3567_v36  ;;  %v3617_v6 = vperm.slane %v3614_v27, 7 }
 0x7b6   :  { %v2853_v40 = vpop.eup %2852  ;;  %2688 = vmatpush.msk.msrb.mxu2 %vm344_vm13, %v1045_v38  ;;  %v414_v33 = vadd.f32 %v3371_v21, %v3617_v6 }
 0x7b7   :  { %v1121_v45 = vsel %vm310_vm15, %v2853_v40, 0.0 }
 0x7b8   :  { %1153 = vmatpush.msrb.mxu2 %v1042_v44  ;;  %1122 = vadd.xlane.f32.xlu0 %v1121_v45  ;;  %v680_v38 = vadd.f32 %v3480_v0, %v414_v33 }
 0x7ba   :  { %1154 = vmatpush.msrb.mxu2 %v1039_v46 }
 0x7bb   :  { %2689 = vmatmul.msk.f32.vlgmr.msrb.gmra.mxu2 %vm303_vm14, %v2849_v32 }
 0x7bc   :  { %1453 = vmatpush.msra.mxu2 %v2926_v48 }
 0x7be   :  { %1454 = vmatpush.msra.mxu2 %v2927_v54 }
 0x7c0   :  { %1455 = vmatpush.msra.mxu2 %v2928_v55 }
 0x7c2   :  { %1456 = vmatpush.msra.mxu2 %v2929_v57 }
 0x7c3   :  { %2690 = vmatmul.msk.f32.gmra.mxu2 %vm303_vm14, %v2851_v31 }
 0x7cb   :  { %2691 = vmatmul.msk.f32.gmra.mxu2 %vm303_vm14, %v2853_v40 }
 0x81b   :  { %v1117_v12 = vpop.xlane.xlu1 %1116 }
 0x81c   :  { %2854 = vrcp.f32 %v1117_v12 }
 0x822   :  { %v2855_v14 = vpop.eup %2854 }
 0x823   :  { %v1120_v13 = vpop.xlane.xlu0 %1119 }
 0x824   :  { %2856 = vrcp.f32 %v1120_v13 }
 0x82a   :  { %v2857_v26 = vpop.eup %2856 }
 0x82b   :  { %v1123_v17 = vpop.xlane.xlu0 %1122 }
 0x82c   :  { %2858 = vrcp.f32 %v1123_v17  ;;  %v3676_v17 = vld [vmem:[%s4238_s6 + $0x10] sm:$0xff] }
 0x832   :  { %v2859_v63 = vpop.eup %2858 }
 0x83e   :  { %v1156_v15 = vpop.f32.mrf.mxu2 }
 0x83f   :  { %v1165_v58 = vmul.f32 %v2855_v14, %v1156_v15 }
 0x841   :  { %2693 = vmatmul.msk.f32.vlgmr.msrb.gmra.mxu3 %vm252_vm12, %v1165_v58  ;;  %v3670_v58 = vld [vmem:[%s4238_s6 + $0x18] sm:$0xff] }
 0x842   :  { %1664 = vmatpush.msrb.mxu3 %v3329_v42  ;;  %v413_v42 = vadd.f32 %v3369_v20, %v3617_v6  ;;  %v943_v20 = vadd.f32 %v3553_v50, %v680_v38  ;;  %1304 = vmatpush.msra.mxu0 %v3670_v58 }
 0x844   :  { %v679_v30 = vadd.f32 %v3478_v62, %v413_v42  ;;  %1305 = vmatpush.msra.mxu0 %v3676_v17  ;;  %v2937_v42 = vld [vmem:[%s4236_s4 + $0x108] sm:$0xff] }
 0x846   :  { %v1159_v23 = vpop.f32.mrf.mxu2  ;;  %v942_v28 = vadd.f32 %v3551_v49, %v679_v30  ;;  %v415_v49 = vadd.f32 %v3373_v22, %v3617_v6 }
 0x847   :  { %v1166_v24 = vmul.f32 %v2857_v26, %v1159_v23  ;;  %v3682_v26 = vld [vmem:[%s4238_s6 + $0x8] sm:$0xff]  ;;  %v3688_v23 = vld [vmem:[%s4238_s6] sm:$0xff] }
 0x848   :  { %v681_v21 = vadd.f32 %v3482_v1, %v415_v49  ;;  %1306 = vmatpush.msra.mxu0 %v3682_v26  ;;  %v3719_v49 = vld [vmem:[%s4240_s8 + $0x28] sm:$0xff] }
 0x849   :  { %2694 = vmatmul.msk.f32.gmra.mxu3 %vm252_vm12, %v1166_v24  ;;  %v2935_v24 = vld [vmem:[%s4236_s4 + $0x118] sm:$0xff] }
 0x84a   :  { %v944_v0 = vadd.f32 %v3555_v53, %v681_v21  ;;  %1307 = vmatpush.msra.mxu0 %v3688_v23 }
 0x84c   :  { %1505 = vmatpush.msrb.mxu0 %v2935_v24 }
 0x84e   :  { %v1162_v32 = vpop.f32.mrf.mxu2 }
 0x84f   :  { %v1167_v25 = vmul.f32 %v2859_v63, %v1162_v32  ;;  %v2936_v32 = vld [vmem:[%s4236_s4 + $0x110] sm:$0xff] }
 0x850   :  { %1506 = vmatpush.msrb.mxu0 %v2936_v32 }
 0x851   :  { %2695 = vmatmul.msk.f32.gmra.mxu3 %vm252_vm12, %v1167_v25 }
 0x852   :  { %1507 = vmatpush.msrb.mxu0 %v2937_v42 }
 0x8c4   :  { %v1196_v31 = vpop.f32.mrf.mxu3 }
 0x8c5   :  { %v1205_v29 = vadd.f32 %v1196_v31, %v942_v28  ;;  %v2938_v28 = vld [vmem:[%s4236_s4 + $0x100] sm:$0xff] }
 0x8c6   :  { %1508 = vmatpush.msrb.mxu0 %v2938_v28 }
 0x8c7   :  { %v3626_v34 = vadd.f32 %v1205_v29, %v3068_v2 }
 0x8c9   :  { %v1211_v40 = vsel %vm70_vm0, %v3626_v34, 0.0 }
 0x8ca   :  { %1212 = vadd.xlane.f32.xlu2 %v1211_v40 }
 0x8cc   :  { %v1199_v44 = vpop.f32.mrf.mxu3 }
 0x8cd   :  { %v1206_v62 = vadd.f32 %v1199_v44, %v943_v20  ;;  %v3708_v20 = vld [vmem:[%s4240_s8 + $0x38] sm:$0xff]  ;;  %v3713_v44 = vld [vmem:[%s4240_s8 + $0x30] sm:$0xff] }
 0x8ce   :  { %1339 = vmatpush.msra.mxu1 %v3708_v20 }
 0x8cf   :  { %v3635_v45 = vadd.f32 %v1206_v62, %v3088_v10 }
 0x8d0   :  { %1340 = vmatpush.msra.mxu1 %v3713_v44 }
 0x8d1   :  { %v1214_v2 = vsel %vm70_vm0, %v3635_v45, 0.0 }
 0x8d2   :  { %1215 = vadd.xlane.f32.xlu0 %v1214_v2  ;;  %1341 = vmatpush.msra.mxu1 %v3719_v49 }
 0x8d4   :  { %v1202_v46 = vpop.f32.mrf.mxu3 }
 0x8d5   :  { %v1207_v48 = vadd.f32 %v1202_v46, %v944_v0  ;;  %v3726_v46 = vld [vmem:[%s4240_s8 + $0x20] sm:$0xff] }
 0x8d6   :  { %1342 = vmatpush.msra.mxu1 %v3726_v46 }
 0x8d7   :  { %v3642_v50 = vadd.f32 %v1207_v48, %v3082_v7 }
 0x8d9   :  { %v1217_v54 = vsel %vm77_vm1, %v3642_v50, 0.0 }
 0x8da   :  { %1218 = vadd.xlane.f32.xlu2 %v1217_v54 }
 0x93d   :  { %v1213_v22 = vpop.xlane.xlu2 %1212 }
 0x93e   :  { %v1220_v10 = vmul.f32 %v1213_v22, %v3092_v18 }
 0x940   :  { %v3648_v1 = vsub.f32 %v3626_v34, %v1220_v10  ;;  %v3732_v10 = vld [vmem:[%s4240_s8 + $0x18] sm:$0xff] }
 0x941   :  { %1343 = vmatpush.msra.mxu1 %v3732_v10 }
 0x942   :  { %v1226_v55 = vmul.f32 %v3648_v1, %v3648_v1 }
 0x944   :  { %v1229_v53 = vsel %vm70_vm0, %v1226_v55, 0.0 }
 0x945   :  { %v1216_v57 = vpop.xlane.xlu0 %1215  ;;  %1230 = vadd.xlane.f32.xlu1 %v1229_v53 }
 0x946   :  { %v1221_v7 = vmul.f32 %v1216_v57, %v3092_v18  ;;  %v3736_v57 = vperm.slane %v3614_v27, 2 }
 0x948   :  { %v3655_v60 = vsub.f32 %v3635_v45, %v1221_v7 }
 0x94a   :  { %v1227_v61 = vmul.f32 %v3655_v60, %v3655_v60 }
 0x94c   :  { %v1232_v3 = vsel %vm70_vm0, %v1227_v61, 0.0 }
 0x94d   :  { %1233 = vadd.xlane.f32.xlu0 %v1232_v3  ;;  %v1219_v4 = vpop.xlane.xlu2 %1218 }
 0x94e   :  { %v1222_v12 = vmul.f32 %v1219_v4, %v3092_v18  ;;  %v3741_v4 = vperm.slane %v3614_v27, 3  ;;  %v2939_v27 = vld [vmem:[%s4236_s4 + $0x38] sm:$0xff] }
 0x950   :  { %v3662_v13 = vsub.f32 %v3642_v50, %v1222_v12 }
 0x952   :  { %v1228_v14 = vmul.f32 %v3662_v13, %v3662_v13 }
 0x954   :  { %v1235_v15 = vsel %vm77_vm1, %v1228_v14, 0.0 }
 0x955   :  { %1236 = vadd.xlane.f32.xlu2 %v1235_v15 }
 0x9b8   :  { %v1231_v63 = vpop.xlane.xlu1 %1230 }
 0x9b9   :  { %v1238_v25 = vmul.f32 %v1231_v63, %v3092_v18 }
 0x9bb   :  { %v1241_v30 = vadd.f32 1e-05, %v1238_v25 }
 0x9bd   :  { %2860 = vrsqrt.f32 %v1241_v30  ;;  %vm1250_vm3 = vweird.f32 %v1241_v30 }
 0x9c0   :  { %v1234_v31 = vpop.xlane.xlu0 %1233 }
 0x9c1   :  { %v1239_v29 = vmul.f32 %v1234_v31, %v3092_v18  ;;  %v2940_v31 = vld [vmem:[%s4236_s4 + $0x30] sm:$0xff] }
 0x9c3   :  { %v2861_v33 = vpop.eup %2860  ;;  %v1242_v38 = vadd.f32 1e-05, %v1239_v29 }
 0x9c4   :  { %v1245_v40 = vmul.f32 %v2861_v33, %v1241_v30  ;;  %vm1251_vm2 = vweird.f32 %v2861_v33 }
 0x9c5   :  { %2862 = vrsqrt.f32 %v1242_v38  ;;  %vm1252_vm4 = vmor %vm1250_vm3, %vm1251_vm2  ;;  %vm1260_vm6 = vweird.f32 %v1242_v38 }
 0x9c6   :  { %v1246_v62 = vmul.f32 %v2861_v33, %v1245_v40 }
 0x9c8   :  { %v1247_v21 = vmul.f32 0.5, %v1246_v62  ;;  %v1237_v2 = vpop.xlane.xlu2 %1236 }
 0x9c9   :  { %v1240_v0 = vmul.f32 %v1237_v2, %v3092_v18 }
 0x9ca   :  { %v1248_v48 = vsub.f32 1.5, %v1247_v21 }
 0x9cb   :  { %v2863_v54 = vpop.eup %2862  ;;  %v1243_v22 = vadd.f32 1e-05, %v1240_v0 }
 0x9cc   :  { %v1249_v55 = vmul.f32 %v2861_v33, %v1248_v48  ;;  %v1255_v53 = vmul.f32 %v2863_v54, %v1242_v38  ;;  %vm1261_vm5 = vweird.f32 %v2863_v54  ;;  %v2941_v38 = vld [vmem:[%s4236_s4 + $0x28] sm:$0xff] }
 0x9cd   :  { %2864 = vrsqrt.f32 %v1243_v22  ;;  %vm1262_vm7 = vmor %vm1260_vm6, %vm1261_vm5  ;;  %vm1270_vm9 = vweird.f32 %v1243_v22 }
 0x9ce   :  { %v1253_v7 = vsel %vm1252_vm4, %v2861_v33, %v1249_v55  ;;  %v1256_v61 = vmul.f32 %v2863_v54, %v1255_v53  ;;  %v2803_v55 = vld [vmem:[%s4239_s7] ss:$0 sm:$0xff] }
 0x9cf   :  { %v1274_v3 = vmul.f32 %v1253_v7, %v3648_v1 }
 0x9d0   :  { %v1257_v12 = vmul.f32 0.5, %v1256_v61 }
 0x9d1   :  { %v1277_v14 = vmul.f32 %v1274_v3, %v3736_v57 }
 0x9d2   :  { %v1258_v15 = vsub.f32 1.5, %v1257_v12 }
 0x9d3   :  { %v2865_v24 = vpop.eup %2864  ;;  %v1280_v63 = vadd.f32 %v1277_v14, %v3741_v4 }
 0x9d4   :  { %v1259_v32 = vmul.f32 %v2863_v54, %v1258_v15  ;;  %v1265_v25 = vmul.f32 %v2865_v24, %v1243_v22  ;;  %vm1271_vm8 = vweird.f32 %v2865_v24  ;;  %v3775_v22 = vld [vmem:[%s4240_s8 + $0x8] sm:$0xff] }
 0x9d5   :  { %2696 = vmatmul.msk.f32.vlgmr.msra.gmra.mxu0 %vm70_vm0, %v1280_v63  ;;  %vm1272_vm10 = vmor %vm1270_vm9, %vm1271_vm8 }
 0x9d6   :  { %v1263_v42 = vsel %vm1262_vm7, %v2863_v54, %v1259_v32  ;;  %v1266_v30 = vmul.f32 %v2865_v24, %v1265_v25  ;;  %1690 = vmatpush.msra.mxu0 %v2939_v27  ;;  %v3769_v54 = vld [vmem:[%s4240_s8 + $0x10] sm:$0xff] }
 0x9d7   :  { %v1275_v1 = vmul.f32 %v1263_v42, %v3655_v60  ;;  %v2942_v60 = vld [vmem:[%s4236_s4 + $0x20] sm:$0xff]  ;;  %1344 = vmatpush.msra.mxu1 %v3769_v54 }
 0x9d8   :  { %v1267_v28 = vmul.f32 0.5, %v1266_v30  ;;  %1691 = vmatpush.msra.mxu0 %v2940_v31 }
 0x9d9   :  { %v1278_v29 = vmul.f32 %v1275_v1, %v3736_v57  ;;  %1345 = vmatpush.msra.mxu1 %v3775_v22 }
 0x9da   :  { %v1268_v33 = vsub.f32 1.5, %v1267_v28  ;;  %1692 = vmatpush.msra.mxu0 %v2941_v38 }
 0x9db   :  { %v1281_v40 = vadd.f32 %v1278_v29, %v3741_v4 }
 0x9dc   :  { %v1269_v62 = vmul.f32 %v2865_v24, %v1268_v33  ;;  %1693 = vmatpush.msra.mxu0 %v2942_v60 }
 0x9dd   :  { %2697 = vmatmul.msk.f32.gmra.mxu0 %vm70_vm0, %v1281_v40 }
 0x9de   :  { %v1273_v21 = vsel %vm1272_vm10, %v2865_v24, %v1269_v62 }
 0x9df   :  { %v1276_v2 = vmul.f32 %v1273_v21, %v3662_v13  ;;  %v3781_v13 = vld [vmem:[%s4240_s8] sm:$0xff] }
 0x9e0   :  { %1346 = vmatpush.msra.mxu1 %v3781_v13 }
 0x9e1   :  { %v1279_v0 = vmul.f32 %v1276_v2, %v3736_v57 }
 0x9e3   :  { %v1282_v48 = vadd.f32 %v1279_v0, %v3741_v4 }
 0x9e5   :  { %2698 = vmatmul.msk.f32.gmra.mxu0 %vm70_vm0, %v1282_v48 }
 0xa52   :  { %v1309_v53 = vpop.f32.mrf.mxu0 }
 0xa53   :  { %v1310_v7 = vadd.f32 %v2803_v55, %v1309_v53 }
 0xa55   :  { %v1318_v61 = vmax.f32 %v1310_v7, 0.0 }
 0xa57   :  { %2699 = vmatmul.msk.f32.vlgmr.msra.gmra.mxu1 %vm1321_vm11, %v1318_v61 }
 0xa5a   :  { %v1312_v3 = vpop.f32.mrf.mxu0 }
 0xa5b   :  { %v1313_v12 = vadd.f32 %v2803_v55, %v1312_v3 }
 0xa5d   :  { %v1319_v14 = vmax.f32 %v1313_v12, 0.0 }
 0xa5f   :  { %2700 = vmatmul.msk.f32.gmra.mxu1 %vm1321_vm11, %v1319_v14 }
 0xa62   :  { %v1315_v15 = vpop.f32.mrf.mxu0 }
 0xa63   :  { %v1316_v24 = vadd.f32 %v2803_v55, %v1315_v15 }
 0xa65   :  { %v1320_v63 = vmax.f32 %v1316_v24, 0.0 }
 0xa67   :  { %2701 = vmatmul.msk.f32.gmra.mxu1 %vm1321_vm11, %v1320_v63 }
 0xad4   :  { %v1348_v32 = vpop.f32.mrf.mxu1 }
 0xad5   :  { %v3791_v25 = vadd.f32 %v1348_v32, %v3626_v34 }
 0xad7   :  { %v1360_v42 = vsel %vm70_vm0, %v3791_v25, 0.0 }
 0xad8   :  { %1361 = vadd.xlane.f32.xlu1 %v1360_v42 }
 0xadc   :  { %v1351_v30 = vpop.f32.mrf.mxu1 }
 0xadd   :  { %v3796_v27 = vadd.f32 %v1351_v30, %v3635_v45 }
 0xadf   :  { %v1363_v1 = vsel %vm70_vm0, %v3796_v27, 0.0 }
 0xae0   :  { %1364 = vadd.xlane.f32.xlu0 %v1363_v1 }
 0xae4   :  { %v1354_v28 = vpop.f32.mrf.mxu1 }
 0xae5   :  { %v3801_v31 = vadd.f32 %v1354_v28, %v3642_v50 }
 0xae7   :  { %v1366_v34 = vsel %vm77_vm1, %v3801_v31, 0.0 }
 0xae8   :  { %1367 = vadd.xlane.f32.xlu2 %v1366_v34 }
 0xb4b   :  { %v1362_v29 = vpop.xlane.xlu1 %1361 }
 0xb4c   :  { %v1369_v33 = vmul.f32 %v1362_v29, %v3092_v18 }
 0xb4e   :  { %v1372_v38 = vsub.f32 %v3791_v25, %v1369_v33 }
 0xb50   :  { %v1375_v40 = vmul.f32 %v1372_v38, %v1372_v38 }
 0xb52   :  { %v1378_v45 = vsel %vm70_vm0, %v1375_v40, 0.0 }
 0xb53   :  { %1379 = vadd.xlane.f32.xlu1 %v1378_v45  ;;  %v1365_v62 = vpop.xlane.xlu0 %1364 }
 0xb54   :  { %v1370_v60 = vmul.f32 %v1365_v62, %v3092_v18 }
 0xb56   :  { %v1373_v21 = vsub.f32 %v3796_v27, %v1370_v60 }
 0xb58   :  { %v1376_v50 = vmul.f32 %v1373_v21, %v1373_v21 }
 0xb5a   :  { %v1381_v2 = vsel %vm70_vm0, %v1376_v50, 0.0 }
 0xb5b   :  { %1382 = vadd.xlane.f32.xlu0 %v1381_v2  ;;  %v1368_v0 = vpop.xlane.xlu2 %1367 }
 0xb5c   :  { %v1371_v48 = vmul.f32 %v1368_v0, %v3092_v18 }
 0xb5e   :  { %v1374_v55 = vsub.f32 %v3801_v31, %v1371_v48 }
 0xb60   :  { %v1377_v53 = vmul.f32 %v1374_v55, %v1374_v55 }
 0xb62   :  { %v1384_v7 = vsel %vm77_vm1, %v1377_v53, 0.0 }
 0xb63   :  { %1385 = vadd.xlane.f32.xlu2 %v1384_v7 }
 0xbc6   :  { %v1380_v61 = vpop.xlane.xlu1 %1379 }
 0xbc7   :  { %v1387_v3 = vmul.f32 %v1380_v61, %v3092_v18 }
 0xbc9   :  { %v1390_v12 = vadd.f32 1e-05, %v1387_v3 }
 0xbcb   :  { %2866 = vrsqrt.f32 %v1390_v12  ;;  %vm1399_vm3 = vweird.f32 %v1390_v12 }
 0xbce   :  { %v1383_v14 = vpop.xlane.xlu0 %1382 }
 0xbcf   :  { %v1388_v15 = vmul.f32 %v1383_v14, %v3092_v18 }
 0xbd1   :  { %v2867_v24 = vpop.eup %2866  ;;  %v1391_v63 = vadd.f32 1e-05, %v1388_v15 }
 0xbd2   :  { %v1394_v32 = vmul.f32 %v2867_v24, %v1390_v12  ;;  %vm1400_vm2 = vweird.f32 %v2867_v24 }
 0xbd3   :  { %2868 = vrsqrt.f32 %v1391_v63  ;;  %vm1401_vm4 = vmor %vm1399_vm3, %vm1400_vm2  ;;  %vm1409_vm6 = vweird.f32 %v1391_v63 }
 0xbd4   :  { %v1395_v42 = vmul.f32 %v2867_v24, %v1394_v32 }
 0xbd6   :  { %v1396_v30 = vmul.f32 0.5, %v1395_v42  ;;  %v1386_v1 = vpop.xlane.xlu2 %1385 }
 0xbd7   :  { %v1389_v28 = vmul.f32 %v1386_v1, %v3092_v18 }
 0xbd8   :  { %v1397_v34 = vsub.f32 1.5, %v1396_v30 }
 0xbd9   :  { %v2869_v29 = vpop.eup %2868  ;;  %v1392_v33 = vadd.f32 1e-05, %v1389_v28 }
 0xbda   :  { %v1398_v40 = vmul.f32 %v2867_v24, %v1397_v34  ;;  %v1404_v45 = vmul.f32 %v2869_v29, %v1391_v63  ;;  %vm1410_vm5 = vweird.f32 %v2869_v29 }
 0xbdb   :  { %2870 = vrsqrt.f32 %v1392_v33  ;;  %vm1411_vm7 = vmor %vm1409_vm6, %vm1410_vm5  ;;  %vm1419_vm9 = vweird.f32 %v1392_v33 }
 0xbdc   :  { %v1402_v62 = vsel %vm1401_vm4, %v2867_v24, %v1398_v40  ;;  %v1405_v60 = vmul.f32 %v2869_v29, %v1404_v45 }
 0xbdd   :  { %v1423_v50 = vmul.f32 %v1402_v62, %v1372_v38 }
 0xbde   :  { %v1406_v2 = vmul.f32 0.5, %v1405_v60 }
 0xbdf   :  { %v1426_v0 = vmul.f32 %v1423_v50, %v3172_v5  ;;  %v2943_v50 = vld [vmem:[%s4236_s4 + $0x138] sm:$0xff] }
 0xbe0   :  { %v1407_v48 = vsub.f32 1.5, %v1406_v2 }
 0xbe1   :  { %v2871_v53 = vpop.eup %2870  ;;  %v3819_v7 = vadd.f32 %v1426_v0, %v3175_v9 }
 0xbe2   :  { %v1408_v61 = vmul.f32 %v2869_v29, %v1407_v48  ;;  %v1414_v3 = vmul.f32 %v2871_v53, %v1392_v33  ;;  %vm1420_vm8 = vweird.f32 %v2871_v53  ;;  %v2944_v48 = vld [vmem:[%s4236_s4 + $0x130] sm:$0xff] }
 0xbe3   :  { %2702 = vmatmul.msk.f32.vlgmr.msra.gmra.mxu2 %vm70_vm0, %v3819_v7  ;;  %2705 = vmatmul.msk.f32.vlgmr.msra.gmra.mxu3 %vm70_vm0, %v3819_v7  ;;  %vm1421_vm10 = vmor %vm1419_vm9, %vm1420_vm8 }
 0xbe4   :  { %v1412_v38 = vsel %vm1411_vm7, %v2869_v29, %v1408_v61  ;;  %v1415_v12 = vmul.f32 %v2871_v53, %v1414_v3  ;;  %2708 = vmatmul.msk.f32.vlgmr.msrb.gmra.mxu0 %vm70_vm0, %v3819_v7  ;;  %v2946_v61 = vld [vmem:[%s4236_s4 + $0x120] sm:$0xff] }
 0xbe5   :  { %v1424_v14 = vmul.f32 %v1412_v38, %v1373_v21  ;;  %v2947_v38 = vld [vmem:[%s4236_s4 + $0xb8] sm:$0xff] }
 0xbe6   :  { %v1416_v15 = vmul.f32 0.5, %v1415_v12 }
 0xbe7   :  { %v1427_v24 = vmul.f32 %v1424_v14, %v3172_v5  ;;  %v2949_v14 = vld [vmem:[%s4236_s4 + $0xa8] sm:$0xff] }
 0xbe8   :  { %v1417_v32 = vsub.f32 1.5, %v1416_v15  ;;  %v2950_v15 = vld [vmem:[%s4236_s4 + $0xa0] sm:$0xff] }
 0xbe9   :  { %v3829_v63 = vadd.f32 %v1427_v24, %v3175_v9 }
 0xbea   :  { %v1418_v42 = vmul.f32 %v2871_v53, %v1417_v32 }
 0xbeb   :  { %2703 = vmatmul.msk.f32.gmra.mxu2 %vm70_vm0, %v3829_v63  ;;  %2706 = vmatmul.msk.f32.gmra.mxu3 %vm70_vm0, %v3829_v63 }
 0xbec   :  { %v1422_v30 = vsel %vm1421_vm10, %v2871_v53, %v1418_v42  ;;  %2709 = vmatmul.msk.f32.gmra.mxu0 %vm70_vm0, %v3829_v63 }
 0xbed   :  { %v1425_v21 = vmul.f32 %v1422_v30, %v1374_v55 }
 0xbef   :  { %v1428_v1 = vmul.f32 %v1425_v21, %v3172_v5 }
 0xbf1   :  { %v3839_v28 = vadd.f32 %v1428_v1, %v3175_v9 }
 0xbf3   :  { %2704 = vmatmul.msk.f32.gmra.mxu2 %vm70_vm0, %v3839_v28  ;;  %2707 = vmatmul.msk.f32.gmra.mxu3 %vm70_vm0, %v3839_v28 }
 0xbf4   :  { %2710 = vmatmul.msk.f32.gmra.mxu0 %vm70_vm0, %v3839_v28 }
 0xbfc   :  { %2724 = vmatmul.msk.f32.vlgmr.msra.gmra.mxu0 %vm70_vm0, %v3819_v7 }
 0xc04   :  { %2725 = vmatmul.msk.f32.gmra.mxu0 %vm70_vm0, %v3829_v63 }
 0xc0c   :  { %2726 = vmatmul.msk.f32.gmra.mxu0 %vm70_vm0, %v3839_v28 }
 0xc61   :  { %v1510_v5 = vpop.f32.mrf.mxu0 }
 0xc62   :  { %v1511_v45 = vadd.f32 %v1510_v5, %v3223_v41 }
 0xc66   :  { %v1484_v9 = vpop.f32.mrf.mxu3  ;;  %v1458_v2 = vpop.f32.mrf.mxu2 }
 0xc67   :  { %v1485_v53 = vadd.f32 %v1484_v9, %v3217_v35  ;;  %v1459_v3 = vadd.f32 %v1458_v2, %v3227_v43 }
 0xc69   :  { %v1513_v55 = vpop.f32.mrf.mxu0 }
 0xc6a   :  { %v1514_v40 = vadd.f32 %v1513_v55, %v3223_v41  ;;  %v3910_v55 = vld [vmem:[%s4234_s2 + $0x8] sm:$0xff] }
 0xc6e   :  { %v1487_v34 = vpop.f32.mrf.mxu3  ;;  %v1461_v12 = vpop.f32.mrf.mxu2 }
 0xc6f   :  { %v1488_v0 = vadd.f32 %v1487_v34, %v3217_v35  ;;  %v1462_v24 = vadd.f32 %v1461_v12, %v3227_v43 }
 0xc71   :  { %v1516_v29 = vpop.f32.mrf.mxu0 }
 0xc72   :  { %v1517_v33 = vadd.f32 %v1516_v29, %v3223_v41  ;;  %v2945_v41 = vld [vmem:[%s4236_s4 + $0x128] sm:$0xff] }
 0xc74   :  { %2717 = vmatpush.msk.msrb.mxu2 %vm344_vm13, %v1517_v33 }
 0xc76   :  { %1625 = vmatpush.msrb.mxu2 %v1514_v40  ;;  %v1490_v62 = vpop.f32.mrf.mxu3  ;;  %v1464_v32 = vpop.f32.mrf.mxu2 }
 0xc77   :  { %v1491_v60 = vadd.f32 %v1490_v62, %v3217_v35  ;;  %v2948_v35 = vld [vmem:[%s4236_s4 + $0xb0] sm:$0xff]  ;;  %v1465_v42 = vadd.f32 %v1464_v32, %v3227_v43 }
 0xc78   :  { %1626 = vmatpush.msrb.mxu2 %v1511_v45  ;;  %v3917_v45 = vld [vmem:[%s4234_s2 + $0x10] sm:$0x3] }
 0xc79   :  { %2711 = vmatpush.xpose.msk.msrb.mxu1 %vm252_vm12, %v1491_v60  ;;  %v2955_v32 = vld [vmem:[%s4236_s4 + $0x50] sm:$0xff] }
 0xc7a   :  { %1742 = vmatpush.msra.mxu2 %v2943_v50 }
 0xc7c   :  { %1743 = vmatpush.msra.mxu2 %v2944_v48 }
 0xc7d   :  { %2712 = vmatpush.xpose.msk.msrb.mxu1 %vm252_vm12, %v1488_v0 }
 0xc7e   :  { %1744 = vmatpush.msra.mxu2 %v2945_v41 }
 0xc80   :  { %1745 = vmatpush.msra.mxu2 %v2946_v61 }
 0xc81   :  { %2713 = vmatpush.xpose.msk.msrb.mxu1 %vm252_vm12, %v1485_v53 }
 0xc84   :  { %2714 = vmatmul.msk.f32.vlgmr.msrb.gmra.mxu1 %vm252_vm12, %v1459_v3 }
 0xc85   :  { %1716 = vmatpush.msra.mxu1 %v2947_v38 }
 0xc87   :  { %1717 = vmatpush.msra.mxu1 %v2948_v35 }
 0xc89   :  { %1718 = vmatpush.msra.mxu1 %v2949_v14 }
 0xc8b   :  { %1719 = vmatpush.msra.mxu1 %v2950_v15 }
 0xc8c   :  { %2715 = vmatmul.msk.f32.gmra.mxu1 %vm252_vm12, %v1462_v24 }
 0xc8d   :  { %1901 = vmatpush.msrb.mxu1 %v3438_v19  ;;  %v3903_v19 = vld [vmem:[%s4234_s2] sm:$0xff] }
 0xc94   :  { %2716 = vmatmul.msk.f32.gmra.mxu1 %vm252_vm12, %v1465_v42 }
 0xc9c   :  { %2727 = vmatmul.msk.f32.vlgmr.msra.gmra.mxu1 %vm70_vm0, %v3819_v7 }
 0xca4   :  { %2728 = vmatmul.msk.f32.gmra.mxu1 %vm70_vm0, %v3829_v63 }
 0xcac   :  { %2729 = vmatmul.msk.f32.gmra.mxu1 %vm70_vm0, %v3839_v28 }
 0xd01   :  { %v1554_v30 = vpop.f32.mrf.mxu1 }
 0xd02   :  { %v1563_v21 = vmul.f32 0.35355338, %v1554_v30 }
 0xd04   :  { %v1566_v43 = vadd.f32 %v3903_v19, %v1563_v21  ;;  %v2956_v21 = vld [vmem:[%s4236_s4 + $0x48] sm:$0xff] }
 0xd06   :  { %v1569_v1 = vsel %vm303_vm14, %v1566_v43, -inf }
 0xd07   :  { %1570 = vmax.xlane.f32.xlu1 %v1569_v1 }
 0xd09   :  { %v1557_v5 = vpop.f32.mrf.mxu1 }
 0xd0a   :  { %v1564_v9 = vmul.f32 0.35355338, %v1557_v5  ;;  %v2957_v5 = vld [vmem:[%s4236_s4 + $0x40] sm:$0xff] }
 0xd0c   :  { %v1567_v34 = vadd.f32 %v3910_v55, %v1564_v9 }
 0xd0e   :  { %v1572_v29 = vsel %vm303_vm14, %v1567_v34, -inf }
 0xd0f   :  { %1573 = vmax.xlane.f32.xlu0 %v1572_v29 }
 0xd11   :  { %v1560_v33 = vpop.f32.mrf.mxu1 }
 0xd12   :  { %v1565_v40 = vmul.f32 0.35355338, %v1560_v33 }
 0xd14   :  { %v1568_v62 = vadd.f32 %v3917_v45, %v1565_v40 }
 0xd16   :  { %v1575_v60 = vsel %vm310_vm15, %v1568_v62, -inf }
 0xd17   :  { %1576 = vmax.xlane.f32.xlu2 %v1575_v60 }
 0xd19   :  { %v1721_v50 = vpop.f32.mrf.mxu1 }
 0xd1a   :  { %v1722_v53 = vadd.f32 %v1721_v50, %v3333_v56 }
 0xd21   :  { %v1724_v2 = vpop.f32.mrf.mxu1 }
 0xd22   :  { %v1725_v41 = vadd.f32 %v1724_v2, %v3333_v56  ;;  %v2958_v2 = vld [vmem:[%s4236_s4 + $0xd8] sm:$0xff] }
 0xd29   :  { %v1727_v0 = vpop.f32.mrf.mxu1 }
 0xd2a   :  { %v1728_v48 = vadd.f32 %v1727_v0, %v3333_v56  ;;  %v2954_v56 = vld [vmem:[%s4236_s4 + $0x58] sm:$0xff]  ;;  %v2959_v0 = vld [vmem:[%s4236_s4 + $0xd0] sm:$0xff] }
 0xd2c   :  { %2733 = vmatpush.xpose.msk.msra.mxu3 %vm252_vm12, %v1728_v48 }
 0xd30   :  { %2734 = vmatpush.xpose.msk.msra.mxu3 %vm252_vm12, %v1725_v41 }
 0xd34   :  { %2735 = vmatpush.xpose.msk.msra.mxu3 %vm252_vm12, %v1722_v53 }
 0xd7a   :  { %v1571_v61 = vpop.xlane.xlu1 %1570 }
 0xd7b   :  { %v1578_v3 = vsub.f32 %v1566_v43, %v1571_v61  ;;  %v2960_v61 = vld [vmem:[%s4236_s4 + $0xc8] sm:$0xff] }
 0xd7d   :  { %v1581_v38 = vmul.f32 1.442695, %v1578_v3 }
 0xd7f   :  { %2872 = vpow2.f32 %v1581_v38  ;;  %v2961_v38 = vld [vmem:[%s4236_s4 + $0xc0] sm:$0xff] }
 0xd82   :  { %v1574_v12 = vpop.xlane.xlu0 %1573 }
 0xd83   :  { %v1579_v35 = vsub.f32 %v1567_v34, %v1574_v12 }
 0xd85   :  { %v2873_v14 = vpop.eup %2872  ;;  %v1583_v15 = vmul.f32 1.442695, %v1579_v35 }
 0xd86   :  { %2718 = vmatmul.msk.f32.vlgmr.msrb.gmra.mxu2 %vm303_vm14, %v2873_v14  ;;  %v1587_v24 = vsel %vm303_vm14, %v2873_v14, 0.0 }
 0xd87   :  { %2874 = vpow2.f32 %v1583_v15  ;;  %1588 = vadd.xlane.f32.xlu1 %v1587_v24  ;;  %1927 = vmatpush.msrb.mxu2 %v2954_v56  ;;  %v1695_v15 = vpop.f32.mrf.mxu0 }
 0xd88   :  { %v1696_v56 = vadd.f32 %v1695_v15, %v3349_v8 }
 0xd89   :  { %1928 = vmatpush.msrb.mxu2 %v2955_v32 }
 0xd8a   :  { %v1577_v42 = vpop.xlane.xlu2 %1576 }
 0xd8b   :  { %v1580_v30 = vsub.f32 %v1568_v62, %v1577_v42  ;;  %1929 = vmatpush.msrb.mxu2 %v2956_v21 }
 0xd8d   :  { %v2875_v43 = vpop.eup %2874  ;;  %v1585_v1 = vmul.f32 1.442695, %v1580_v30  ;;  %1930 = vmatpush.msrb.mxu2 %v2957_v5 }
 0xd8e   :  { %2719 = vmatmul.msk.f32.gmra.mxu2 %vm303_vm14, %v2875_v43  ;;  %v1590_v9 = vsel %vm303_vm14, %v2875_v43, 0.0 }
 0xd8f   :  { %2876 = vpow2.f32 %v1585_v1  ;;  %1591 = vadd.xlane.f32.xlu0 %v1590_v9  ;;  %v1698_v32 = vpop.f32.mrf.mxu0 }
 0xd90   :  { %v1699_v30 = vadd.f32 %v1698_v32, %v3349_v8 }
 0xd95   :  { %v2877_v34 = vpop.eup %2876 }
 0xd96   :  { %2720 = vmatmul.msk.f32.gmra.mxu2 %vm303_vm14, %v2877_v34  ;;  %v1593_v29 = vsel %vm310_vm15, %v2877_v34, 0.0 }
 0xd97   :  { %1594 = vadd.xlane.f32.xlu2 %v1593_v29  ;;  %v1701_v21 = vpop.f32.mrf.mxu0  ;;  %v2964_v29 = vld [vmem:[%s4236_s4 + $0x148] sm:$0xff] }
 0xd98   :  { %v1702_v1 = vadd.f32 %v1701_v21, %v3349_v8  ;;  %v2963_v8 = vld [vmem:[%s4236_s4 + $0x150] sm:$0xff] }
 0xd9e   :  { %2730 = vmatmul.msk.f32.vlgmr.msra.gmra.mxu2 %vm70_vm0, %v3819_v7 }
 0xda6   :  { %2731 = vmatmul.msk.f32.gmra.mxu2 %vm70_vm0, %v3829_v63 }
 0xdae   :  { %2732 = vmatmul.msk.f32.gmra.mxu2 %vm70_vm0, %v3839_v28 }
 0xdb6   :  { %2746 = vmatmul.msk.f32.vlgmr.msrb.gmra.mxu2 %vm70_vm0, %v3819_v7 }
 0xdbe   :  { %2747 = vmatmul.msk.f32.gmra.mxu2 %vm70_vm0, %v3829_v63 }
 0xdc6   :  { %2748 = vmatmul.msk.f32.gmra.mxu2 %vm70_vm0, %v3839_v28 }
 0xdfa   :  { %v1589_v33 = vpop.xlane.xlu1 %1588 }
 0xdfb   :  { %2878 = vrcp.f32 %v1589_v33 }
 0xe01   :  { %v2879_v62 = vpop.eup %2878 }
 0xe02   :  { %v1592_v40 = vpop.xlane.xlu0 %1591 }
 0xe03   :  { %2880 = vrcp.f32 %v1592_v40 }
 0xe09   :  { %v1628_v60 = vpop.f32.mrf.mxu2  ;;  %v2881_v41 = vpop.eup %2880 }
 0xe0a   :  { %v1637_v50 = vmul.f32 %v2879_v62, %v1628_v60  ;;  %v1595_v48 = vpop.xlane.xlu2 %1594 }
 0xe0b   :  { %2882 = vrcp.f32 %v1595_v48 }
 0xe0c   :  { %2721 = vmatmul.msk.f32.vlgmr.msrb.gmra.mxu3 %vm252_vm12, %v1637_v50 }
 0xe0d   :  { %1953 = vmatpush.msrb.mxu3 %v2958_v2 }
 0xe0f   :  { %1954 = vmatpush.msrb.mxu3 %v2959_v0 }
 0xe11   :  { %v1631_v53 = vpop.f32.mrf.mxu2  ;;  %1955 = vmatpush.msrb.mxu3 %v2960_v61  ;;  %v2883_v12 = vpop.eup %2882 }
 0xe12   :  { %v1638_v3 = vmul.f32 %v2881_v41, %v1631_v53 }
 0xe13   :  { %1956 = vmatpush.msrb.mxu3 %v2961_v38 }
 0xe14   :  { %2722 = vmatmul.msk.f32.gmra.mxu3 %vm252_vm12, %v1638_v3 }
 0xe19   :  { %v1634_v35 = vpop.f32.mrf.mxu2 }
 0xe1a   :  { %v1639_v14 = vmul.f32 %v2883_v12, %v1634_v35 }
 0xe1c   :  { %2723 = vmatmul.msk.f32.gmra.mxu3 %vm252_vm12, %v1639_v14 }
 0xe21   :  { %v1747_v24 = vpop.f32.mrf.mxu2 }
 0xe22   :  { %v1748_v34 = vadd.f32 %v1747_v24, %v3383_v47 }
 0xe24   :  { %2736 = vmatmul.msk.f32.vlgmr.msra.gmra.mxu3 %vm252_vm12, %v1696_v56 }
 0xe25   :  { %2138 = vmatpush.msra.mxu3 %v3529_v11  ;;  %v2962_v11 = vld [vmem:[%s4236_s4 + $0x158] sm:$0xff] }
 0xe29   :  { %v1750_v42 = vpop.f32.mrf.mxu2 }
 0xe2a   :  { %v1751_v9 = vadd.f32 %v1750_v42, %v3383_v47 }
 0xe2c   :  { %2737 = vmatmul.msk.f32.gmra.mxu3 %vm252_vm12, %v1699_v30 }
 0xe31   :  { %v1753_v43 = vpop.f32.mrf.mxu2 }
 0xe32   :  { %v1754_v5 = vadd.f32 %v1753_v43, %v3383_v47  ;;  %v2965_v47 = vld [vmem:[%s4236_s4 + $0x140] sm:$0xff] }
 0xe34   :  { %2738 = vmatmul.msk.f32.gmra.mxu3 %vm252_vm12, %v1702_v1  ;;  %2739 = vmatpush.msk.msrb.mxu0 %vm344_vm13, %v1754_v5 }
 0xe36   :  { %1862 = vmatpush.msrb.mxu0 %v1751_v9 }
 0xe38   :  { %1863 = vmatpush.msrb.mxu0 %v1748_v34 }
 0xe3a   :  { %1979 = vmatpush.msra.mxu0 %v2962_v11 }
 0xe3c   :  { %1980 = vmatpush.msra.mxu0 %v2963_v8  ;;  %2749 = vmatmul.msk.f32.vlgmr.msrb.gmra.mxu3 %vm70_vm0, %v3819_v7  ;;  %v2967_v8 = vld [vmem:[%s4236_s4 + $0x70] sm:$0xff] }
 0xe3e   :  { %1981 = vmatpush.msra.mxu0 %v2964_v29 }
 0xe40   :  { %1982 = vmatpush.msra.mxu0 %v2965_v47 }
 0xe44   :  { %2750 = vmatmul.msk.f32.gmra.mxu3 %vm70_vm0, %v3829_v63 }
 0xe4c   :  { %2751 = vmatmul.msk.f32.gmra.mxu3 %vm70_vm0, %v3839_v28 }
 0xe8f   :  { %v4001_v33 = vpop.f32.mrf.mxu3 }
 0xe97   :  { %v4003_v40 = vpop.f32.mrf.mxu3 }
 0xe9f   :  { %v4005_v62 = vpop.f32.mrf.mxu3 }
 0xea7   :  { %v1791_v60 = vpop.f32.mrf.mxu3 }
 0xea8   :  { %v1800_v50 = vmul.f32 0.35355338, %v1791_v60  ;;  %v2968_v60 = vld [vmem:[%s4236_s4 + $0x68] sm:$0xff] }
 0xeaa   :  { %v1803_v2 = vadd.f32 %v3903_v19, %v1800_v50 }
 0xeac   :  { %v1806_v0 = vsel %vm303_vm14, %v1803_v2, -inf }
 0xead   :  { %1807 = vmax.xlane.f32.xlu1 %v1806_v0  ;;  %v2969_v0 = vld [vmem:[%s4236_s4 + $0x60] sm:$0xff] }
 0xeaf   :  { %v1794_v48 = vpop.f32.mrf.mxu3 }
 0xeb0   :  { %v1801_v41 = vmul.f32 0.35355338, %v1794_v48 }
 0xeb2   :  { %v1804_v53 = vadd.f32 %v3910_v55, %v1801_v41 }
 0xeb4   :  { %v1809_v61 = vsel %vm303_vm14, %v1804_v53, -inf }
 0xeb5   :  { %1810 = vmax.xlane.f32.xlu0 %v1809_v61 }
 0xeb7   :  { %v1797_v3 = vpop.f32.mrf.mxu3 }
 0xeb8   :  { %v1802_v38 = vmul.f32 0.35355338, %v1797_v3 }
 0xeba   :  { %v1805_v12 = vadd.f32 %v3917_v45, %v1802_v38 }
 0xebc   :  { %v1812_v35 = vsel %vm310_vm15, %v1805_v12, -inf }
 0xebd   :  { %1813 = vmax.xlane.f32.xlu2 %v1812_v35 }
 0xebf   :  { %v1958_v14 = vpop.f32.mrf.mxu3 }
 0xec0   :  { %v1959_v42 = vadd.f32 %v1958_v14, %v3442_v37  ;;  %v2970_v14 = vld [vmem:[%s4236_s4 + $0xf8] sm:$0xff] }
 0xec7   :  { %v1961_v15 = vpop.f32.mrf.mxu3 }
 0xec8   :  { %v1962_v32 = vadd.f32 %v1961_v15, %v3442_v37  ;;  %v2971_v15 = vld [vmem:[%s4236_s4 + $0xf0] sm:$0xff] }
 0xecf   :  { %v1964_v24 = vpop.f32.mrf.mxu3 }
 0xed0   :  { %v1965_v56 = vadd.f32 %v1964_v24, %v3442_v37  ;;  %v2966_v37 = vld [vmem:[%s4236_s4 + $0x78] sm:$0xff] }
 0xed2   :  { %2755 = vmatpush.xpose.msk.msra.mxu1 %vm252_vm12, %v1965_v56 }
 0xed6   :  { %2756 = vmatpush.xpose.msk.msra.mxu1 %vm252_vm12, %v1962_v32 }
 0xeda   :  { %2757 = vmatpush.xpose.msk.msra.mxu1 %vm252_vm12, %v1959_v42  ;;  %v2972_v42 = vld [vmem:[%s4236_s4 + $0xe8] sm:$0xff] }
 0xf20   :  { %v1808_v30 = vpop.xlane.xlu1 %1807 }
 0xf21   :  { %v1815_v21 = vsub.f32 %v1803_v2, %v1808_v30 }
 0xf23   :  { %v1818_v43 = vmul.f32 1.442695, %v1815_v21  ;;  %v2973_v21 = vld [vmem:[%s4236_s4 + $0xe0] sm:$0xff] }
 0xf25   :  { %2884 = vpow2.f32 %v1818_v43 }
 0xf28   :  { %v1811_v1 = vpop.xlane.xlu0 %1810 }
 0xf29   :  { %v1816_v5 = vsub.f32 %v1804_v53, %v1811_v1 }
 0xf2b   :  { %v2885_v9 = vpop.eup %2884  ;;  %v1820_v34 = vmul.f32 1.442695, %v1816_v5 }
 0xf2c   :  { %2740 = vmatmul.msk.f32.vlgmr.msrb.gmra.mxu0 %vm303_vm14, %v2885_v9  ;;  %v1824_v11 = vsel %vm303_vm14, %v2885_v9, 0.0  ;;  %v1932_v9 = vpop.f32.mrf.mxu2 }
 0xf2d   :  { %2886 = vpow2.f32 %v1820_v34  ;;  %1825 = vadd.xlane.f32.xlu1 %v1824_v11  ;;  %2164 = vmatpush.msrb.mxu0 %v2966_v37  ;;  %v1933_v11 = vadd.f32 %v1932_v9, %v3458_v52 }
 0xf2f   :  { %2165 = vmatpush.msrb.mxu0 %v2967_v8 }
 0xf30   :  { %v1814_v29 = vpop.xlane.xlu2 %1813 }
 0xf31   :  { %v1817_v47 = vsub.f32 %v1805_v12, %v1814_v29  ;;  %2166 = vmatpush.msrb.mxu0 %v2968_v60 }
 0xf33   :  { %v2887_v50 = vpop.eup %2886  ;;  %v1822_v2 = vmul.f32 1.442695, %v1817_v47  ;;  %2167 = vmatpush.msrb.mxu0 %v2969_v0 }
 0xf34   :  { %2741 = vmatmul.msk.f32.gmra.mxu0 %vm303_vm14, %v2887_v50  ;;  %v1827_v48 = vsel %vm303_vm14, %v2887_v50, 0.0  ;;  %v1935_v37 = vpop.f32.mrf.mxu2 }
 0xf35   :  { %2888 = vpow2.f32 %v1822_v2  ;;  %1828 = vadd.xlane.f32.xlu0 %v1827_v48  ;;  %v1936_v29 = vadd.f32 %v1935_v37, %v3458_v52 }
 0xf3b   :  { %v2889_v41 = vpop.eup %2888 }
 0xf3c   :  { %2742 = vmatmul.msk.f32.gmra.mxu0 %vm303_vm14, %v2889_v41  ;;  %v1830_v53 = vsel %vm310_vm15, %v2889_v41, 0.0  ;;  %v1938_v47 = vpop.f32.mrf.mxu2  ;;  %v2976_v41 = vld [vmem:[%s4236_s4 + $0x168] sm:$0xff] }
 0xf3d   :  { %1831 = vadd.xlane.f32.xlu2 %v1830_v53  ;;  %v1939_v50 = vadd.f32 %v1938_v47, %v3458_v52  ;;  %v2975_v52 = vld [vmem:[%s4236_s4 + $0x170] sm:$0xff]  ;;  %v1675_v53 = vadd.f32 %v4001_v33, %v3617_v6 }
 0xf44   :  { %2752 = vmatmul.msk.f32.vlgmr.msra.gmra.mxu0 %vm70_vm0, %v3819_v7 }
 0xf4c   :  { %2753 = vmatmul.msk.f32.gmra.mxu0 %vm70_vm0, %v3829_v63 }
 0xf54   :  { %2754 = vmatmul.msk.f32.gmra.mxu0 %vm70_vm0, %v3839_v28 }
 0xf5c   :  { %2768 = vmatmul.msk.f32.vlgmr.msrb.gmra.mxu0 %vm70_vm0, %v3819_v7 }
 0xf64   :  { %2769 = vmatmul.msk.f32.gmra.mxu0 %vm70_vm0, %v3829_v63 }
 0xf6c   :  { %2770 = vmatmul.msk.f32.gmra.mxu0 %vm70_vm0, %v3839_v28 }
 0xfa0   :  { %v1826_v61 = vpop.xlane.xlu1 %1825 }
 0xfa1   :  { %2890 = vrcp.f32 %v1826_v61 }
 0xfa7   :  { %v2891_v38 = vpop.eup %2890 }
 0xfa8   :  { %v1829_v3 = vpop.xlane.xlu0 %1828 }
 0xfa9   :  { %v1865_v12 = vpop.f32.mrf.mxu0  ;;  %2892 = vrcp.f32 %v1829_v3 }
 0xfaa   :  { %v1874_v35 = vmul.f32 %v2891_v38, %v1865_v12  ;;  %v1676_v38 = vadd.f32 %v4003_v40, %v3617_v6 }
 0xfac   :  { %2743 = vmatmul.msk.f32.vlgmr.msrb.gmra.mxu1 %vm252_vm12, %v1874_v35 }
 0xfad   :  { %2190 = vmatpush.msrb.mxu1 %v2970_v14  ;;  %v1677_v14 = vadd.f32 %v4005_v62, %v3617_v6 }
 0xfaf   :  { %2191 = vmatpush.msrb.mxu1 %v2971_v15  ;;  %v2893_v56 = vpop.eup %2892 }
 0xfb0   :  { %v1832_v24 = vpop.xlane.xlu2 %1831 }
 0xfb1   :  { %v1868_v32 = vpop.f32.mrf.mxu0  ;;  %2192 = vmatpush.msrb.mxu1 %v2972_v42  ;;  %2894 = vrcp.f32 %v1832_v24 }
 0xfb2   :  { %v1875_v30 = vmul.f32 %v2893_v56, %v1868_v32 }
 0xfb3   :  { %2193 = vmatpush.msrb.mxu1 %v2973_v21 }
 0xfb4   :  { %2744 = vmatmul.msk.f32.gmra.mxu1 %vm252_vm12, %v1875_v30 }
 0xfb7   :  { %v2895_v43 = vpop.eup %2894 }
 0xfb9   :  { %v1871_v1 = vpop.f32.mrf.mxu0 }
 0xfba   :  { %v1876_v5 = vmul.f32 %v2895_v43, %v1871_v1 }
 0xfbc   :  { %2745 = vmatmul.msk.f32.gmra.mxu1 %vm252_vm12, %v1876_v5 }
 0xfc1   :  { %v1984_v34 = vpop.f32.mrf.mxu0 }
 0xfc2   :  { %v1985_v48 = vadd.f32 %v1984_v34, %v3494_v51 }
 0xfc4   :  { %2758 = vmatmul.msk.f32.vlgmr.msra.gmra.mxu1 %vm252_vm12, %v1933_v11 }
 0xfc5   :  { %2375 = vmatpush.msra.mxu1 %v3592_v59  ;;  %v2974_v59 = vld [vmem:[%s4236_s4 + $0x178] sm:$0xff] }
 0xfc9   :  { %v1987_v8 = vpop.f32.mrf.mxu0 }
 0xfca   :  { %v1988_v0 = vadd.f32 %v1987_v8, %v3494_v51 }
 0xfcc   :  { %2759 = vmatmul.msk.f32.gmra.mxu1 %vm252_vm12, %v1936_v29 }
 0xfd1   :  { %v1990_v60 = vpop.f32.mrf.mxu0 }
 0xfd2   :  { %v1991_v2 = vadd.f32 %v1990_v60, %v3494_v51  ;;  %v2977_v51 = vld [vmem:[%s4236_s4 + $0x160] sm:$0xff] }
 0xfd4   :  { %2760 = vmatmul.msk.f32.gmra.mxu1 %vm252_vm12, %v1939_v50  ;;  %2761 = vmatpush.msk.msra.mxu2 %vm344_vm13, %v1991_v2 }
 0xfd6   :  { %2099 = vmatpush.msra.mxu2 %v1988_v0 }
 0xfd8   :  { %2100 = vmatpush.msra.mxu2 %v1985_v48 }
 0xfda   :  { %2216 = vmatpush.msrb.mxu2 %v2974_v59 }
 0xfdc   :  { %2217 = vmatpush.msrb.mxu2 %v2975_v52  ;;  %2771 = vmatmul.msk.f32.vlgmr.msrb.gmra.mxu1 %vm70_vm0, %v3819_v7 }
 0xfde   :  { %2218 = vmatpush.msrb.mxu2 %v2976_v41 }
 0xfe0   :  { %2219 = vmatpush.msrb.mxu2 %v2977_v51 }
 0xfe4   :  { %2772 = vmatmul.msk.f32.gmra.mxu1 %vm70_vm0, %v3829_v63 }
 0xfec   :  { %2773 = vmatmul.msk.f32.gmra.mxu1 %vm70_vm0, %v3839_v28 }
0x1029   :  { %v1903_v61 = vpop.f32.mrf.mxu1 }
0x102a   :  { %v4095_v3 = vadd.f32 %v1903_v61, %v1675_v53 }
0x1031   :  { %v1906_v12 = vpop.f32.mrf.mxu1 }
0x1032   :  { %v4099_v35 = vadd.f32 %v1906_v12, %v1676_v38 }
0x1039   :  { %v1909_v15 = vpop.f32.mrf.mxu1 }
0x103a   :  { %v4103_v24 = vadd.f32 %v1909_v15, %v1677_v14 }
0x1041   :  { %v2028_v56 = vpop.f32.mrf.mxu1 }
0x1042   :  { %v2037_v32 = vmul.f32 0.35355338, %v2028_v56 }
0x1044   :  { %v2040_v42 = vadd.f32 %v3903_v19, %v2037_v32 }
0x1046   :  { %v2043_v33 = vsel %vm303_vm14, %v2040_v42, -inf }
0x1047   :  { %2044 = vmax.xlane.f32.xlu1 %v2043_v33 }
0x1049   :  { %v2031_v30 = vpop.f32.mrf.mxu1 }
0x104a   :  { %v2038_v21 = vmul.f32 0.35355338, %v2031_v30 }
0x104c   :  { %v2041_v40 = vadd.f32 %v3910_v55, %v2038_v21 }
0x104e   :  { %v2046_v43 = vsel %vm303_vm14, %v2041_v40, -inf }
0x104f   :  { %2047 = vmax.xlane.f32.xlu0 %v2046_v43 }
0x1051   :  { %v2034_v1 = vpop.f32.mrf.mxu1 }
0x1052   :  { %v2039_v5 = vmul.f32 0.35355338, %v2034_v1 }
0x1054   :  { %v2042_v6 = vadd.f32 %v3917_v45, %v2039_v5 }
0x1056   :  { %v2049_v62 = vsel %vm310_vm15, %v2042_v6, -inf }
0x1057   :  { %2050 = vmax.xlane.f32.xlu2 %v2049_v62 }
0x1059   :  { %v2195_v9 = vpop.f32.mrf.mxu1 }
0x105a   :  { %v2196_v29 = vadd.f32 %v2195_v9, %v3532_v16 }
0x1061   :  { %v2198_v34 = vpop.f32.mrf.mxu1 }
0x1062   :  { %v2199_v8 = vadd.f32 %v2198_v34, %v3532_v16 }
0x1069   :  { %v2201_v11 = vpop.f32.mrf.mxu1 }
0x106a   :  { %v2202_v37 = vadd.f32 %v2201_v11, %v3532_v16 }
0x106c   :  { %2777 = vmatpush.xpose.msk.msrb.mxu3 %vm252_vm12, %v2202_v37 }
0x1070   :  { %2778 = vmatpush.xpose.msk.msrb.mxu3 %vm252_vm12, %v2199_v8 }
0x1074   :  { %2779 = vmatpush.xpose.msk.msrb.mxu3 %vm252_vm12, %v2196_v29 }
0x10ba   :  { %v2045_v47 = vpop.xlane.xlu1 %2044 }
0x10bb   :  { %v2052_v60 = vsub.f32 %v2040_v42, %v2045_v47 }
0x10bd   :  { %v2055_v50 = vmul.f32 1.442695, %v2052_v60 }
0x10bf   :  { %2896 = vpow2.f32 %v2055_v50 }
0x10c2   :  { %v2048_v2 = vpop.xlane.xlu0 %2047 }
0x10c3   :  { %v2053_v0 = vsub.f32 %v2041_v40, %v2048_v2 }
0x10c5   :  { %v2897_v48 = vpop.eup %2896  ;;  %v2057_v59 = vmul.f32 1.442695, %v2053_v0 }
0x10c6   :  { %2762 = vmatmul.msk.f32.vlgmr.msra.gmra.mxu2 %vm303_vm14, %v2897_v48  ;;  %v2061_v52 = vsel %vm303_vm14, %v2897_v48, 0.0 }
0x10c7   :  { %2898 = vpow2.f32 %v2057_v59  ;;  %2062 = vadd.xlane.f32.xlu1 %v2061_v52  ;;  %2485 = vmatpush.msra.mxu2 %v3670_v58 }
0x10c9   :  { %2486 = vmatpush.msra.mxu2 %v3676_v17 }
0x10ca   :  { %v2051_v16 = vpop.xlane.xlu2 %2050 }
0x10cb   :  { %v2054_v41 = vsub.f32 %v2042_v6, %v2051_v16  ;;  %2487 = vmatpush.msra.mxu2 %v3682_v26 }
0x10cd   :  { %v2899_v51 = vpop.eup %2898  ;;  %v2059_v53 = vmul.f32 1.442695, %v2054_v41  ;;  %2488 = vmatpush.msra.mxu2 %v3688_v23 }
0x10ce   :  { %2763 = vmatmul.msk.f32.gmra.mxu2 %vm303_vm14, %v2899_v51  ;;  %v2064_v61 = vsel %vm303_vm14, %v2899_v51, 0.0 }
0x10cf   :  { %2900 = vpow2.f32 %v2059_v53  ;;  %2065 = vadd.xlane.f32.xlu0 %v2064_v61 }
0x10d5   :  { %v2901_v38 = vpop.eup %2900 }
0x10d6   :  { %2764 = vmatmul.msk.f32.gmra.mxu2 %vm303_vm14, %v2901_v38  ;;  %v2067_v58 = vsel %vm310_vm15, %v2901_v38, 0.0 }
0x10d7   :  { %2068 = vadd.xlane.f32.xlu2 %v2067_v58 }
0x10de   :  { %2774 = vmatmul.msk.f32.vlgmr.msrb.gmra.mxu2 %vm70_vm0, %v3819_v7 }
0x10e6   :  { %2775 = vmatmul.msk.f32.gmra.mxu2 %vm70_vm0, %v3829_v63 }
0x10ee   :  { %2776 = vmatmul.msk.f32.gmra.mxu2 %vm70_vm0, %v3839_v28 }
0x113a   :  { %v2063_v17 = vpop.xlane.xlu1 %2062 }
0x113b   :  { %2902 = vrcp.f32 %v2063_v17 }
0x1141   :  { %v2903_v23 = vpop.eup %2902 }
0x1142   :  { %v2066_v26 = vpop.xlane.xlu0 %2065 }
0x1143   :  { %2904 = vrcp.f32 %v2066_v26 }
0x1149   :  { %v2102_v12 = vpop.f32.mrf.mxu2  ;;  %v2905_v15 = vpop.eup %2904 }
0x114a   :  { %v2111_v14 = vmul.f32 %v2903_v23, %v2102_v12  ;;  %v2069_v7 = vpop.xlane.xlu2 %2068 }
0x114b   :  { %2906 = vrcp.f32 %v2069_v7 }
0x114c   :  { %2765 = vmatmul.msk.f32.vlgmr.msra.gmra.mxu3 %vm252_vm12, %v2111_v14 }
0x114d   :  { %2519 = vmatpush.msra.mxu3 %v3708_v20 }
0x114f   :  { %2520 = vmatpush.msra.mxu3 %v3713_v44  ;;  %v2169_v44 = vpop.f32.mrf.mxu0 }
0x1150   :  { %v2170_v42 = vadd.f32 %v2169_v44, %v3543_v39 }
0x1151   :  { %v2105_v56 = vpop.f32.mrf.mxu2  ;;  %2521 = vmatpush.msra.mxu3 %v3719_v49  ;;  %v2907_v28 = vpop.eup %2906 }
0x1152   :  { %v2112_v63 = vmul.f32 %v2905_v15, %v2105_v56 }
0x1153   :  { %2522 = vmatpush.msra.mxu3 %v3726_v46 }
0x1154   :  { %2766 = vmatmul.msk.f32.gmra.mxu3 %vm252_vm12, %v2112_v63 }
0x1155   :  { %2523 = vmatpush.msra.mxu3 %v3732_v10 }
0x1157   :  { %2524 = vmatpush.msra.mxu3 %v3769_v54  ;;  %v2172_v46 = vpop.f32.mrf.mxu0 }
0x1158   :  { %v2173_v10 = vadd.f32 %v2172_v46, %v3543_v39 }
0x1159   :  { %v2108_v32 = vpop.f32.mrf.mxu2  ;;  %2525 = vmatpush.msra.mxu3 %v3775_v22 }
0x115a   :  { %v2113_v20 = vmul.f32 %v2907_v28, %v2108_v32 }
0x115b   :  { %2526 = vmatpush.msra.mxu3 %v3781_v13 }
0x115c   :  { %2767 = vmatmul.msk.f32.gmra.mxu3 %vm252_vm12, %v2113_v20 }
0x115f   :  { %v2175_v54 = vpop.f32.mrf.mxu0 }
0x1160   :  { %v2176_v22 = vadd.f32 %v2175_v54, %v3543_v39 }
0x1161   :  { %v2221_v49 = vpop.f32.mrf.mxu2 }
0x1162   :  { %v2222_v40 = vadd.f32 %v2221_v49, %v3567_v36 }
0x1164   :  { %2780 = vmatmul.msk.f32.vlgmr.msrb.gmra.mxu3 %vm252_vm12, %v2170_v42 }
0x1169   :  { %v2224_v33 = vpop.f32.mrf.mxu2 }
0x116a   :  { %v2225_v13 = vadd.f32 %v2224_v33, %v3567_v36 }
0x116c   :  { %2781 = vmatmul.msk.f32.gmra.mxu3 %vm252_vm12, %v2173_v10 }
0x1171   :  { %v2227_v30 = vpop.f32.mrf.mxu2 }
0x1172   :  { %v2228_v21 = vadd.f32 %v2227_v30, %v3567_v36 }
0x1174   :  { %2782 = vmatmul.msk.f32.gmra.mxu3 %vm252_vm12, %v2176_v22  ;;  %2783 = vmatpush.msk.msra.mxu0 %vm344_vm13, %v2228_v21 }
0x1176   :  { %2336 = vmatpush.msra.mxu0 %v2225_v13 }
0x1178   :  { %2337 = vmatpush.msra.mxu0 %v2222_v40 }
0x11cf   :  { %v2140_v43 = vpop.f32.mrf.mxu3 }
0x11d0   :  { %v4155_v1 = vadd.f32 %v2140_v43, %v4095_v3 }
0x11d7   :  { %v2143_v5 = vpop.f32.mrf.mxu3 }
0x11d8   :  { %v4158_v6 = vadd.f32 %v2143_v5, %v4099_v35 }
0x11df   :  { %v2146_v39 = vpop.f32.mrf.mxu3 }
0x11e0   :  { %v4161_v62 = vadd.f32 %v2146_v39, %v4103_v24 }
0x11e7   :  { %v2265_v9 = vpop.f32.mrf.mxu3 }
0x11e8   :  { %v2274_v34 = vmul.f32 0.35355338, %v2265_v9 }
0x11ea   :  { %v2277_v11 = vadd.f32 %v3903_v19, %v2274_v34 }
0x11ec   :  { %v2280_v36 = vsel %vm303_vm14, %v2277_v11, -inf }
0x11ed   :  { %2281 = vmax.xlane.f32.xlu1 %v2280_v36 }
0x11ef   :  { %v2268_v37 = vpop.f32.mrf.mxu3 }
0x11f0   :  { %v2275_v8 = vmul.f32 0.35355338, %v2268_v37 }
0x11f2   :  { %v2278_v3 = vadd.f32 %v3910_v55, %v2275_v8 }
0x11f4   :  { %v2283_v29 = vsel %vm303_vm14, %v2278_v3, -inf }
0x11f5   :  { %2284 = vmax.xlane.f32.xlu0 %v2283_v29 }
0x11f7   :  { %v2271_v35 = vpop.f32.mrf.mxu3 }
0x11f8   :  { %v2276_v47 = vmul.f32 0.35355338, %v2271_v35 }
0x11fa   :  { %v2279_v60 = vadd.f32 %v3917_v45, %v2276_v47 }
0x11fc   :  { %v2286_v24 = vsel %vm310_vm15, %v2279_v60, -inf }
0x11fd   :  { %2287 = vmax.xlane.f32.xlu2 %v2286_v24 }
0x1260   :  { %v2282_v50 = vpop.xlane.xlu1 %2281 }
0x1261   :  { %v2289_v2 = vsub.f32 %v2277_v11, %v2282_v50 }
0x1263   :  { %v2292_v19 = vmul.f32 1.442695, %v2289_v2 }
0x1265   :  { %2908 = vpow2.f32 %v2292_v19 }
0x1268   :  { %v2285_v0 = vpop.xlane.xlu0 %2284 }
0x1269   :  { %v2290_v48 = vsub.f32 %v2278_v3, %v2285_v0 }
0x126b   :  { %v2909_v59 = vpop.eup %2908  ;;  %v2294_v52 = vmul.f32 1.442695, %v2290_v48 }
0x126c   :  { %2784 = vmatmul.msk.f32.vlgmr.msra.gmra.mxu0 %vm303_vm14, %v2909_v59  ;;  %v2298_v55 = vsel %vm303_vm14, %v2909_v59, 0.0 }
0x126d   :  { %2910 = vpow2.f32 %v2294_v52  ;;  %2299 = vadd.xlane.f32.xlu1 %v2298_v55 }
0x1270   :  { %v2288_v16 = vpop.xlane.xlu2 %2287 }
0x1271   :  { %v2291_v41 = vsub.f32 %v2279_v60, %v2288_v16 }
0x1273   :  { %v2911_v45 = vpop.eup %2910  ;;  %v2296_v51 = vmul.f32 1.442695, %v2291_v41 }
0x1274   :  { %2785 = vmatmul.msk.f32.gmra.mxu0 %vm303_vm14, %v2911_v45  ;;  %v2301_v53 = vsel %vm303_vm14, %v2911_v45, 0.0 }
0x1275   :  { %2912 = vpow2.f32 %v2296_v51  ;;  %2302 = vadd.xlane.f32.xlu0 %v2301_v53 }
0x127b   :  { %v2913_v61 = vpop.eup %2912 }
0x127c   :  { %2786 = vmatmul.msk.f32.gmra.mxu0 %vm303_vm14, %v2913_v61  ;;  %v2304_v38 = vsel %vm310_vm15, %v2913_v61, 0.0 }
0x127d   :  { %2305 = vadd.xlane.f32.xlu2 %v2304_v38 }
0x12e0   :  { %v2300_v58 = vpop.xlane.xlu1 %2299 }
0x12e1   :  { %2914 = vrcp.f32 %v2300_v58 }
0x12e7   :  { %v2915_v26 = vpop.eup %2914 }
0x12e8   :  { %v2303_v17 = vpop.xlane.xlu0 %2302 }
0x12e9   :  { %v2339_v23 = vpop.f32.mrf.mxu0  ;;  %2916 = vrcp.f32 %v2303_v17 }
0x12ea   :  { %v2348_v12 = vmul.f32 %v2915_v26, %v2339_v23 }
0x12ec   :  { %2787 = vmatmul.msk.f32.vlgmr.msra.gmra.mxu1 %vm252_vm12, %v2348_v12 }
0x12ef   :  { %v2917_v7 = vpop.eup %2916 }
0x12f0   :  { %v2306_v14 = vpop.xlane.xlu2 %2305 }
0x12f1   :  { %v2342_v15 = vpop.f32.mrf.mxu0  ;;  %2918 = vrcp.f32 %v2306_v14 }
0x12f2   :  { %v2349_v56 = vmul.f32 %v2917_v7, %v2342_v15 }
0x12f4   :  { %2788 = vmatmul.msk.f32.gmra.mxu1 %vm252_vm12, %v2349_v56 }
0x12f7   :  { %v2919_v63 = vpop.eup %2918 }
0x12f9   :  { %v2345_v28 = vpop.f32.mrf.mxu0 }
0x12fa   :  { %v2350_v32 = vmul.f32 %v2919_v63, %v2345_v28 }
0x12fc   :  { %2789 = vmatmul.msk.f32.gmra.mxu1 %vm252_vm12, %v2350_v32 }
0x1369   :  { %v2377_v20 = vpop.f32.mrf.mxu1 }
0x136a   :  { %v2386_v44 = vadd.f32 %v2377_v20, %v4155_v1 }
0x136c   :  { %v4180_v49 = vadd.f32 %v2386_v44, %v3791_v25 }
0x136e   :  { %v2392_v42 = vsel %vm70_vm0, %v4180_v49, 0.0 }
0x136f   :  { %2393 = vadd.xlane.f32.xlu1 %v2392_v42 }
0x1371   :  { %v2380_v46 = vpop.f32.mrf.mxu1 }
0x1372   :  { %v2387_v33 = vadd.f32 %v2380_v46, %v4158_v6 }
0x1374   :  { %v4186_v10 = vadd.f32 %v2387_v33, %v3796_v27 }
0x1376   :  { %v2395_v54 = vsel %vm70_vm0, %v4186_v10, 0.0 }
0x1377   :  { %2396 = vadd.xlane.f32.xlu0 %v2395_v54  ;;  %v2978_v54 = vld [vmem:[%s4239_s7] ss:$0 sm:$0xff]  ;;  %s3009_s7 = smov [#allocation2]  }
0x1378   :  { %s2547_s18 = sshll.u32 %s3009_s7, 4  ;;  %s2548_s18 = int_to_ptr.vmem [resolvable:$true] %s2547_s18 }
0x1379   :  { %v2383_v30 = vpop.f32.mrf.mxu1 }
0x137a   :  { %v2388_v22 = vadd.f32 %v2383_v30, %v4161_v62 }
0x137c   :  { %v4192_v25 = vadd.f32 %v2388_v22, %v3801_v31 }
0x137e   :  { %v2398_v21 = vsel %vm77_vm1, %v4192_v25, 0.0 }
0x137f   :  { %2399 = vadd.xlane.f32.xlu2 %v2398_v21 }
0x13e2   :  { %v2394_v13 = vpop.xlane.xlu1 %2393 }
0x13e3   :  { %v2401_v40 = vmul.f32 %v2394_v13, %v3092_v18 }
0x13e5   :  { %v2404_v27 = vsub.f32 %v4180_v49, %v2401_v40 }
0x13e7   :  { %v2407_v43 = vmul.f32 %v2404_v27, %v2404_v27 }
0x13e9   :  { %v2410_v1 = vsel %vm70_vm0, %v2407_v43, 0.0 }
0x13ea   :  { %2411 = vadd.xlane.f32.xlu1 %v2410_v1  ;;  %v2397_v5 = vpop.xlane.xlu0 %2396 }
0x13eb   :  { %v2402_v6 = vmul.f32 %v2397_v5, %v3092_v18 }
0x13ed   :  { %v2405_v39 = vsub.f32 %v4186_v10, %v2402_v6 }
0x13ef   :  { %v2408_v31 = vmul.f32 %v2405_v39, %v2405_v39 }
0x13f1   :  { %v2413_v62 = vsel %vm70_vm0, %v2408_v31, 0.0 }
0x13f2   :  { %2414 = vadd.xlane.f32.xlu0 %v2413_v62  ;;  %v2400_v9 = vpop.xlane.xlu2 %2399 }
0x13f3   :  { %v2403_v34 = vmul.f32 %v2400_v9, %v3092_v18 }
0x13f5   :  { %v2406_v11 = vsub.f32 %v4192_v25, %v2403_v34 }
0x13f7   :  { %v2409_v36 = vmul.f32 %v2406_v11, %v2406_v11 }
0x13f9   :  { %v2416_v37 = vsel %vm77_vm1, %v2409_v36, 0.0 }
0x13fa   :  { %2417 = vadd.xlane.f32.xlu2 %v2416_v37 }
0x145d   :  { %v2412_v8 = vpop.xlane.xlu1 %2411 }
0x145e   :  { %v2419_v3 = vmul.f32 %v2412_v8, %v3092_v18 }
0x1460   :  { %v2422_v29 = vadd.f32 1e-05, %v2419_v3 }
0x1462   :  { %2920 = vrsqrt.f32 %v2422_v29  ;;  %vm2431_vm13 = vweird.f32 %v2422_v29 }
0x1465   :  { %v2415_v35 = vpop.xlane.xlu0 %2414 }
0x1466   :  { %v2420_v47 = vmul.f32 %v2415_v35, %v3092_v18 }
0x1468   :  { %v2921_v60 = vpop.eup %2920  ;;  %v2423_v24 = vadd.f32 1e-05, %v2420_v47 }
0x1469   :  { %v2426_v50 = vmul.f32 %v2921_v60, %v2422_v29  ;;  %vm2432_vm12 = vweird.f32 %v2921_v60 }
0x146a   :  { %2922 = vrsqrt.f32 %v2423_v24  ;;  %vm2433_vm14 = vmor %vm2431_vm13, %vm2432_vm12  ;;  %vm2441_vm2 = vweird.f32 %v2423_v24 }
0x146b   :  { %v2427_v2 = vmul.f32 %v2921_v60, %v2426_v50 }
0x146d   :  { %v2428_v19 = vmul.f32 0.5, %v2427_v2  ;;  %v2418_v0 = vpop.xlane.xlu2 %2417 }
0x146e   :  { %v2421_v48 = vmul.f32 %v2418_v0, %v3092_v18 }
0x146f   :  { %v2429_v59 = vsub.f32 1.5, %v2428_v19 }
0x1470   :  { %v2923_v52 = vpop.eup %2922  ;;  %v2424_v55 = vadd.f32 1e-05, %v2421_v48 }
0x1471   :  { %v2430_v16 = vmul.f32 %v2921_v60, %v2429_v59  ;;  %v2436_v41 = vmul.f32 %v2923_v52, %v2423_v24  ;;  %vm2442_vm15 = vweird.f32 %v2923_v52 }
0x1472   :  { %2924 = vrsqrt.f32 %v2424_v55  ;;  %vm2443_vm3 = vmor %vm2441_vm2, %vm2442_vm15  ;;  %vm2451_vm5 = vweird.f32 %v2424_v55 }
0x1473   :  { %v2434_v45 = vsel %vm2433_vm14, %v2921_v60, %v2430_v16  ;;  %v2437_v51 = vmul.f32 %v2923_v52, %v2436_v41 }
0x1474   :  { %v2455_v53 = vmul.f32 %v2434_v45, %v2404_v27 }
0x1475   :  { %v2438_v61 = vmul.f32 0.5, %v2437_v51 }
0x1476   :  { %v2458_v38 = vmul.f32 %v2455_v53, %v3736_v57 }
0x1477   :  { %v2439_v58 = vsub.f32 1.5, %v2438_v61 }
0x1478   :  { %v2925_v17 = vpop.eup %2924  ;;  %v2461_v18 = vadd.f32 %v2458_v38, %v3741_v4 }
0x1479   :  { %v2440_v26 = vmul.f32 %v2923_v52, %v2439_v58  ;;  %v2446_v23 = vmul.f32 %v2925_v17, %v2424_v55  ;;  %vm2452_vm4 = vweird.f32 %v2925_v17 }
0x147a   :  { %2790 = vmatmul.msk.f32.vlgmr.msra.gmra.mxu2 %vm70_vm0, %v2461_v18  ;;  %vm2453_vm6 = vmor %vm2451_vm5, %vm2452_vm4 }
0x147b   :  { %v2444_v12 = vsel %vm2443_vm3, %v2923_v52, %v2440_v26  ;;  %v2447_v14 = vmul.f32 %v2925_v17, %v2446_v23 }
0x147c   :  { %v2456_v7 = vmul.f32 %v2444_v12, %v2405_v39 }
0x147d   :  { %v2448_v15 = vmul.f32 0.5, %v2447_v14 }
0x147e   :  { %v2459_v56 = vmul.f32 %v2456_v7, %v3736_v57 }
0x147f   :  { %v2449_v63 = vsub.f32 1.5, %v2448_v15 }
0x1480   :  { %v2462_v28 = vadd.f32 %v2459_v56, %v3741_v4 }
0x1481   :  { %v2450_v32 = vmul.f32 %v2925_v17, %v2449_v63 }
0x1482   :  { %2791 = vmatmul.msk.f32.gmra.mxu2 %vm70_vm0, %v2462_v28 }
0x1483   :  { %v2454_v20 = vsel %vm2453_vm6, %v2925_v17, %v2450_v32 }
0x1484   :  { %v2457_v44 = vmul.f32 %v2454_v20, %v2406_v11 }
0x1486   :  { %v2460_v42 = vmul.f32 %v2457_v44, %v3736_v57 }
0x1488   :  { %v2463_v46 = vadd.f32 %v2460_v42, %v3741_v4 }
0x148a   :  { %2792 = vmatmul.msk.f32.gmra.mxu2 %vm70_vm0, %v2463_v46 }
0x14fd   :  { %v2490_v33 = vpop.f32.mrf.mxu2 }
0x14fe   :  { %v2491_v30 = vadd.f32 %v2978_v54, %v2490_v33 }
0x1500   :  { %v2499_v22 = vmax.f32 %v2491_v30, 0.0 }
0x1502   :  { %2793 = vmatmul.msk.f32.vlgmr.msra.gmra.mxu3 %vm1321_vm11, %v2499_v22 }
0x1505   :  { %v2493_v21 = vpop.f32.mrf.mxu2 }
0x1506   :  { %v2494_v13 = vadd.f32 %v2978_v54, %v2493_v21 }
0x1508   :  { %v2500_v40 = vmax.f32 %v2494_v13, 0.0 }
0x150a   :  { %2794 = vmatmul.msk.f32.gmra.mxu3 %vm1321_vm11, %v2500_v40 }
0x150d   :  { %v2496_v27 = vpop.f32.mrf.mxu2 }
0x150e   :  { %v2497_v57 = vadd.f32 %v2978_v54, %v2496_v27 }
0x1510   :  { %v2501_v43 = vmax.f32 %v2497_v57, 0.0 }
0x1512   :  { %2795 = vmatmul.msk.f32.gmra.mxu3 %vm1321_vm11, %v2501_v43 }
0x1585   :  { %v2528_v4 = vpop.f32.mrf.mxu3 }
0x1586   :  { %v2537_v1 = vadd.f32 %v2528_v4, %v4180_v49 }
0x1588   :  { %2540 = vst.msk [vmem:[#allocation2] sm:$0xff] %vm70_vm0, %v2537_v1 }
0x158d   :  { %v2531_v5 = vpop.f32.mrf.mxu3 }
0x158e   :  { %v2538_v6 = vadd.f32 %v2531_v5, %v4186_v10 }
0x1590   :  { %2541 = vst.msk [vmem:[#allocation2 + $0x8] sm:$0xff] %vm70_vm0, %v2538_v6 }
0x1595   :  { %v2534_v39 = vpop.f32.mrf.mxu3 }
0x1596   :  { %v2539_v31 = vadd.f32 %v2534_v39, %v4192_v25 }
0x1598   :  { %2542 = vst.msk [vmem:[#allocation2 + $0x10] sm:$0x3] %vm77_vm1, %v2539_v31 }
0x1599   :  { %2555 = dma.vmem_to_hbm [thread:$0]  %s2548_s18, 384, %s2550_s0, [#allocation3], %s3010_s1, %s3010_s1, %s3011_s21  }
0x159a   :  { %3003 = dma.done.wait [#allocation3], 384  }
0x159b   :  { %3004 = vsyncadd [#allocation3], 4294966912 }
0x159c   :  { %2560 = vsyncpa [#allocation3], 1 }

</bundles_post_ra>
